<compile_context>
chip_gen: v5e
topology: v5e:2x2
jax: 0.10.0
libtpu: 0.0.40
codegen_flags: <defaults>
</compile_context>

<pallas_src>
import math

import jax
import jax.numpy as jnp
from jax.experimental import pallas as pl
from jax.experimental.pallas import tpu as pltpu


def _round_up(v, m):
    return ((v + m - 1) // m) * m


def _sigmoid(v):
    return 1.0 / (1.0 + jnp.exp(-v))


def _softplus(v):
    # numerically safe softplus using only exp/log/abs (Mosaic-friendly)
    return jnp.maximum(v, 0.0) + jnp.log(1.0 + jnp.exp(-jnp.abs(v)))


def make_expert_kernel(S, L, Bp, Dip, N, OUTP):
    """Single-step kernel: runs all S Mamba scales, accumulates the head output."""
    f32 = jnp.float32
    bf16 = jnp.bfloat16
    LB = L * Bp

    def kernel(fused_cat_ref, fused_last_ref, fin_b_ref,
               w_comb_ref, conv_b_ref, w_z_ref, w_delta_ref, dt_b_ref,
               w_b_ref, w_c_ref, a_t_ref, d_ref, w_head_ref, out_ref):
        fused_cat = fused_cat_ref[...]          # (LB, KDp)   bf16, time-major rows
        fused_last = fused_last_ref[...]        # (Bp, Dp)    bf16, last-timestep rows

        # head bias folded in; per-scale partials accumulate on top of it
        acc = jnp.broadcast_to(fin_b_ref[...], (Bp, OUTP))

        for s in range(S):                      # static unroll over Mamba scales
            w_comb = w_comb_ref[s]              # (KDp, Dip)  bf16  conv taps ⊙ in_proj(x)
            conv_b = conv_b_ref[s]              # (1, Dip)    f32
            w_z = w_z_ref[s]                    # (Dp, Dip)   bf16  in_proj(z)
            w_delta = w_delta_ref[s]            # (Dip, Dip)  f32   x_proj_dt @ dt_proj
            dt_b = dt_b_ref[s]                  # (1, Dip)    f32
            w_b = w_b_ref[s]                    # (Dip, N)    bf16
            w_c = w_c_ref[s]                    # (Dip, N)    bf16
            a_t = a_t_ref[s]                    # (N, Dip)    f32   = -exp(A_log).T
            d_param = d_ref[s]                  # (1, Dip)    f32
            w_head = w_head_ref[s]              # (Dip, OUTP) bf16  out_proj @ head slice

            # ---- causal depthwise conv + in_proj(x) fused in one MXU pass ----
            x_pre = jnp.dot(fused_cat, w_comb, preferred_element_type=f32) + conv_b
            x_conv = x_pre * _sigmoid(x_pre)                    # SiLU, (LB, Dip) f32
            x_conv_b = x_conv.astype(bf16)

            # ---- delta path stays f32 end-to-end (correctness feedback) ----
            delta = _softplus(
                jnp.dot(x_conv, w_delta, preferred_element_type=f32) + dt_b)

            # ---- B for all timesteps, C only at t = L-1 ----
            b_mat = jnp.dot(x_conv_b, w_b, preferred_element_type=f32)   # (LB, N)
            x_conv_last = x_conv[(L - 1) * Bp:, :]                       # (Bp, Dip)
            c_last = jnp.dot(x_conv_last.astype(bf16), w_c,
                             preferred_element_type=f32)                 # (Bp, N)
            c_rows = jnp.concatenate([c_last] * L, axis=0)               # (LB, N)
            bc = b_mat * c_rows                                          # (LB, N)

            # ---- reverse-exclusive cumsum of delta over time ----
            # (sublane-aligned static slices + adds; no mask matmul, no BL^2 input)
            run = jnp.zeros((Bp, Dip), f32)
            dc_rows = [None] * L
            for t in range(L - 1, -1, -1):
                dc_rows[t] = run
                run = run + delta[t * Bp:(t + 1) * Bp, :]
            dc = jnp.concatenate(dc_rows, axis=0)                        # (LB, Dip)

            # ---- closed-form h[L-1]: ONE batched exp over the whole slab ----
            e_arg = jnp.concatenate(
                [dc * a_t[n:n + 1, :] for n in range(N)], axis=0)        # (N*LB, Dip)
            e_all = jnp.exp(e_arg)                                       # single EUP pipeline
            w_acc = jnp.zeros((LB, Dip), f32)
            for n in range(N):                                           # pure VALU FMA
                w_acc = w_acc + e_all[n * LB:(n + 1) * LB, :] * bc[:, n:n + 1]
            contrib = w_acc * delta * x_conv                             # (LB, Dip)

            # ---- sum over time (sublane-aligned slices + adds) ----
            y_ssm = contrib[(L - 1) * Bp:, :]
            for t in range(L - 1):
                y_ssm = y_ssm + contrib[t * Bp:(t + 1) * Bp, :]

            # ---- D skip, z-gate, fused out_proj + final-head slice ----
            y = y_ssm + d_param * x_conv_last                            # (Bp, Dip)
            z_last = jnp.dot(fused_last, w_z, preferred_element_type=f32)
            y = y * (z_last * _sigmoid(z_last))
            acc = acc + jnp.dot(y.astype(bf16), w_head,
                                preferred_element_type=f32)              # (Bp, OUTP)

        out_ref[...] = acc                                               # dense (8,128k) store

    return kernel


def fft_ms_mamba_expert(x, params, *, seq_len, pred_len, mamba_scales,
                        d_state=16):
    B, L, C = x.shape
    assert L == seq_len and C == 3

    # TODO(synk): rfft / abs / angle (FFT feature extraction) have no Pallas
    # equivalent on TPU; computed here in plain JAX (matches torch norm='ortho').
    fft = jnp.fft.rfft(x, axis=1, norm='ortho')
    fft_feat = jnp.concatenate([jnp.abs(fft), jnp.angle(fft)], axis=2)   # (B, F, 2C)
    fft_flat = fft_feat.reshape(B, -1)
    fused = jnp.concatenate(
        [x, jnp.broadcast_to(fft_flat[:, None, :], (B, L, fft_flat.shape[1]))],
        axis=2).astype(jnp.float32)                                      # (B, L, D)

    D = fused.shape[2]
    Di = 2 * D
    N = d_state
    R = math.ceil(D / 16)
    out_dim = C * pred_len
    Ks = tuple(mamba_scales)
    S = len(Ks)
    max_k = max(Ks)
    KD = max_k * D

    # ---- lane / sublane padded dims (zero padding; exact) ----
    Bp = _round_up(B, 8)
    Dp = _round_up(D, 128)
    Dip = _round_up(Di, 128)
    KDp = _round_up(KD, 128)
    OUTP = _round_up(out_dim, 128)
    LB = L * Bp

    # ---- im2col for the causal depthwise conv, time-major rows (r = t*Bp + b) ----
    shifted = [fused]
    for sh in range(1, max_k):
        shifted.append(jnp.pad(fused, ((0, 0), (sh, 0), (0, 0)))[:, :L, :])
    cat = jnp.concatenate(shifted, axis=2)                               # (B, L, KD)
    cat = jnp.transpose(cat, (1, 0, 2))                                  # (L, B, KD)
    cat = jnp.pad(cat, ((0, 0), (0, Bp - B), (0, KDp - KD)))
    fused_cat = cat.reshape(LB, KDp).astype(jnp.bfloat16)

    fused_last = jnp.pad(fused[:, L - 1, :],
                         ((0, Bp - B), (0, Dp - D))).astype(jnp.bfloat16)  # (Bp, Dp)
    fin_b = jnp.pad(params['final_b'].astype(jnp.float32),
                    ((0, 0), (0, OUTP - out_dim)))                         # (1, OUTP)

    # ---- per-scale weight folding / padding (one-time, host-side, O(params)) ----
    names = ('w_comb', 'conv_b', 'w_z', 'w_delta', 'dt_b', 'w_b', 'w_c',
             'a_t', 'd', 'w_head')
    lists = {k: [] for k in names}
    for s_idx, K in enumerate(Ks):
        sp = params['scales'][s_idx]
        in_w = sp['in_w'].astype(jnp.float32)                            # (D, 2*Di)
        w_x, w_zz = in_w[:, :Di], in_w[:, Di:]
        conv_w = sp['conv_w'].astype(jnp.float32)                        # (K, Di)
        # fold conv taps into the x-branch of in_proj:
        #   w_comb[sh*D + d, c] = conv_w[K-1-sh, c] * w_x[d, c]   (sh = causal shift)
        w_comb = jnp.zeros((max_k, D, Di), jnp.float32)
        w_comb = w_comb.at[:K].set(conv_w[::-1][:, None, :] * w_x[None, :, :])
        w_comb = w_comb.reshape(KD, Di)
        lists['w_comb'].append(
            jnp.pad(w_comb, ((0, KDp - KD), (0, Dip - Di))).astype(jnp.bfloat16))
        lists['conv_b'].append(
            jnp.pad(sp['conv_b'].astype(jnp.float32), ((0, 0), (0, Dip - Di))))
        lists['w_z'].append(
            jnp.pad(w_zz, ((0, Dp - D), (0, Dip - Di))).astype(jnp.bfloat16))
        x_w = sp['x_w'].astype(jnp.float32)                              # (Di, R + 2N)
        w_delta = x_w[:, :R] @ sp['dt_w'].astype(jnp.float32)            # (Di, Di), f32
        lists['w_delta'].append(
            jnp.pad(w_delta, ((0, Dip - Di), (0, Dip - Di))))
        lists['dt_b'].append(
            jnp.pad(sp['dt_b'].astype(jnp.float32), ((0, 0), (0, Dip - Di))))
        lists['w_b'].append(
            jnp.pad(x_w[:, R:R + N], ((0, Dip - Di), (0, 0))).astype(jnp.bfloat16))
        lists['w_c'].append(
            jnp.pad(x_w[:, R + N:R + 2 * N],
                    ((0, Dip - Di), (0, 0))).astype(jnp.bfloat16))
        a_t = -jnp.exp(sp['a_log'].astype(jnp.float32)).T                # (N, Di)
        lists['a_t'].append(jnp.pad(a_t, ((0, 0), (0, Dip - Di))))
        lists['d'].append(
            jnp.pad(sp['d'].astype(jnp.float32), ((0, 0), (0, Dip - Di))))
        w_head = sp['out_w'].astype(jnp.float32) @ params['final_w'][
            s_idx * D:(s_idx + 1) * D, :].astype(jnp.float32)            # (Di, out_dim)
        lists['w_head'].append(
            jnp.pad(w_head, ((0, Dip - Di), (0, OUTP - out_dim))).astype(jnp.bfloat16))
    stacked = {k: jnp.stack(v, axis=0) for k, v in lists.items()}

    kernel = make_expert_kernel(S, L, Bp, Dip, N, OUTP)

    # Single invocation (no grid): all operands fit comfortably in VMEM, the two
    # scales are fused in one step, everything is loaded exactly once.
    out_pad = pl.pallas_call(
        kernel,
        out_shape=jax.ShapeDtypeStruct((Bp, OUTP), jnp.float32),
        compiler_params=pltpu.CompilerParams(
            vmem_limit_bytes=32 * 1024 * 1024),
    )(fused_cat, fused_last, fin_b, *(stacked[k] for k in names))

    pred = out_pad[:B, :out_dim].reshape(B, pred_len, C)
    if pred_len == 1:
        pred = jnp.squeeze(pred, axis=1)          # matches torch .squeeze(1)
    return pred


def init_params(key, D, Di, N, R, Ks, out_dim):
    params = {'scales': []}
    for K in Ks:
        key, k1, k2, k3, k4, k5, k6 = jax.random.split(key, 7)
        scale = {
            'in_w':  jax.random.normal(k1, (D, 2 * Di), jnp.float32)
                     * (1.0 / math.sqrt(D)),
            'conv_w': jax.random.normal(k2, (K, Di), jnp.float32)
                      * (1.0 / math.sqrt(K)),
            'conv_b': jax.random.normal(k3, (1, Di), jnp.float32) * 0.02,
            'x_w':   jax.random.normal(k4, (Di, R + 2 * N), jnp.float32)
                     * (1.0 / math.sqrt(Di)),
            'dt_w':  jax.random.normal(k5, (R, Di), jnp.float32)
                     * (1.0 / math.sqrt(R)),
            'dt_b':  jnp.full((1, Di), 0.5, jnp.float32),
            'a_log': jnp.tile(jnp.log(jnp.arange(1, N + 1,
                                                 dtype=jnp.float32))[None, :],
                              (Di, 1)),
            'd':     jnp.ones((1, Di), jnp.float32),
            'out_w': jax.random.normal(k6, (Di, D), jnp.float32)
                     * (1.0 / math.sqrt(Di)),
        }
        params['scales'].append(scale)
    key, kf1, kf2 = jax.random.split(key, 3)
    params['final_w'] = (jax.random.normal(kf1, (len(Ks) * D, out_dim),
                                           jnp.float32)
                         * (1.0 / math.sqrt(len(Ks) * D)))
    params['final_b'] = jax.random.normal(kf2, (1, out_dim), jnp.float32) * 0.02
    return params


if __name__ == "__main__":
    config = {
        'data': {'seq_len': 8, 'pred_len': 2},
        'model': {'expert_params': {'mamba_scales': [2, 3],
                                    'mamba_d_model': 32}},
    }
    seq_len = config['data']['seq_len']
    pred_len = config['data']['pred_len']
    scales = config['model']['expert_params']['mamba_scales']
    input_dim = 3
    batch = 2

    # derived dims (mirror the module's __init__)
    fft_feature_len = (seq_len // 2 + 1) * 2 * input_dim
    D = input_dim + fft_feature_len          # fused_input_dim (= Mamba d_model)
    Di = 2 * D                               # expand=2
    N = 16                                   # d_state
    R = math.ceil(D / 16)                    # dt_rank
    out_dim = input_dim * pred_len

    key = jax.random.PRNGKey(0)
    key, xk = jax.random.split(key)
    x = jax.random.normal(xk, (batch, seq_len, input_dim), jnp.float32)

    params = init_params(key, D, Di, N, R, tuple(scales), out_dim)

    out = fft_ms_mamba_expert(
        x, params, seq_len=seq_len, pred_len=pred_len,
        mamba_scales=scales, d_state=N)
    out = jax.block_until_ready(out)
    assert out.shape == (batch, pred_len, input_dim), out.shape
    print("KERNEL_OK")
</pallas_src>

<mosaic_0001>
module attributes {stable_mosaic.version = 11 : i64} {
  func.func @kernel(%arg0: memref<64x128xbf16, #tpu.memory_space<vmem>>, %arg1: memref<8x128xbf16, #tpu.memory_space<vmem>>, %arg2: memref<1x128xf32, #tpu.memory_space<vmem>>, %arg3: memref<2x128x128xbf16, #tpu.memory_space<vmem>>, %arg4: memref<2x1x128xf32, #tpu.memory_space<vmem>>, %arg5: memref<2x128x128xbf16, #tpu.memory_space<vmem>>, %arg6: memref<2x128x128xf32, #tpu.memory_space<vmem>>, %arg7: memref<2x1x128xf32, #tpu.memory_space<vmem>>, %arg8: memref<2x128x16xbf16, #tpu.memory_space<vmem>>, %arg9: memref<2x128x16xbf16, #tpu.memory_space<vmem>>, %arg10: memref<2x16x128xf32, #tpu.memory_space<vmem>>, %arg11: memref<2x1x128xf32, #tpu.memory_space<vmem>>, %arg12: memref<2x128x128xbf16, #tpu.memory_space<vmem>>, %arg13: memref<8x128xf32, #tpu.memory_space<vmem>>) attributes {dimension_semantics = [], scalar_prefetch = 0 : i64, scratch_operands = 0 : i64, tpu.core_type = #tpu.core_type<tc>} {
    %c0 = arith.constant 0 : index
    %c0_0 = arith.constant 0 : index
    %0 = vector.load %arg0[%c0, %c0_0] : memref<64x128xbf16, #tpu.memory_space<vmem>>, vector<64x128xbf16>
    %c0_1 = arith.constant 0 : index
    %c0_2 = arith.constant 0 : index
    %1 = vector.load %arg1[%c0_1, %c0_2] : memref<8x128xbf16, #tpu.memory_space<vmem>>, vector<8x128xbf16>
    %c0_3 = arith.constant 0 : index
    %c0_4 = arith.constant 0 : index
    %2 = vector.load %arg2[%c0_3, %c0_4] : memref<1x128xf32, #tpu.memory_space<vmem>>, vector<1x128xf32>
    %3 = vector.shape_cast %2 : vector<1x128xf32> to vector<1x128xf32>
    %4 = vector.broadcast %3 : vector<1x128xf32> to vector<8x128xf32>
    %c0_5 = arith.constant 0 : index
    %c0_6 = arith.constant 0 : index
    %c0_7 = arith.constant 0 : index
    %5 = vector.load %arg3[%c0_5, %c0_6, %c0_7] : memref<2x128x128xbf16, #tpu.memory_space<vmem>>, vector<1x128x128xbf16>
    %6 = vector.shape_cast %5 : vector<1x128x128xbf16> to vector<128x128xbf16>
    %c0_8 = arith.constant 0 : index
    %c0_9 = arith.constant 0 : index
    %c0_10 = arith.constant 0 : index
    %7 = vector.load %arg4[%c0_8, %c0_9, %c0_10] : memref<2x1x128xf32, #tpu.memory_space<vmem>>, vector<1x1x128xf32>
    %8 = vector.shape_cast %7 : vector<1x1x128xf32> to vector<1x128xf32>
    %c0_11 = arith.constant 0 : index
    %c0_12 = arith.constant 0 : index
    %c0_13 = arith.constant 0 : index
    %9 = vector.load %arg5[%c0_11, %c0_12, %c0_13] : memref<2x128x128xbf16, #tpu.memory_space<vmem>>, vector<1x128x128xbf16>
    %10 = vector.shape_cast %9 : vector<1x128x128xbf16> to vector<128x128xbf16>
    %c0_14 = arith.constant 0 : index
    %c0_15 = arith.constant 0 : index
    %c0_16 = arith.constant 0 : index
    %11 = vector.load %arg6[%c0_14, %c0_15, %c0_16] : memref<2x128x128xf32, #tpu.memory_space<vmem>>, vector<1x128x128xf32>
    %12 = vector.shape_cast %11 : vector<1x128x128xf32> to vector<128x128xf32>
    %c0_17 = arith.constant 0 : index
    %c0_18 = arith.constant 0 : index
    %c0_19 = arith.constant 0 : index
    %13 = vector.load %arg7[%c0_17, %c0_18, %c0_19] : memref<2x1x128xf32, #tpu.memory_space<vmem>>, vector<1x1x128xf32>
    %14 = vector.shape_cast %13 : vector<1x1x128xf32> to vector<1x128xf32>
    %c0_20 = arith.constant 0 : index
    %c0_21 = arith.constant 0 : index
    %c0_22 = arith.constant 0 : index
    %15 = vector.load %arg8[%c0_20, %c0_21, %c0_22] : memref<2x128x16xbf16, #tpu.memory_space<vmem>>, vector<1x128x16xbf16>
    %16 = vector.shape_cast %15 : vector<1x128x16xbf16> to vector<128x16xbf16>
    %c0_23 = arith.constant 0 : index
    %c0_24 = arith.constant 0 : index
    %c0_25 = arith.constant 0 : index
    %17 = vector.load %arg9[%c0_23, %c0_24, %c0_25] : memref<2x128x16xbf16, #tpu.memory_space<vmem>>, vector<1x128x16xbf16>
    %18 = vector.shape_cast %17 : vector<1x128x16xbf16> to vector<128x16xbf16>
    %c0_26 = arith.constant 0 : index
    %c0_27 = arith.constant 0 : index
    %c0_28 = arith.constant 0 : index
    %19 = vector.load %arg10[%c0_26, %c0_27, %c0_28] : memref<2x16x128xf32, #tpu.memory_space<vmem>>, vector<1x16x128xf32>
    %20 = vector.shape_cast %19 : vector<1x16x128xf32> to vector<16x128xf32>
    %c0_29 = arith.constant 0 : index
    %c0_30 = arith.constant 0 : index
    %c0_31 = arith.constant 0 : index
    %21 = vector.load %arg11[%c0_29, %c0_30, %c0_31] : memref<2x1x128xf32, #tpu.memory_space<vmem>>, vector<1x1x128xf32>
    %22 = vector.shape_cast %21 : vector<1x1x128xf32> to vector<1x128xf32>
    %c0_32 = arith.constant 0 : index
    %c0_33 = arith.constant 0 : index
    %c0_34 = arith.constant 0 : index
    %23 = vector.load %arg12[%c0_32, %c0_33, %c0_34] : memref<2x128x128xbf16, #tpu.memory_space<vmem>>, vector<1x128x128xbf16>
    %24 = vector.shape_cast %23 : vector<1x128x128xbf16> to vector<128x128xbf16>
    %cst = arith.constant dense<0.000000e+00> : vector<64x128xf32>
    %25 = tpu.matmul %0, %6, %cst {dimension_numbers = #tpu.dot_dimension_numbers<[1], [0], [0], [1], [0, 0, 1, 1], [], []>} : vector<64x128xbf16>, vector<128x128xbf16>, vector<64x128xf32> -> vector<64x128xf32>
    %26 = vector.broadcast %8 : vector<1x128xf32> to vector<64x128xf32>
    %27 = arith.addf %25, %26 : vector<64x128xf32>
    %cst_35 = arith.constant 0.000000e+00 : f32
    %28 = vector.broadcast %cst_35 : f32 to vector<64x128xf32>
    %29 = arith.subf %28, %27 : vector<64x128xf32>
    %30 = math.exp %29 : vector<64x128xf32>
    %cst_36 = arith.constant 1.000000e+00 : f32
    %31 = vector.broadcast %cst_36 : f32 to vector<64x128xf32>
    %32 = arith.addf %31, %30 : vector<64x128xf32>
    %cst_37 = arith.constant 1.000000e+00 : f32
    %33 = vector.broadcast %cst_37 : f32 to vector<64x128xf32>
    %34 = arith.divf %33, %32 : vector<64x128xf32>
    %35 = arith.mulf %27, %34 : vector<64x128xf32>
    %36 = arith.truncf %35 : vector<64x128xf32> to vector<64x128xbf16>
    %cst_38 = arith.constant dense<0.000000e+00> : vector<64x128xf32>
    %37 = tpu.matmul %35, %12, %cst_38 {dimension_numbers = #tpu.dot_dimension_numbers<[1], [0], [0], [1], [0, 0, 1, 1], [], []>} : vector<64x128xf32>, vector<128x128xf32>, vector<64x128xf32> -> vector<64x128xf32>
    %38 = vector.broadcast %14 : vector<1x128xf32> to vector<64x128xf32>
    %39 = arith.addf %37, %38 : vector<64x128xf32>
    %cst_39 = arith.constant 0.000000e+00 : f32
    %40 = vector.broadcast %cst_39 : f32 to vector<64x128xf32>
    %41 = arith.maximumf %39, %40 : vector<64x128xf32>
    %42 = math.absf %39 : vector<64x128xf32>
    %cst_40 = arith.constant 0.000000e+00 : f32
    %43 = vector.broadcast %cst_40 : f32 to vector<64x128xf32>
    %44 = arith.subf %43, %42 : vector<64x128xf32>
    %45 = math.exp %44 : vector<64x128xf32>
    %cst_41 = arith.constant 1.000000e+00 : f32
    %46 = vector.broadcast %cst_41 : f32 to vector<64x128xf32>
    %47 = arith.addf %46, %45 : vector<64x128xf32>
    %48 = math.log %47 : vector<64x128xf32>
    %49 = arith.addf %41, %48 : vector<64x128xf32>
    %cst_42 = arith.constant dense<0.000000e+00> : vector<64x16xf32>
    %50 = tpu.matmul %36, %16, %cst_42 {dimension_numbers = #tpu.dot_dimension_numbers<[1], [0], [0], [1], [0, 0, 1, 1], [], []>} : vector<64x128xbf16>, vector<128x16xbf16>, vector<64x16xf32> -> vector<64x16xf32>
    %51 = vector.extract_strided_slice %35 {offsets = [56, 0], sizes = [8, 128], strides = [1, 1]} : vector<64x128xf32> to vector<8x128xf32>
    %52 = arith.truncf %51 : vector<8x128xf32> to vector<8x128xbf16>
    %cst_43 = arith.constant dense<0.000000e+00> : vector<8x16xf32>
    %53 = tpu.matmul %52, %18, %cst_43 {dimension_numbers = #tpu.dot_dimension_numbers<[1], [0], [0], [1], [0, 0, 1, 1], [], []>} : vector<8x128xbf16>, vector<128x16xbf16>, vector<8x16xf32> -> vector<8x16xf32>
    %54 = tpu.concatenate %53, %53, %53, %53, %53, %53, %53, %53 in 0 : vector<8x16xf32>, vector<8x16xf32>, vector<8x16xf32>, vector<8x16xf32>, vector<8x16xf32>, vector<8x16xf32>, vector<8x16xf32>, vector<8x16xf32> -> vector<64x16xf32>
    %55 = arith.mulf %50, %54 : vector<64x16xf32>
    %cst_44 = arith.constant 0.000000e+00 : f32
    %56 = vector.broadcast %cst_44 : f32 to vector<8x128xf32>
    %57 = vector.extract_strided_slice %49 {offsets = [56, 0], sizes = [8, 128], strides = [1, 1]} : vector<64x128xf32> to vector<8x128xf32>
    %58 = arith.addf %56, %57 : vector<8x128xf32>
    %59 = vector.extract_strided_slice %49 {offsets = [48, 0], sizes = [8, 128], strides = [1, 1]} : vector<64x128xf32> to vector<8x128xf32>
    %60 = arith.addf %58, %59 : vector<8x128xf32>
    %61 = vector.extract_strided_slice %49 {offsets = [40, 0], sizes = [8, 128], strides = [1, 1]} : vector<64x128xf32> to vector<8x128xf32>
    %62 = arith.addf %60, %61 : vector<8x128xf32>
    %63 = vector.extract_strided_slice %49 {offsets = [32, 0], sizes = [8, 128], strides = [1, 1]} : vector<64x128xf32> to vector<8x128xf32>
    %64 = arith.addf %62, %63 : vector<8x128xf32>
    %65 = vector.extract_strided_slice %49 {offsets = [24, 0], sizes = [8, 128], strides = [1, 1]} : vector<64x128xf32> to vector<8x128xf32>
    %66 = arith.addf %64, %65 : vector<8x128xf32>
    %67 = vector.extract_strided_slice %49 {offsets = [16, 0], sizes = [8, 128], strides = [1, 1]} : vector<64x128xf32> to vector<8x128xf32>
    %68 = arith.addf %66, %67 : vector<8x128xf32>
    %69 = vector.extract_strided_slice %49 {offsets = [8, 0], sizes = [8, 128], strides = [1, 1]} : vector<64x128xf32> to vector<8x128xf32>
    %70 = arith.addf %68, %69 : vector<8x128xf32>
    %71 = tpu.concatenate %70, %68, %66, %64, %62, %60, %58, %56 in 0 : vector<8x128xf32>, vector<8x128xf32>, vector<8x128xf32>, vector<8x128xf32>, vector<8x128xf32>, vector<8x128xf32>, vector<8x128xf32>, vector<8x128xf32> -> vector<64x128xf32>
    %72 = vector.extract_strided_slice %20 {offsets = [0, 0], sizes = [1, 128], strides = [1, 1]} : vector<16x128xf32> to vector<1x128xf32>
    %73 = vector.broadcast %72 : vector<1x128xf32> to vector<64x128xf32>
    %74 = arith.mulf %71, %73 : vector<64x128xf32>
    %75 = vector.extract_strided_slice %20 {offsets = [1, 0], sizes = [1, 128], strides = [1, 1]} : vector<16x128xf32> to vector<1x128xf32>
    %76 = vector.broadcast %75 : vector<1x128xf32> to vector<64x128xf32>
    %77 = arith.mulf %71, %76 : vector<64x128xf32>
    %78 = vector.extract_strided_slice %20 {offsets = [2, 0], sizes = [1, 128], strides = [1, 1]} : vector<16x128xf32> to vector<1x128xf32>
    %79 = vector.broadcast %78 : vector<1x128xf32> to vector<64x128xf32>
    %80 = arith.mulf %71, %79 : vector<64x128xf32>
    %81 = vector.extract_strided_slice %20 {offsets = [3, 0], sizes = [1, 128], strides = [1, 1]} : vector<16x128xf32> to vector<1x128xf32>
    %82 = vector.broadcast %81 : vector<1x128xf32> to vector<64x128xf32>
    %83 = arith.mulf %71, %82 : vector<64x128xf32>
    %84 = vector.extract_strided_slice %20 {offsets = [4, 0], sizes = [1, 128], strides = [1, 1]} : vector<16x128xf32> to vector<1x128xf32>
    %85 = vector.broadcast %84 : vector<1x128xf32> to vector<64x128xf32>
    %86 = arith.mulf %71, %85 : vector<64x128xf32>
    %87 = vector.extract_strided_slice %20 {offsets = [5, 0], sizes = [1, 128], strides = [1, 1]} : vector<16x128xf32> to vector<1x128xf32>
    %88 = vector.broadcast %87 : vector<1x128xf32> to vector<64x128xf32>
    %89 = arith.mulf %71, %88 : vector<64x128xf32>
    %90 = vector.extract_strided_slice %20 {offsets = [6, 0], sizes = [1, 128], strides = [1, 1]} : vector<16x128xf32> to vector<1x128xf32>
    %91 = vector.broadcast %90 : vector<1x128xf32> to vector<64x128xf32>
    %92 = arith.mulf %71, %91 : vector<64x128xf32>
    %93 = vector.extract_strided_slice %20 {offsets = [7, 0], sizes = [1, 128], strides = [1, 1]} : vector<16x128xf32> to vector<1x128xf32>
    %94 = vector.broadcast %93 : vector<1x128xf32> to vector<64x128xf32>
    %95 = arith.mulf %71, %94 : vector<64x128xf32>
    %96 = vector.extract_strided_slice %20 {offsets = [8, 0], sizes = [1, 128], strides = [1, 1]} : vector<16x128xf32> to vector<1x128xf32>
    %97 = vector.broadcast %96 : vector<1x128xf32> to vector<64x128xf32>
    %98 = arith.mulf %71, %97 : vector<64x128xf32>
    %99 = vector.extract_strided_slice %20 {offsets = [9, 0], sizes = [1, 128], strides = [1, 1]} : vector<16x128xf32> to vector<1x128xf32>
    %100 = vector.broadcast %99 : vector<1x128xf32> to vector<64x128xf32>
    %101 = arith.mulf %71, %100 : vector<64x128xf32>
    %102 = vector.extract_strided_slice %20 {offsets = [10, 0], sizes = [1, 128], strides = [1, 1]} : vector<16x128xf32> to vector<1x128xf32>
    %103 = vector.broadcast %102 : vector<1x128xf32> to vector<64x128xf32>
    %104 = arith.mulf %71, %103 : vector<64x128xf32>
    %105 = vector.extract_strided_slice %20 {offsets = [11, 0], sizes = [1, 128], strides = [1, 1]} : vector<16x128xf32> to vector<1x128xf32>
    %106 = vector.broadcast %105 : vector<1x128xf32> to vector<64x128xf32>
    %107 = arith.mulf %71, %106 : vector<64x128xf32>
    %108 = vector.extract_strided_slice %20 {offsets = [12, 0], sizes = [1, 128], strides = [1, 1]} : vector<16x128xf32> to vector<1x128xf32>
    %109 = vector.broadcast %108 : vector<1x128xf32> to vector<64x128xf32>
    %110 = arith.mulf %71, %109 : vector<64x128xf32>
    %111 = vector.extract_strided_slice %20 {offsets = [13, 0], sizes = [1, 128], strides = [1, 1]} : vector<16x128xf32> to vector<1x128xf32>
    %112 = vector.broadcast %111 : vector<1x128xf32> to vector<64x128xf32>
    %113 = arith.mulf %71, %112 : vector<64x128xf32>
    %114 = vector.extract_strided_slice %20 {offsets = [14, 0], sizes = [1, 128], strides = [1, 1]} : vector<16x128xf32> to vector<1x128xf32>
    %115 = vector.broadcast %114 : vector<1x128xf32> to vector<64x128xf32>
    %116 = arith.mulf %71, %115 : vector<64x128xf32>
    %117 = vector.extract_strided_slice %20 {offsets = [15, 0], sizes = [1, 128], strides = [1, 1]} : vector<16x128xf32> to vector<1x128xf32>
    %118 = vector.broadcast %117 : vector<1x128xf32> to vector<64x128xf32>
    %119 = arith.mulf %71, %118 : vector<64x128xf32>
    %120 = tpu.concatenate %74, %77, %80, %83, %86, %89, %92, %95, %98, %101, %104, %107, %110, %113, %116, %119 in 0 : vector<64x128xf32>, vector<64x128xf32>, vector<64x128xf32>, vector<64x128xf32>, vector<64x128xf32>, vector<64x128xf32>, vector<64x128xf32>, vector<64x128xf32>, vector<64x128xf32>, vector<64x128xf32>, vector<64x128xf32>, vector<64x128xf32>, vector<64x128xf32>, vector<64x128xf32>, vector<64x128xf32>, vector<64x128xf32> -> vector<1024x128xf32>
    %121 = math.exp %120 : vector<1024x128xf32>
    %cst_45 = arith.constant 0.000000e+00 : f32
    %122 = vector.broadcast %cst_45 : f32 to vector<64x128xf32>
    %123 = vector.extract_strided_slice %121 {offsets = [0, 0], sizes = [64, 128], strides = [1, 1]} : vector<1024x128xf32> to vector<64x128xf32>
    %124 = vector.extract_strided_slice %55 {offsets = [0, 0], sizes = [64, 1], strides = [1, 1]} : vector<64x16xf32> to vector<64x1xf32>
    %125 = vector.broadcast %124 : vector<64x1xf32> to vector<64x128xf32>
    %126 = arith.mulf %123, %125 : vector<64x128xf32>
    %127 = arith.addf %122, %126 : vector<64x128xf32>
    %128 = vector.extract_strided_slice %121 {offsets = [64, 0], sizes = [64, 128], strides = [1, 1]} : vector<1024x128xf32> to vector<64x128xf32>
    %129 = vector.extract_strided_slice %55 {offsets = [0, 1], sizes = [64, 1], strides = [1, 1]} : vector<64x16xf32> to vector<64x1xf32>
    %130 = vector.broadcast %129 : vector<64x1xf32> to vector<64x128xf32>
    %131 = arith.mulf %128, %130 : vector<64x128xf32>
    %132 = arith.addf %127, %131 : vector<64x128xf32>
    %133 = vector.extract_strided_slice %121 {offsets = [128, 0], sizes = [64, 128], strides = [1, 1]} : vector<1024x128xf32> to vector<64x128xf32>
    %134 = vector.extract_strided_slice %55 {offsets = [0, 2], sizes = [64, 1], strides = [1, 1]} : vector<64x16xf32> to vector<64x1xf32>
    %135 = vector.broadcast %134 : vector<64x1xf32> to vector<64x128xf32>
    %136 = arith.mulf %133, %135 : vector<64x128xf32>
    %137 = arith.addf %132, %136 : vector<64x128xf32>
    %138 = vector.extract_strided_slice %121 {offsets = [192, 0], sizes = [64, 128], strides = [1, 1]} : vector<1024x128xf32> to vector<64x128xf32>
    %139 = vector.extract_strided_slice %55 {offsets = [0, 3], sizes = [64, 1], strides = [1, 1]} : vector<64x16xf32> to vector<64x1xf32>
    %140 = vector.broadcast %139 : vector<64x1xf32> to vector<64x128xf32>
    %141 = arith.mulf %138, %140 : vector<64x128xf32>
    %142 = arith.addf %137, %141 : vector<64x128xf32>
    %143 = vector.extract_strided_slice %121 {offsets = [256, 0], sizes = [64, 128], strides = [1, 1]} : vector<1024x128xf32> to vector<64x128xf32>
    %144 = vector.extract_strided_slice %55 {offsets = [0, 4], sizes = [64, 1], strides = [1, 1]} : vector<64x16xf32> to vector<64x1xf32>
    %145 = vector.broadcast %144 : vector<64x1xf32> to vector<64x128xf32>
    %146 = arith.mulf %143, %145 : vector<64x128xf32>
    %147 = arith.addf %142, %146 : vector<64x128xf32>
    %148 = vector.extract_strided_slice %121 {offsets = [320, 0], sizes = [64, 128], strides = [1, 1]} : vector<1024x128xf32> to vector<64x128xf32>
    %149 = vector.extract_strided_slice %55 {offsets = [0, 5], sizes = [64, 1], strides = [1, 1]} : vector<64x16xf32> to vector<64x1xf32>
    %150 = vector.broadcast %149 : vector<64x1xf32> to vector<64x128xf32>
    %151 = arith.mulf %148, %150 : vector<64x128xf32>
    %152 = arith.addf %147, %151 : vector<64x128xf32>
    %153 = vector.extract_strided_slice %121 {offsets = [384, 0], sizes = [64, 128], strides = [1, 1]} : vector<1024x128xf32> to vector<64x128xf32>
    %154 = vector.extract_strided_slice %55 {offsets = [0, 6], sizes = [64, 1], strides = [1, 1]} : vector<64x16xf32> to vector<64x1xf32>
    %155 = vector.broadcast %154 : vector<64x1xf32> to vector<64x128xf32>
    %156 = arith.mulf %153, %155 : vector<64x128xf32>
    %157 = arith.addf %152, %156 : vector<64x128xf32>
    %158 = vector.extract_strided_slice %121 {offsets = [448, 0], sizes = [64, 128], strides = [1, 1]} : vector<1024x128xf32> to vector<64x128xf32>
    %159 = vector.extract_strided_slice %55 {offsets = [0, 7], sizes = [64, 1], strides = [1, 1]} : vector<64x16xf32> to vector<64x1xf32>
    %160 = vector.broadcast %159 : vector<64x1xf32> to vector<64x128xf32>
    %161 = arith.mulf %158, %160 : vector<64x128xf32>
    %162 = arith.addf %157, %161 : vector<64x128xf32>
    %163 = vector.extract_strided_slice %121 {offsets = [512, 0], sizes = [64, 128], strides = [1, 1]} : vector<1024x128xf32> to vector<64x128xf32>
    %164 = vector.extract_strided_slice %55 {offsets = [0, 8], sizes = [64, 1], strides = [1, 1]} : vector<64x16xf32> to vector<64x1xf32>
    %165 = vector.broadcast %164 : vector<64x1xf32> to vector<64x128xf32>
    %166 = arith.mulf %163, %165 : vector<64x128xf32>
    %167 = arith.addf %162, %166 : vector<64x128xf32>
    %168 = vector.extract_strided_slice %121 {offsets = [576, 0], sizes = [64, 128], strides = [1, 1]} : vector<1024x128xf32> to vector<64x128xf32>
    %169 = vector.extract_strided_slice %55 {offsets = [0, 9], sizes = [64, 1], strides = [1, 1]} : vector<64x16xf32> to vector<64x1xf32>
    %170 = vector.broadcast %169 : vector<64x1xf32> to vector<64x128xf32>
    %171 = arith.mulf %168, %170 : vector<64x128xf32>
    %172 = arith.addf %167, %171 : vector<64x128xf32>
    %173 = vector.extract_strided_slice %121 {offsets = [640, 0], sizes = [64, 128], strides = [1, 1]} : vector<1024x128xf32> to vector<64x128xf32>
    %174 = vector.extract_strided_slice %55 {offsets = [0, 10], sizes = [64, 1], strides = [1, 1]} : vector<64x16xf32> to vector<64x1xf32>
    %175 = vector.broadcast %174 : vector<64x1xf32> to vector<64x128xf32>
    %176 = arith.mulf %173, %175 : vector<64x128xf32>
    %177 = arith.addf %172, %176 : vector<64x128xf32>
    %178 = vector.extract_strided_slice %121 {offsets = [704, 0], sizes = [64, 128], strides = [1, 1]} : vector<1024x128xf32> to vector<64x128xf32>
    %179 = vector.extract_strided_slice %55 {offsets = [0, 11], sizes = [64, 1], strides = [1, 1]} : vector<64x16xf32> to vector<64x1xf32>
    %180 = vector.broadcast %179 : vector<64x1xf32> to vector<64x128xf32>
    %181 = arith.mulf %178, %180 : vector<64x128xf32>
    %182 = arith.addf %177, %181 : vector<64x128xf32>
    %183 = vector.extract_strided_slice %121 {offsets = [768, 0], sizes = [64, 128], strides = [1, 1]} : vector<1024x128xf32> to vector<64x128xf32>
    %184 = vector.extract_strided_slice %55 {offsets = [0, 12], sizes = [64, 1], strides = [1, 1]} : vector<64x16xf32> to vector<64x1xf32>
    %185 = vector.broadcast %184 : vector<64x1xf32> to vector<64x128xf32>
    %186 = arith.mulf %183, %185 : vector<64x128xf32>
    %187 = arith.addf %182, %186 : vector<64x128xf32>
    %188 = vector.extract_strided_slice %121 {offsets = [832, 0], sizes = [64, 128], strides = [1, 1]} : vector<1024x128xf32> to vector<64x128xf32>
    %189 = vector.extract_strided_slice %55 {offsets = [0, 13], sizes = [64, 1], strides = [1, 1]} : vector<64x16xf32> to vector<64x1xf32>
    %190 = vector.broadcast %189 : vector<64x1xf32> to vector<64x128xf32>
    %191 = arith.mulf %188, %190 : vector<64x128xf32>
    %192 = arith.addf %187, %191 : vector<64x128xf32>
    %193 = vector.extract_strided_slice %121 {offsets = [896, 0], sizes = [64, 128], strides = [1, 1]} : vector<1024x128xf32> to vector<64x128xf32>
    %194 = vector.extract_strided_slice %55 {offsets = [0, 14], sizes = [64, 1], strides = [1, 1]} : vector<64x16xf32> to vector<64x1xf32>
    %195 = vector.broadcast %194 : vector<64x1xf32> to vector<64x128xf32>
    %196 = arith.mulf %193, %195 : vector<64x128xf32>
    %197 = arith.addf %192, %196 : vector<64x128xf32>
    %198 = vector.extract_strided_slice %121 {offsets = [960, 0], sizes = [64, 128], strides = [1, 1]} : vector<1024x128xf32> to vector<64x128xf32>
    %199 = vector.extract_strided_slice %55 {offsets = [0, 15], sizes = [64, 1], strides = [1, 1]} : vector<64x16xf32> to vector<64x1xf32>
    %200 = vector.broadcast %199 : vector<64x1xf32> to vector<64x128xf32>
    %201 = arith.mulf %198, %200 : vector<64x128xf32>
    %202 = arith.addf %197, %201 : vector<64x128xf32>
    %203 = arith.mulf %202, %49 : vector<64x128xf32>
    %204 = arith.mulf %203, %35 : vector<64x128xf32>
    %205 = vector.extract_strided_slice %204 {offsets = [56, 0], sizes = [8, 128], strides = [1, 1]} : vector<64x128xf32> to vector<8x128xf32>
    %206 = vector.extract_strided_slice %204 {offsets = [0, 0], sizes = [8, 128], strides = [1, 1]} : vector<64x128xf32> to vector<8x128xf32>
    %207 = arith.addf %205, %206 : vector<8x128xf32>
    %208 = vector.extract_strided_slice %204 {offsets = [8, 0], sizes = [8, 128], strides = [1, 1]} : vector<64x128xf32> to vector<8x128xf32>
    %209 = arith.addf %207, %208 : vector<8x128xf32>
    %210 = vector.extract_strided_slice %204 {offsets = [16, 0], sizes = [8, 128], strides = [1, 1]} : vector<64x128xf32> to vector<8x128xf32>
    %211 = arith.addf %209, %210 : vector<8x128xf32>
    %212 = vector.extract_strided_slice %204 {offsets = [24, 0], sizes = [8, 128], strides = [1, 1]} : vector<64x128xf32> to vector<8x128xf32>
    %213 = arith.addf %211, %212 : vector<8x128xf32>
    %214 = vector.extract_strided_slice %204 {offsets = [32, 0], sizes = [8, 128], strides = [1, 1]} : vector<64x128xf32> to vector<8x128xf32>
    %215 = arith.addf %213, %214 : vector<8x128xf32>
    %216 = vector.extract_strided_slice %204 {offsets = [40, 0], sizes = [8, 128], strides = [1, 1]} : vector<64x128xf32> to vector<8x128xf32>
    %217 = arith.addf %215, %216 : vector<8x128xf32>
    %218 = vector.extract_strided_slice %204 {offsets = [48, 0], sizes = [8, 128], strides = [1, 1]} : vector<64x128xf32> to vector<8x128xf32>
    %219 = arith.addf %217, %218 : vector<8x128xf32>
    %220 = vector.broadcast %22 : vector<1x128xf32> to vector<8x128xf32>
    %221 = arith.mulf %220, %51 : vector<8x128xf32>
    %222 = arith.addf %219, %221 : vector<8x128xf32>
    %cst_46 = arith.constant dense<0.000000e+00> : vector<8x128xf32>
    %223 = tpu.matmul %1, %10, %cst_46 {dimension_numbers = #tpu.dot_dimension_numbers<[1], [0], [0], [1], [0, 0, 1, 1], [], []>} : vector<8x128xbf16>, vector<128x128xbf16>, vector<8x128xf32> -> vector<8x128xf32>
    %cst_47 = arith.constant 0.000000e+00 : f32
    %224 = vector.broadcast %cst_47 : f32 to vector<8x128xf32>
    %225 = arith.subf %224, %223 : vector<8x128xf32>
    %226 = math.exp %225 : vector<8x128xf32>
    %cst_48 = arith.constant 1.000000e+00 : f32
    %227 = vector.broadcast %cst_48 : f32 to vector<8x128xf32>
    %228 = arith.addf %227, %226 : vector<8x128xf32>
    %cst_49 = arith.constant 1.000000e+00 : f32
    %229 = vector.broadcast %cst_49 : f32 to vector<8x128xf32>
    %230 = arith.divf %229, %228 : vector<8x128xf32>
    %231 = arith.mulf %223, %230 : vector<8x128xf32>
    %232 = arith.mulf %222, %231 : vector<8x128xf32>
    %233 = arith.truncf %232 : vector<8x128xf32> to vector<8x128xbf16>
    %cst_50 = arith.constant dense<0.000000e+00> : vector<8x128xf32>
    %234 = tpu.matmul %233, %24, %cst_50 {dimension_numbers = #tpu.dot_dimension_numbers<[1], [0], [0], [1], [0, 0, 1, 1], [], []>} : vector<8x128xbf16>, vector<128x128xbf16>, vector<8x128xf32> -> vector<8x128xf32>
    %235 = arith.addf %4, %234 : vector<8x128xf32>
    %c1 = arith.constant 1 : index
    %c0_51 = arith.constant 0 : index
    %c0_52 = arith.constant 0 : index
    %236 = vector.load %arg3[%c1, %c0_51, %c0_52] : memref<2x128x128xbf16, #tpu.memory_space<vmem>>, vector<1x128x128xbf16>
    %237 = vector.shape_cast %236 : vector<1x128x128xbf16> to vector<128x128xbf16>
    %c1_53 = arith.constant 1 : index
    %c0_54 = arith.constant 0 : index
    %c0_55 = arith.constant 0 : index
    %238 = vector.load %arg4[%c1_53, %c0_54, %c0_55] : memref<2x1x128xf32, #tpu.memory_space<vmem>>, vector<1x1x128xf32>
    %239 = vector.shape_cast %238 : vector<1x1x128xf32> to vector<1x128xf32>
    %c1_56 = arith.constant 1 : index
    %c0_57 = arith.constant 0 : index
    %c0_58 = arith.constant 0 : index
    %240 = vector.load %arg5[%c1_56, %c0_57, %c0_58] : memref<2x128x128xbf16, #tpu.memory_space<vmem>>, vector<1x128x128xbf16>
    %241 = vector.shape_cast %240 : vector<1x128x128xbf16> to vector<128x128xbf16>
    %c1_59 = arith.constant 1 : index
    %c0_60 = arith.constant 0 : index
    %c0_61 = arith.constant 0 : index
    %242 = vector.load %arg6[%c1_59, %c0_60, %c0_61] : memref<2x128x128xf32, #tpu.memory_space<vmem>>, vector<1x128x128xf32>
    %243 = vector.shape_cast %242 : vector<1x128x128xf32> to vector<128x128xf32>
    %c1_62 = arith.constant 1 : index
    %c0_63 = arith.constant 0 : index
    %c0_64 = arith.constant 0 : index
    %244 = vector.load %arg7[%c1_62, %c0_63, %c0_64] : memref<2x1x128xf32, #tpu.memory_space<vmem>>, vector<1x1x128xf32>
    %245 = vector.shape_cast %244 : vector<1x1x128xf32> to vector<1x128xf32>
    %c1_65 = arith.constant 1 : index
    %c0_66 = arith.constant 0 : index
    %c0_67 = arith.constant 0 : index
    %246 = vector.load %arg8[%c1_65, %c0_66, %c0_67] : memref<2x128x16xbf16, #tpu.memory_space<vmem>>, vector<1x128x16xbf16>
    %247 = vector.shape_cast %246 : vector<1x128x16xbf16> to vector<128x16xbf16>
    %c1_68 = arith.constant 1 : index
    %c0_69 = arith.constant 0 : index
    %c0_70 = arith.constant 0 : index
    %248 = vector.load %arg9[%c1_68, %c0_69, %c0_70] : memref<2x128x16xbf16, #tpu.memory_space<vmem>>, vector<1x128x16xbf16>
    %249 = vector.shape_cast %248 : vector<1x128x16xbf16> to vector<128x16xbf16>
    %c1_71 = arith.constant 1 : index
    %c0_72 = arith.constant 0 : index
    %c0_73 = arith.constant 0 : index
    %250 = vector.load %arg10[%c1_71, %c0_72, %c0_73] : memref<2x16x128xf32, #tpu.memory_space<vmem>>, vector<1x16x128xf32>
    %251 = vector.shape_cast %250 : vector<1x16x128xf32> to vector<16x128xf32>
    %c1_74 = arith.constant 1 : index
    %c0_75 = arith.constant 0 : index
    %c0_76 = arith.constant 0 : index
    %252 = vector.load %arg11[%c1_74, %c0_75, %c0_76] : memref<2x1x128xf32, #tpu.memory_space<vmem>>, vector<1x1x128xf32>
    %253 = vector.shape_cast %252 : vector<1x1x128xf32> to vector<1x128xf32>
    %c1_77 = arith.constant 1 : index
    %c0_78 = arith.constant 0 : index
    %c0_79 = arith.constant 0 : index
    %254 = vector.load %arg12[%c1_77, %c0_78, %c0_79] : memref<2x128x128xbf16, #tpu.memory_space<vmem>>, vector<1x128x128xbf16>
    %255 = vector.shape_cast %254 : vector<1x128x128xbf16> to vector<128x128xbf16>
    %cst_80 = arith.constant dense<0.000000e+00> : vector<64x128xf32>
    %256 = tpu.matmul %0, %237, %cst_80 {dimension_numbers = #tpu.dot_dimension_numbers<[1], [0], [0], [1], [0, 0, 1, 1], [], []>} : vector<64x128xbf16>, vector<128x128xbf16>, vector<64x128xf32> -> vector<64x128xf32>
    %257 = vector.broadcast %239 : vector<1x128xf32> to vector<64x128xf32>
    %258 = arith.addf %256, %257 : vector<64x128xf32>
    %cst_81 = arith.constant 0.000000e+00 : f32
    %259 = vector.broadcast %cst_81 : f32 to vector<64x128xf32>
    %260 = arith.subf %259, %258 : vector<64x128xf32>
    %261 = math.exp %260 : vector<64x128xf32>
    %cst_82 = arith.constant 1.000000e+00 : f32
    %262 = vector.broadcast %cst_82 : f32 to vector<64x128xf32>
    %263 = arith.addf %262, %261 : vector<64x128xf32>
    %cst_83 = arith.constant 1.000000e+00 : f32
    %264 = vector.broadcast %cst_83 : f32 to vector<64x128xf32>
    %265 = arith.divf %264, %263 : vector<64x128xf32>
    %266 = arith.mulf %258, %265 : vector<64x128xf32>
    %267 = arith.truncf %266 : vector<64x128xf32> to vector<64x128xbf16>
    %cst_84 = arith.constant dense<0.000000e+00> : vector<64x128xf32>
    %268 = tpu.matmul %266, %243, %cst_84 {dimension_numbers = #tpu.dot_dimension_numbers<[1], [0], [0], [1], [0, 0, 1, 1], [], []>} : vector<64x128xf32>, vector<128x128xf32>, vector<64x128xf32> -> vector<64x128xf32>
    %269 = vector.broadcast %245 : vector<1x128xf32> to vector<64x128xf32>
    %270 = arith.addf %268, %269 : vector<64x128xf32>
    %cst_85 = arith.constant 0.000000e+00 : f32
    %271 = vector.broadcast %cst_85 : f32 to vector<64x128xf32>
    %272 = arith.maximumf %270, %271 : vector<64x128xf32>
    %273 = math.absf %270 : vector<64x128xf32>
    %cst_86 = arith.constant 0.000000e+00 : f32
    %274 = vector.broadcast %cst_86 : f32 to vector<64x128xf32>
    %275 = arith.subf %274, %273 : vector<64x128xf32>
    %276 = math.exp %275 : vector<64x128xf32>
    %cst_87 = arith.constant 1.000000e+00 : f32
    %277 = vector.broadcast %cst_87 : f32 to vector<64x128xf32>
    %278 = arith.addf %277, %276 : vector<64x128xf32>
    %279 = math.log %278 : vector<64x128xf32>
    %280 = arith.addf %272, %279 : vector<64x128xf32>
    %cst_88 = arith.constant dense<0.000000e+00> : vector<64x16xf32>
    %281 = tpu.matmul %267, %247, %cst_88 {dimension_numbers = #tpu.dot_dimension_numbers<[1], [0], [0], [1], [0, 0, 1, 1], [], []>} : vector<64x128xbf16>, vector<128x16xbf16>, vector<64x16xf32> -> vector<64x16xf32>
    %282 = vector.extract_strided_slice %266 {offsets = [56, 0], sizes = [8, 128], strides = [1, 1]} : vector<64x128xf32> to vector<8x128xf32>
    %283 = arith.truncf %282 : vector<8x128xf32> to vector<8x128xbf16>
    %cst_89 = arith.constant dense<0.000000e+00> : vector<8x16xf32>
    %284 = tpu.matmul %283, %249, %cst_89 {dimension_numbers = #tpu.dot_dimension_numbers<[1], [0], [0], [1], [0, 0, 1, 1], [], []>} : vector<8x128xbf16>, vector<128x16xbf16>, vector<8x16xf32> -> vector<8x16xf32>
    %285 = tpu.concatenate %284, %284, %284, %284, %284, %284, %284, %284 in 0 : vector<8x16xf32>, vector<8x16xf32>, vector<8x16xf32>, vector<8x16xf32>, vector<8x16xf32>, vector<8x16xf32>, vector<8x16xf32>, vector<8x16xf32> -> vector<64x16xf32>
    %286 = arith.mulf %281, %285 : vector<64x16xf32>
    %cst_90 = arith.constant 0.000000e+00 : f32
    %287 = vector.broadcast %cst_90 : f32 to vector<8x128xf32>
    %288 = vector.extract_strided_slice %280 {offsets = [56, 0], sizes = [8, 128], strides = [1, 1]} : vector<64x128xf32> to vector<8x128xf32>
    %289 = arith.addf %287, %288 : vector<8x128xf32>
    %290 = vector.extract_strided_slice %280 {offsets = [48, 0], sizes = [8, 128], strides = [1, 1]} : vector<64x128xf32> to vector<8x128xf32>
    %291 = arith.addf %289, %290 : vector<8x128xf32>
    %292 = vector.extract_strided_slice %280 {offsets = [40, 0], sizes = [8, 128], strides = [1, 1]} : vector<64x128xf32> to vector<8x128xf32>
    %293 = arith.addf %291, %292 : vector<8x128xf32>
    %294 = vector.extract_strided_slice %280 {offsets = [32, 0], sizes = [8, 128], strides = [1, 1]} : vector<64x128xf32> to vector<8x128xf32>
    %295 = arith.addf %293, %294 : vector<8x128xf32>
    %296 = vector.extract_strided_slice %280 {offsets = [24, 0], sizes = [8, 128], strides = [1, 1]} : vector<64x128xf32> to vector<8x128xf32>
    %297 = arith.addf %295, %296 : vector<8x128xf32>
    %298 = vector.extract_strided_slice %280 {offsets = [16, 0], sizes = [8, 128], strides = [1, 1]} : vector<64x128xf32> to vector<8x128xf32>
    %299 = arith.addf %297, %298 : vector<8x128xf32>
    %300 = vector.extract_strided_slice %280 {offsets = [8, 0], sizes = [8, 128], strides = [1, 1]} : vector<64x128xf32> to vector<8x128xf32>
    %301 = arith.addf %299, %300 : vector<8x128xf32>
    %302 = tpu.concatenate %301, %299, %297, %295, %293, %291, %289, %287 in 0 : vector<8x128xf32>, vector<8x128xf32>, vector<8x128xf32>, vector<8x128xf32>, vector<8x128xf32>, vector<8x128xf32>, vector<8x128xf32>, vector<8x128xf32> -> vector<64x128xf32>
    %303 = vector.extract_strided_slice %251 {offsets = [0, 0], sizes = [1, 128], strides = [1, 1]} : vector<16x128xf32> to vector<1x128xf32>
    %304 = vector.broadcast %303 : vector<1x128xf32> to vector<64x128xf32>
    %305 = arith.mulf %302, %304 : vector<64x128xf32>
    %306 = vector.extract_strided_slice %251 {offsets = [1, 0], sizes = [1, 128], strides = [1, 1]} : vector<16x128xf32> to vector<1x128xf32>
    %307 = vector.broadcast %306 : vector<1x128xf32> to vector<64x128xf32>
    %308 = arith.mulf %302, %307 : vector<64x128xf32>
    %309 = vector.extract_strided_slice %251 {offsets = [2, 0], sizes = [1, 128], strides = [1, 1]} : vector<16x128xf32> to vector<1x128xf32>
    %310 = vector.broadcast %309 : vector<1x128xf32> to vector<64x128xf32>
    %311 = arith.mulf %302, %310 : vector<64x128xf32>
    %312 = vector.extract_strided_slice %251 {offsets = [3, 0], sizes = [1, 128], strides = [1, 1]} : vector<16x128xf32> to vector<1x128xf32>
    %313 = vector.broadcast %312 : vector<1x128xf32> to vector<64x128xf32>
    %314 = arith.mulf %302, %313 : vector<64x128xf32>
    %315 = vector.extract_strided_slice %251 {offsets = [4, 0], sizes = [1, 128], strides = [1, 1]} : vector<16x128xf32> to vector<1x128xf32>
    %316 = vector.broadcast %315 : vector<1x128xf32> to vector<64x128xf32>
    %317 = arith.mulf %302, %316 : vector<64x128xf32>
    %318 = vector.extract_strided_slice %251 {offsets = [5, 0], sizes = [1, 128], strides = [1, 1]} : vector<16x128xf32> to vector<1x128xf32>
    %319 = vector.broadcast %318 : vector<1x128xf32> to vector<64x128xf32>
    %320 = arith.mulf %302, %319 : vector<64x128xf32>
    %321 = vector.extract_strided_slice %251 {offsets = [6, 0], sizes = [1, 128], strides = [1, 1]} : vector<16x128xf32> to vector<1x128xf32>
    %322 = vector.broadcast %321 : vector<1x128xf32> to vector<64x128xf32>
    %323 = arith.mulf %302, %322 : vector<64x128xf32>
    %324 = vector.extract_strided_slice %251 {offsets = [7, 0], sizes = [1, 128], strides = [1, 1]} : vector<16x128xf32> to vector<1x128xf32>
    %325 = vector.broadcast %324 : vector<1x128xf32> to vector<64x128xf32>
    %326 = arith.mulf %302, %325 : vector<64x128xf32>
    %327 = vector.extract_strided_slice %251 {offsets = [8, 0], sizes = [1, 128], strides = [1, 1]} : vector<16x128xf32> to vector<1x128xf32>
    %328 = vector.broadcast %327 : vector<1x128xf32> to vector<64x128xf32>
    %329 = arith.mulf %302, %328 : vector<64x128xf32>
    %330 = vector.extract_strided_slice %251 {offsets = [9, 0], sizes = [1, 128], strides = [1, 1]} : vector<16x128xf32> to vector<1x128xf32>
    %331 = vector.broadcast %330 : vector<1x128xf32> to vector<64x128xf32>
    %332 = arith.mulf %302, %331 : vector<64x128xf32>
    %333 = vector.extract_strided_slice %251 {offsets = [10, 0], sizes = [1, 128], strides = [1, 1]} : vector<16x128xf32> to vector<1x128xf32>
    %334 = vector.broadcast %333 : vector<1x128xf32> to vector<64x128xf32>
    %335 = arith.mulf %302, %334 : vector<64x128xf32>
    %336 = vector.extract_strided_slice %251 {offsets = [11, 0], sizes = [1, 128], strides = [1, 1]} : vector<16x128xf32> to vector<1x128xf32>
    %337 = vector.broadcast %336 : vector<1x128xf32> to vector<64x128xf32>
    %338 = arith.mulf %302, %337 : vector<64x128xf32>
    %339 = vector.extract_strided_slice %251 {offsets = [12, 0], sizes = [1, 128], strides = [1, 1]} : vector<16x128xf32> to vector<1x128xf32>
    %340 = vector.broadcast %339 : vector<1x128xf32> to vector<64x128xf32>
    %341 = arith.mulf %302, %340 : vector<64x128xf32>
    %342 = vector.extract_strided_slice %251 {offsets = [13, 0], sizes = [1, 128], strides = [1, 1]} : vector<16x128xf32> to vector<1x128xf32>
    %343 = vector.broadcast %342 : vector<1x128xf32> to vector<64x128xf32>
    %344 = arith.mulf %302, %343 : vector<64x128xf32>
    %345 = vector.extract_strided_slice %251 {offsets = [14, 0], sizes = [1, 128], strides = [1, 1]} : vector<16x128xf32> to vector<1x128xf32>
    %346 = vector.broadcast %345 : vector<1x128xf32> to vector<64x128xf32>
    %347 = arith.mulf %302, %346 : vector<64x128xf32>
    %348 = vector.extract_strided_slice %251 {offsets = [15, 0], sizes = [1, 128], strides = [1, 1]} : vector<16x128xf32> to vector<1x128xf32>
    %349 = vector.broadcast %348 : vector<1x128xf32> to vector<64x128xf32>
    %350 = arith.mulf %302, %349 : vector<64x128xf32>
    %351 = tpu.concatenate %305, %308, %311, %314, %317, %320, %323, %326, %329, %332, %335, %338, %341, %344, %347, %350 in 0 : vector<64x128xf32>, vector<64x128xf32>, vector<64x128xf32>, vector<64x128xf32>, vector<64x128xf32>, vector<64x128xf32>, vector<64x128xf32>, vector<64x128xf32>, vector<64x128xf32>, vector<64x128xf32>, vector<64x128xf32>, vector<64x128xf32>, vector<64x128xf32>, vector<64x128xf32>, vector<64x128xf32>, vector<64x128xf32> -> vector<1024x128xf32>
    %352 = math.exp %351 : vector<1024x128xf32>
    %cst_91 = arith.constant 0.000000e+00 : f32
    %353 = vector.broadcast %cst_91 : f32 to vector<64x128xf32>
    %354 = vector.extract_strided_slice %352 {offsets = [0, 0], sizes = [64, 128], strides = [1, 1]} : vector<1024x128xf32> to vector<64x128xf32>
    %355 = vector.extract_strided_slice %286 {offsets = [0, 0], sizes = [64, 1], strides = [1, 1]} : vector<64x16xf32> to vector<64x1xf32>
    %356 = vector.broadcast %355 : vector<64x1xf32> to vector<64x128xf32>
    %357 = arith.mulf %354, %356 : vector<64x128xf32>
    %358 = arith.addf %353, %357 : vector<64x128xf32>
    %359 = vector.extract_strided_slice %352 {offsets = [64, 0], sizes = [64, 128], strides = [1, 1]} : vector<1024x128xf32> to vector<64x128xf32>
    %360 = vector.extract_strided_slice %286 {offsets = [0, 1], sizes = [64, 1], strides = [1, 1]} : vector<64x16xf32> to vector<64x1xf32>
    %361 = vector.broadcast %360 : vector<64x1xf32> to vector<64x128xf32>
    %362 = arith.mulf %359, %361 : vector<64x128xf32>
    %363 = arith.addf %358, %362 : vector<64x128xf32>
    %364 = vector.extract_strided_slice %352 {offsets = [128, 0], sizes = [64, 128], strides = [1, 1]} : vector<1024x128xf32> to vector<64x128xf32>
    %365 = vector.extract_strided_slice %286 {offsets = [0, 2], sizes = [64, 1], strides = [1, 1]} : vector<64x16xf32> to vector<64x1xf32>
    %366 = vector.broadcast %365 : vector<64x1xf32> to vector<64x128xf32>
    %367 = arith.mulf %364, %366 : vector<64x128xf32>
    %368 = arith.addf %363, %367 : vector<64x128xf32>
    %369 = vector.extract_strided_slice %352 {offsets = [192, 0], sizes = [64, 128], strides = [1, 1]} : vector<1024x128xf32> to vector<64x128xf32>
    %370 = vector.extract_strided_slice %286 {offsets = [0, 3], sizes = [64, 1], strides = [1, 1]} : vector<64x16xf32> to vector<64x1xf32>
    %371 = vector.broadcast %370 : vector<64x1xf32> to vector<64x128xf32>
    %372 = arith.mulf %369, %371 : vector<64x128xf32>
    %373 = arith.addf %368, %372 : vector<64x128xf32>
    %374 = vector.extract_strided_slice %352 {offsets = [256, 0], sizes = [64, 128], strides = [1, 1]} : vector<1024x128xf32> to vector<64x128xf32>
    %375 = vector.extract_strided_slice %286 {offsets = [0, 4], sizes = [64, 1], strides = [1, 1]} : vector<64x16xf32> to vector<64x1xf32>
    %376 = vector.broadcast %375 : vector<64x1xf32> to vector<64x128xf32>
    %377 = arith.mulf %374, %376 : vector<64x128xf32>
    %378 = arith.addf %373, %377 : vector<64x128xf32>
    %379 = vector.extract_strided_slice %352 {offsets = [320, 0], sizes = [64, 128], strides = [1, 1]} : vector<1024x128xf32> to vector<64x128xf32>
    %380 = vector.extract_strided_slice %286 {offsets = [0, 5], sizes = [64, 1], strides = [1, 1]} : vector<64x16xf32> to vector<64x1xf32>
    %381 = vector.broadcast %380 : vector<64x1xf32> to vector<64x128xf32>
    %382 = arith.mulf %379, %381 : vector<64x128xf32>
    %383 = arith.addf %378, %382 : vector<64x128xf32>
    %384 = vector.extract_strided_slice %352 {offsets = [384, 0], sizes = [64, 128], strides = [1, 1]} : vector<1024x128xf32> to vector<64x128xf32>
    %385 = vector.extract_strided_slice %286 {offsets = [0, 6], sizes = [64, 1], strides = [1, 1]} : vector<64x16xf32> to vector<64x1xf32>
    %386 = vector.broadcast %385 : vector<64x1xf32> to vector<64x128xf32>
    %387 = arith.mulf %384, %386 : vector<64x128xf32>
    %388 = arith.addf %383, %387 : vector<64x128xf32>
    %389 = vector.extract_strided_slice %352 {offsets = [448, 0], sizes = [64, 128], strides = [1, 1]} : vector<1024x128xf32> to vector<64x128xf32>
    %390 = vector.extract_strided_slice %286 {offsets = [0, 7], sizes = [64, 1], strides = [1, 1]} : vector<64x16xf32> to vector<64x1xf32>
    %391 = vector.broadcast %390 : vector<64x1xf32> to vector<64x128xf32>
    %392 = arith.mulf %389, %391 : vector<64x128xf32>
    %393 = arith.addf %388, %392 : vector<64x128xf32>
    %394 = vector.extract_strided_slice %352 {offsets = [512, 0], sizes = [64, 128], strides = [1, 1]} : vector<1024x128xf32> to vector<64x128xf32>
    %395 = vector.extract_strided_slice %286 {offsets = [0, 8], sizes = [64, 1], strides = [1, 1]} : vector<64x16xf32> to vector<64x1xf32>
    %396 = vector.broadcast %395 : vector<64x1xf32> to vector<64x128xf32>
    %397 = arith.mulf %394, %396 : vector<64x128xf32>
    %398 = arith.addf %393, %397 : vector<64x128xf32>
    %399 = vector.extract_strided_slice %352 {offsets = [576, 0], sizes = [64, 128], strides = [1, 1]} : vector<1024x128xf32> to vector<64x128xf32>
    %400 = vector.extract_strided_slice %286 {offsets = [0, 9], sizes = [64, 1], strides = [1, 1]} : vector<64x16xf32> to vector<64x1xf32>
    %401 = vector.broadcast %400 : vector<64x1xf32> to vector<64x128xf32>
    %402 = arith.mulf %399, %401 : vector<64x128xf32>
    %403 = arith.addf %398, %402 : vector<64x128xf32>
    %404 = vector.extract_strided_slice %352 {offsets = [640, 0], sizes = [64, 128], strides = [1, 1]} : vector<1024x128xf32> to vector<64x128xf32>
    %405 = vector.extract_strided_slice %286 {offsets = [0, 10], sizes = [64, 1], strides = [1, 1]} : vector<64x16xf32> to vector<64x1xf32>
    %406 = vector.broadcast %405 : vector<64x1xf32> to vector<64x128xf32>
    %407 = arith.mulf %404, %406 : vector<64x128xf32>
    %408 = arith.addf %403, %407 : vector<64x128xf32>
    %409 = vector.extract_strided_slice %352 {offsets = [704, 0], sizes = [64, 128], strides = [1, 1]} : vector<1024x128xf32> to vector<64x128xf32>
    %410 = vector.extract_strided_slice %286 {offsets = [0, 11], sizes = [64, 1], strides = [1, 1]} : vector<64x16xf32> to vector<64x1xf32>
    %411 = vector.broadcast %410 : vector<64x1xf32> to vector<64x128xf32>
    %412 = arith.mulf %409, %411 : vector<64x128xf32>
    %413 = arith.addf %408, %412 : vector<64x128xf32>
    %414 = vector.extract_strided_slice %352 {offsets = [768, 0], sizes = [64, 128], strides = [1, 1]} : vector<1024x128xf32> to vector<64x128xf32>
    %415 = vector.extract_strided_slice %286 {offsets = [0, 12], sizes = [64, 1], strides = [1, 1]} : vector<64x16xf32> to vector<64x1xf32>
    %416 = vector.broadcast %415 : vector<64x1xf32> to vector<64x128xf32>
    %417 = arith.mulf %414, %416 : vector<64x128xf32>
    %418 = arith.addf %413, %417 : vector<64x128xf32>
    %419 = vector.extract_strided_slice %352 {offsets = [832, 0], sizes = [64, 128], strides = [1, 1]} : vector<1024x128xf32> to vector<64x128xf32>
    %420 = vector.extract_strided_slice %286 {offsets = [0, 13], sizes = [64, 1], strides = [1, 1]} : vector<64x16xf32> to vector<64x1xf32>
    %421 = vector.broadcast %420 : vector<64x1xf32> to vector<64x128xf32>
    %422 = arith.mulf %419, %421 : vector<64x128xf32>
    %423 = arith.addf %418, %422 : vector<64x128xf32>
    %424 = vector.extract_strided_slice %352 {offsets = [896, 0], sizes = [64, 128], strides = [1, 1]} : vector<1024x128xf32> to vector<64x128xf32>
    %425 = vector.extract_strided_slice %286 {offsets = [0, 14], sizes = [64, 1], strides = [1, 1]} : vector<64x16xf32> to vector<64x1xf32>
    %426 = vector.broadcast %425 : vector<64x1xf32> to vector<64x128xf32>
    %427 = arith.mulf %424, %426 : vector<64x128xf32>
    %428 = arith.addf %423, %427 : vector<64x128xf32>
    %429 = vector.extract_strided_slice %352 {offsets = [960, 0], sizes = [64, 128], strides = [1, 1]} : vector<1024x128xf32> to vector<64x128xf32>
    %430 = vector.extract_strided_slice %286 {offsets = [0, 15], sizes = [64, 1], strides = [1, 1]} : vector<64x16xf32> to vector<64x1xf32>
    %431 = vector.broadcast %430 : vector<64x1xf32> to vector<64x128xf32>
    %432 = arith.mulf %429, %431 : vector<64x128xf32>
    %433 = arith.addf %428, %432 : vector<64x128xf32>
    %434 = arith.mulf %433, %280 : vector<64x128xf32>
    %435 = arith.mulf %434, %266 : vector<64x128xf32>
    %436 = vector.extract_strided_slice %435 {offsets = [56, 0], sizes = [8, 128], strides = [1, 1]} : vector<64x128xf32> to vector<8x128xf32>
    %437 = vector.extract_strided_slice %435 {offsets = [0, 0], sizes = [8, 128], strides = [1, 1]} : vector<64x128xf32> to vector<8x128xf32>
    %438 = arith.addf %436, %437 : vector<8x128xf32>
    %439 = vector.extract_strided_slice %435 {offsets = [8, 0], sizes = [8, 128], strides = [1, 1]} : vector<64x128xf32> to vector<8x128xf32>
    %440 = arith.addf %438, %439 : vector<8x128xf32>
    %441 = vector.extract_strided_slice %435 {offsets = [16, 0], sizes = [8, 128], strides = [1, 1]} : vector<64x128xf32> to vector<8x128xf32>
    %442 = arith.addf %440, %441 : vector<8x128xf32>
    %443 = vector.extract_strided_slice %435 {offsets = [24, 0], sizes = [8, 128], strides = [1, 1]} : vector<64x128xf32> to vector<8x128xf32>
    %444 = arith.addf %442, %443 : vector<8x128xf32>
    %445 = vector.extract_strided_slice %435 {offsets = [32, 0], sizes = [8, 128], strides = [1, 1]} : vector<64x128xf32> to vector<8x128xf32>
    %446 = arith.addf %444, %445 : vector<8x128xf32>
    %447 = vector.extract_strided_slice %435 {offsets = [40, 0], sizes = [8, 128], strides = [1, 1]} : vector<64x128xf32> to vector<8x128xf32>
    %448 = arith.addf %446, %447 : vector<8x128xf32>
    %449 = vector.extract_strided_slice %435 {offsets = [48, 0], sizes = [8, 128], strides = [1, 1]} : vector<64x128xf32> to vector<8x128xf32>
    %450 = arith.addf %448, %449 : vector<8x128xf32>
    %451 = vector.broadcast %253 : vector<1x128xf32> to vector<8x128xf32>
    %452 = arith.mulf %451, %282 : vector<8x128xf32>
    %453 = arith.addf %450, %452 : vector<8x128xf32>
    %cst_92 = arith.constant dense<0.000000e+00> : vector<8x128xf32>
    %454 = tpu.matmul %1, %241, %cst_92 {dimension_numbers = #tpu.dot_dimension_numbers<[1], [0], [0], [1], [0, 0, 1, 1], [], []>} : vector<8x128xbf16>, vector<128x128xbf16>, vector<8x128xf32> -> vector<8x128xf32>
    %cst_93 = arith.constant 0.000000e+00 : f32
    %455 = vector.broadcast %cst_93 : f32 to vector<8x128xf32>
    %456 = arith.subf %455, %454 : vector<8x128xf32>
    %457 = math.exp %456 : vector<8x128xf32>
    %cst_94 = arith.constant 1.000000e+00 : f32
    %458 = vector.broadcast %cst_94 : f32 to vector<8x128xf32>
    %459 = arith.addf %458, %457 : vector<8x128xf32>
    %cst_95 = arith.constant 1.000000e+00 : f32
    %460 = vector.broadcast %cst_95 : f32 to vector<8x128xf32>
    %461 = arith.divf %460, %459 : vector<8x128xf32>
    %462 = arith.mulf %454, %461 : vector<8x128xf32>
    %463 = arith.mulf %453, %462 : vector<8x128xf32>
    %464 = arith.truncf %463 : vector<8x128xf32> to vector<8x128xbf16>
    %cst_96 = arith.constant dense<0.000000e+00> : vector<8x128xf32>
    %465 = tpu.matmul %464, %255, %cst_96 {dimension_numbers = #tpu.dot_dimension_numbers<[1], [0], [0], [1], [0, 0, 1, 1], [], []>} : vector<8x128xbf16>, vector<128x128xbf16>, vector<8x128xf32> -> vector<8x128xf32>
    %466 = arith.addf %235, %465 : vector<8x128xf32>
    %c0_97 = arith.constant 0 : index
    %c0_98 = arith.constant 0 : index
    %467 = vector.load %arg13[%c0_97, %c0_98] : memref<8x128xf32, #tpu.memory_space<vmem>>, vector<8x128xf32>
    tpu.vector_store %arg13[%c0_97, %c0_98], %466 {strides = array<i32>} : memref<8x128xf32, #tpu.memory_space<vmem>>, vector<8x128xf32>,
    return
  }
}

</mosaic_0001>

<bundles_post_ra>
// kernel: tpu_custom_call.1
= control target key start
LH: loop header
LB: loop body
LE: loop exit
PB: predicated region body
PF: predicated region fallthrough
CT: control target
= control target key end

     0   :  { %18 = vsyncpa [#allocation3], 0  ;;  %s8095_s0 = inlined_call_operand.hbm [shape: bf16[64,128], index: 0, kind: input, shape index: {}]   ;;  %s8096_s1 = inlined_call_operand.vmem [shape: bf16[8,128], index: 1, kind: input, shape index: {}]   ;;  %s8097_s2 = inlined_call_operand.vmem [shape: f32[1,128], index: 2, kind: input, shape index: {}]   ;;  %s8098_s3 = inlined_call_operand.hbm [shape: bf16[2,128,128], index: 3, kind: input, shape index: {}]   ;;  %s8099_s4 = inlined_call_operand.vmem [shape: f32[2,1,128], index: 4, kind: input, shape index: {}]   ;;  %s8100_s5 = inlined_call_operand.hbm [shape: bf16[2,128,128], index: 5, kind: input, shape index: {}]   ;;  %s8101_s6 = inlined_call_operand.vmem [shape: f32[2,128,128], index: 6, kind: input, shape index: {}]   ;;  %s8102_s7 = inlined_call_operand.vmem [shape: f32[2,1,128], index: 7, kind: input, shape index: {}]   ;;  %s8103_s8 = inlined_call_operand.vmem [shape: bf16[2,128,16], index: 8, kind: input, shape index: {}]   ;;  %s8104_s9 = inlined_call_operand.vmem [shape: bf16[2,128,16], index: 9, kind: input, shape index: {}]   ;;  %s8105_s10 = inlined_call_operand.hbm [shape: f32[2,16,128], index: 10, kind: input, shape index: {}]   ;;  %s8106_s11 = inlined_call_operand.vmem [shape: f32[2,1,128], index: 11, kind: input, shape index: {}]   ;;  %s8107_s12 = inlined_call_operand.hbm [shape: bf16[2,128,128], index: 12, kind: input, shape index: {}]   ;;  %s8108_s13 = inlined_call_operand.hbm [shape: f32[8,128], index: 13, kind: output, shape index: {}]  }
   0x1   :  { %19 = vsyncpa [#allocation6], 0 }
   0x2   :  { %20 = vsyncpa [#allocation9], 0 }
   0x3   :  { %21 = vsyncpa [#allocation4], 0  ;;  %s43_s27 = sshll.u32 %s8098_s3, 4  ;;  %s5557_s28 = smov [#allocation5]   ;;  %s44_s27 = int_to_ptr.hbm [resolvable:$true] %s43_s27 }
   0x4   :  { %s45_s29 = sshll.u32 %s5557_s28, 4  ;;  %s79_s15 = sshll.u32 %s8105_s10, 4  ;;  %s46_s29 = int_to_ptr.vmem [resolvable:$true] %s45_s29  ;;  %s80_s15 = int_to_ptr.hbm [resolvable:$true] %s79_s15 }
   0x5   :  { %s5558_s16 = smov 64   ;;  %s5559_s17 = smov 4  }
   0x6   :  { %51 = dma.hbm_to_vmem [thread:$0]  %s44_s27, 2048, %s46_s29, [#allocation6], %s5558_s16, %s5558_s16, %s5559_s17  }
   0x7   :  { %s5560_s18 = smov [#allocation8]   ;;  %s5561_s20 = smov 128  }
   0x8   :  { %s81_s19 = sshll.u32 %s5560_s18, 4  ;;  %s5562_s3 = smov 8   ;;  %s82_s19 = int_to_ptr.vmem [resolvable:$true] %s81_s19 }
   0x9   :  { %87 = dma.hbm_to_vmem [thread:$0]  %s80_s15, 512, %s82_s19, [#allocation9], %s5561_s20, %s5561_s20, %s5562_s3  }
   0xa   :  { %s26_s23 = sshll.u32 %s8095_s0, 4  ;;  %s5563_s24 = smov [#allocation2]   ;;  %s27_s23 = int_to_ptr.hbm [resolvable:$true] %s26_s23 }
   0xb   :  { %s28_s10 = sshll.u32 %s5563_s24, 4  ;;  %s58_s28 = sshll.u32 %s8100_s5, 4  ;;  %s29_s10 = int_to_ptr.vmem [resolvable:$true] %s28_s10  ;;  %s59_s28 = int_to_ptr.hbm [resolvable:$true] %s58_s28 }
   0xc   :  { %34 = dma.hbm_to_vmem [thread:$0]  %s27_s23, 512, %s29_s10, [#allocation3], %s5558_s16, %s5558_s16, %s5559_s17  }
   0xd   :  { %s5564_s27 = smov [#allocation7]   ;;  %s94_s15 = sshll.u32 %s8107_s12, 4  ;;  %s95_s15 = int_to_ptr.hbm [resolvable:$true] %s94_s15 }
   0xe   :  { %s60_s29 = sshll.u32 %s5564_s27, 4  ;;  %s5565_s0 = smov [#allocation10]   ;;  %s61_s29 = int_to_ptr.vmem [resolvable:$true] %s60_s29 }
   0xf   :  { %66 = dma.hbm_to_vmem [thread:$0]  %s59_s28, 2048, %s61_s29, [#allocation6], %s5558_s16, %s5558_s16, %s5559_s17  }
  0x10   :  { %s96_s18 = sshll.u32 %s5565_s0, 4  ;;  %s97_s18 = int_to_ptr.vmem [resolvable:$true] %s96_s18 }
  0x11   :  { %102 = dma.hbm_to_vmem [thread:$0]  %s95_s15, 2048, %s97_s18, [#allocation9], %s5558_s16, %s5558_s16, %s5559_s17  }
  0x12   :  { %5549 = dma.done.wait [#allocation3], 512  }
  0x13   :  { %5550 = vsyncadd [#allocation3], 4294966784 }
  0x14   :  { %5551 = dma.done.wait [#allocation6], 4096  }
  0x15   :  { %5552 = vsyncadd [#allocation6], 4294963200 }
  0x16   :  { %5553 = dma.done.wait [#allocation9], 2560  }
  0x17   :  { %5554 = vsyncadd [#allocation9], 4294964736  ;;  %v4516_v0 = vld [vmem:[#allocation5 + $0x38] sm:$0xff]  ;;  %v4515_v1 = vld [vmem:[#allocation5 + $0x30] sm:$0xff]  ;;  %s4106_s24 = sshll.u32 %s8108_s13, 4  ;;  %s4107_s24 = int_to_ptr.hbm [resolvable:$true] %s4106_s24 }
  0x18   :  { %312 = vmatpush.bf16.msra.mxu0 %v4516_v0  ;;  %v4514_v2 = vld [vmem:[#allocation5 + $0x28] sm:$0xff]  ;;  %v4513_v3 = vld [vmem:[#allocation5 + $0x20] sm:$0xff]  ;;  %v4512_v4 = vld [vmem:[#allocation5 + $0x18] sm:$0xff] }
  0x19   :  { %v4511_v5 = vld [vmem:[#allocation5 + $0x10] sm:$0xff]  ;;  %v4510_v6 = vld [vmem:[#allocation5 + $0x8] sm:$0xff]  ;;  %v4509_v7 = vld [vmem:[#allocation5] sm:$0xff] }
  0x1a   :  { %v4505_v8 = vld [vmem:[#allocation2] sm:$0xff]  ;;  %v4506_v9 = vld [vmem:[#allocation2 + $0x8] sm:$0xff]  ;;  %v4507_v10 = vld [vmem:[#allocation2 + $0x10] sm:$0xff] }
  0x1b   :  { %v4508_v11 = vld [vmem:[#allocation2 + $0x18] sm:$0xff]  ;;  %v183_v13 = vld [vmem:[%s8101_s6 + $0x70] sm:$0xff]  ;;  %v182_v14 = vld [vmem:[%s8101_s6 + $0x68] sm:$0xff] }
  0x1c   :  { %313 = vmatpush.bf16.msra.mxu0 %v4515_v1  ;;  %v184_v12 = vld [vmem:[%s8101_s6 + $0x78] sm:$0xff]  ;;  %v181_v15 = vld [vmem:[%s8101_s6 + $0x60] sm:$0xff]  ;;  %v179_v18 = vld [vmem:[%s8101_s6 + $0x50] sm:$0xff] }
  0x1d   :  { %508 = vmatpush.msra.mxu1 %v184_v12  ;;  %v180_v16 = vld [vmem:[%s8101_s6 + $0x58] sm:$0xff]  ;;  %v178_v19 = vld [vmem:[%s8101_s6 + $0x48] sm:$0xff]  ;;  %v4531_v20 = vld [vmem:[%s8103_s8 + $0x30] sm:$0xff] }
  0x1e   :  { %v4532_v17 = vld [vmem:[%s8103_s8 + $0x38] sm:$0xff]  ;;  %v177_v21 = vld [vmem:[%s8101_s6 + $0x40] sm:$0xff]  ;;  %v4530_v23 = vld [vmem:[%s8103_s8 + $0x28] sm:$0xff] }
  0x1f   :  { %509 = vmatpush.msra.mxu1 %v183_v13  ;;  %669 = vmatpush.bf16.msra.mxu2 %v4532_v17  ;;  %v176_v22 = vld [vmem:[%s8101_s6 + $0x38] sm:$0xff]  ;;  %v175_v24 = vld [vmem:[%s8101_s6 + $0x30] sm:$0xff]  ;;  %v174_v25 = vld [vmem:[%s8101_s6 + $0x28] sm:$0xff] }
  0x20   :  { %314 = vmatpush.bf16.msra.mxu0 %v4514_v2  ;;  %v4529_v26 = vld [vmem:[%s8103_s8 + $0x20] sm:$0xff]  ;;  %v172_v28 = vld [vmem:[%s8101_s6 + $0x18] sm:$0xff]  ;;  %v171_v31 = vld [vmem:[%s8101_s6 + $0x10] sm:$0xff] }
  0x21   :  { %510 = vmatpush.msra.mxu1 %v182_v14  ;;  %v173_v27 = vld [vmem:[%s8101_s6 + $0x20] sm:$0xff]  ;;  %v4528_v30 = vld [vmem:[%s8103_s8 + $0x18] sm:$0xff]  ;;  %v170_v33 = vld [vmem:[%s8101_s6 + $0x8] sm:$0xff] }
  0x22   :  { %v5734_v29 = vld [vmem:[%s8099_s4] ss:$0 sm:$0xff]  ;;  %v4527_v35 = vld [vmem:[%s8103_s8 + $0x10] sm:$0xff]  ;;  %v4526_v39 = vld [vmem:[%s8103_s8 + $0x8] sm:$0xff] }
  0x23   :  { %511 = vmatpush.msra.mxu1 %v181_v15  ;;  %670 = vmatpush.bf16.msra.mxu2 %v4531_v20  ;;  %v169_v36 = vld [vmem:[%s8101_s6] sm:$0xff]  ;;  %v4540_v1 = vld [vmem:[%s8104_s9 + $0x38] sm:$0xff]  ;;  %v4539_v12 = vld [vmem:[%s8104_s9 + $0x30] sm:$0xff] }
  0x24   :  { %315 = vmatpush.bf16.msra.mxu0 %v4513_v3  ;;  %v4525_v42 = vld [vmem:[%s8103_s8] sm:$0xff]  ;;  %747 = vmatpush.bf16.msra.mxu3 %v4540_v1  ;;  %v4538_v20 = vld [vmem:[%s8104_s9 + $0x28] sm:$0xff] }
  0x25   :  { %512 = vmatpush.msra.mxu1 %v180_v16 }
  0x27   :  { %513 = vmatpush.msra.mxu1 %v179_v18  ;;  %671 = vmatpush.bf16.msra.mxu2 %v4530_v23 }
  0x28   :  { %316 = vmatpush.bf16.msra.mxu0 %v4512_v4  ;;  %748 = vmatpush.bf16.msra.mxu3 %v4539_v12 }
  0x29   :  { %514 = vmatpush.msra.mxu1 %v178_v19 }
  0x2b   :  { %515 = vmatpush.msra.mxu1 %v177_v21  ;;  %672 = vmatpush.bf16.msra.mxu2 %v4529_v26 }
  0x2c   :  { %317 = vmatpush.bf16.msra.mxu0 %v4511_v5  ;;  %749 = vmatpush.bf16.msra.mxu3 %v4538_v20 }
  0x2d   :  { %516 = vmatpush.msra.mxu1 %v176_v22 }
  0x2f   :  { %517 = vmatpush.msra.mxu1 %v175_v24  ;;  %673 = vmatpush.bf16.msra.mxu2 %v4528_v30 }
  0x30   :  { %318 = vmatpush.bf16.msra.mxu0 %v4510_v6 }
  0x31   :  { %518 = vmatpush.msra.mxu1 %v174_v25 }
  0x33   :  { %519 = vmatpush.msra.mxu1 %v173_v27  ;;  %674 = vmatpush.bf16.msra.mxu2 %v4527_v35 }
  0x34   :  { %319 = vmatpush.bf16.msra.mxu0 %v4509_v7 }
  0x35   :  { %520 = vmatpush.msra.mxu1 %v172_v28 }
  0x37   :  { %320 = vmatmul.bf16.vlgmr.msra.gmra.mxu0 %v4505_v8  ;;  %521 = vmatpush.msra.mxu1 %v171_v31 }
  0x38   :  { %675 = vmatpush.bf16.msra.mxu2 %v4526_v39 }
  0x39   :  { %522 = vmatpush.msra.mxu1 %v170_v33 }
  0x3b   :  { %523 = vmatpush.msra.mxu1 %v169_v36 }
  0x3c   :  { %676 = vmatpush.bf16.msra.mxu2 %v4525_v42 }
  0x47   :  { %325 = vmatmul.bf16.gmra.mxu0 %v4506_v9 }
  0x57   :  { %330 = vmatmul.bf16.gmra.mxu0 %v4507_v10 }
  0x67   :  { %335 = vmatmul.bf16.gmra.mxu0 %v4508_v11 }
  0xb4   :  { %v321_v32 = vpop.f32.mrf.mxu0 }
  0xb5   :  { %v322_v34 = vadd.f32 %v5734_v29, %v321_v32  ;;  %v4537_v32 = vld [vmem:[%s8104_s9 + $0x20] sm:$0xff] }
  0xb6   :  { %750 = vmatpush.bf16.msra.mxu3 %v4537_v32 }
  0xb7   :  { %v341_v37 = vsub.f32 0.0, %v322_v34 }
  0xb9   :  { %v349_v38 = vmul.f32 1.442695, %v341_v37 }
  0xbb   :  { %4750 = vpow2.f32 %v349_v38 }
  0xbc   :  { %v323_v40 = vpop.f32.mrf.mxu0 }
  0xbd   :  { %v5756_v41 = vadd.f32 %v5734_v29, %v323_v40 }
  0xbf   :  { %v342_v43 = vsub.f32 0.0, %v5756_v41 }
  0xc1   :  { %v4751_v44 = vpop.eup %4750  ;;  %v351_v45 = vmul.f32 1.442695, %v342_v43 }
  0xc2   :  { %v365_v46 = vadd.f32 1.0, %v4751_v44 }
  0xc3   :  { %4752 = vpow2.f32 %v351_v45 }
  0xc4   :  { %4754 = vrcp.f32 %v365_v46  ;;  %v326_v47 = vpop.f32.mrf.mxu0  ;;  %v384_v58 = vand.u32 2147483648, %v365_v46  ;;  %v382_v60 = vand.u32 2147483647, %v365_v46  ;;  %vm378_vm1 = vweird.f32 %v365_v46 }
  0xc5   :  { %v5763_v48 = vadd.f32 %v5734_v29, %v326_v47 }
  0xc6   :  { %v385_v3 = vor.u32 1.1754944e-38, %v384_v58  ;;  %vm383_vm3 = vcmp.eq.f32.partialorder %v382_v60, 8.507059e+37 }
  0xc7   :  { %v343_v49 = vsub.f32 0.0, %v5763_v48 }
  0xc9   :  { %v4753_v50 = vpop.eup %4752  ;;  %v353_v51 = vmul.f32 1.442695, %v343_v49 }
  0xca   :  { %v4755_v52 = vpop.eup %4754  ;;  %v366_v53 = vadd.f32 1.0, %v4753_v50 }
  0xcb   :  { %v374_v54 = vmul.f32 %v4755_v52, %v365_v46  ;;  %4756 = vpow2.f32 %v353_v51  ;;  %vm379_vm0 = vweird.f32 %v4755_v52 }
  0xcc   :  { %4758 = vrcp.f32 %v366_v53  ;;  %v328_v55 = vpop.f32.mrf.mxu0  ;;  %vm380_vm2 = vmor %vm378_vm1, %vm379_vm0  ;;  %v399_v13 = vand.u32 2147483648, %v366_v53  ;;  %v397_v15 = vand.u32 2147483647, %v366_v53  ;;  %vm393_vm5 = vweird.f32 %v366_v53 }
  0xcd   :  { %v375_v56 = vsub.f32 1.0, %v374_v54  ;;  %v5767_v57 = vadd.f32 %v5734_v29, %v328_v55 }
  0xce   :  { %v400_v22 = vor.u32 1.1754944e-38, %v399_v13  ;;  %vm398_vm7 = vcmp.eq.f32.partialorder %v397_v15, 8.507059e+37 }
  0xcf   :  { %v376_v59 = vmul.f32 %v4755_v52, %v375_v56  ;;  %v344_v61 = vsub.f32 0.0, %v5767_v57 }
  0xd1   :  { %v4757_v62 = vpop.eup %4756  ;;  %v377_v63 = vadd.f32 %v4755_v52, %v376_v59  ;;  %v355_v0 = vmul.f32 1.442695, %v344_v61  ;;  %v4534_v61 = vld [vmem:[%s8104_s9 + $0x8] sm:$0xff] }
  0xd2   :  { %v4759_v2 = vpop.eup %4758  ;;  %v367_v4 = vadd.f32 1.0, %v4757_v62 }
  0xd3   :  { %v381_v5 = vsel %vm380_vm2, %v4755_v52, %v377_v63  ;;  %v389_v6 = vmul.f32 %v4759_v2, %v366_v53  ;;  %4760 = vpow2.f32 %v355_v0  ;;  %vm394_vm4 = vweird.f32 %v4759_v2  ;;  %v4535_v53 = vld [vmem:[%s8104_s9 + $0x10] sm:$0xff] }
  0xd4   :  { %v386_v7 = vsel %vm383_vm3, %v385_v3, %v381_v5  ;;  %4762 = vrcp.f32 %v367_v4  ;;  %v331_v8 = vpop.f32.mrf.mxu0  ;;  %vm395_vm6 = vmor %vm393_vm5, %vm394_vm4  ;;  %v412_v33 = vand.u32 2147483647, %v367_v4  ;;  %vm408_vm9 = vweird.f32 %v367_v4 }
  0xd5   :  { %v5773_v9 = vmul.f32 %v386_v7, %v322_v34  ;;  %v390_v10 = vsub.f32 1.0, %v389_v6  ;;  %v5776_v11 = vadd.f32 %v5734_v29, %v331_v8  ;;  %v414_v34 = vand.u32 2147483648, %v367_v4  ;;  %v4533_v8 = vld [vmem:[%s8104_s9] sm:$0xff] }
  0xd6   :  { %vm413_vm11 = vcmp.eq.f32.partialorder %v412_v33, 8.507059e+37 }
  0xd7   :  { %8212 = vst [vmem:[#allocation16_spill] sm:$0xff] %v5773_v9  ;;  %v391_v14 = vmul.f32 %v4759_v2, %v390_v10  ;;  %v345_v16 = vsub.f32 0.0, %v5776_v11  ;;  %524 = vmatmul.f32.vlgmr.msra.gmra.mxu1 %v5773_v9  ;;  %v415_v43 = vor.u32 1.1754944e-38, %v414_v34 }
  0xd9   :  { %v4761_v17 = vpop.eup %4760  ;;  %v392_v18 = vadd.f32 %v4759_v2, %v391_v14  ;;  %v357_v19 = vmul.f32 1.442695, %v345_v16 }
  0xda   :  { %v4763_v21 = vpop.eup %4762  ;;  %v368_v23 = vadd.f32 1.0, %v4761_v17 }
  0xdb   :  { %v396_v24 = vsel %vm395_vm6, %v4759_v2, %v392_v18  ;;  %v404_v25 = vmul.f32 %v4763_v21, %v367_v4  ;;  %4764 = vpow2.f32 %v357_v19  ;;  %vm409_vm8 = vweird.f32 %v4763_v21 }
  0xdc   :  { %v401_v26 = vsel %vm398_vm7, %v400_v22, %v396_v24  ;;  %4766 = vrcp.f32 %v368_v23  ;;  %v333_v27 = vpop.f32.mrf.mxu0  ;;  %vm410_vm10 = vmor %vm408_vm9, %vm409_vm8  ;;  %v429_v54 = vand.u32 2147483648, %v368_v23  ;;  %v427_v56 = vand.u32 2147483647, %v368_v23 }
  0xdd   :  { %v5787_v28 = vmul.f32 %v401_v26, %v5756_v41  ;;  %v405_v30 = vsub.f32 1.0, %v404_v25  ;;  %v5790_v31 = vadd.f32 %v5734_v29, %v333_v27  ;;  %v4536_v41 = vld [vmem:[%s8104_s9 + $0x18] sm:$0xff]  ;;  %vm423_vm13 = vweird.f32 %v368_v23 }
  0xde   :  { %751 = vmatpush.bf16.msra.mxu3 %v4536_v41  ;;  %v430_v63 = vor.u32 1.1754944e-38, %v429_v54  ;;  %vm428_vm15 = vcmp.eq.f32.partialorder %v427_v56, 8.507059e+37 }
  0xdf   :  { %8213 = vst [vmem:[#allocation17_spill] sm:$0xff] %v5787_v28  ;;  %v406_v35 = vmul.f32 %v4763_v21, %v405_v30  ;;  %v346_v36 = vsub.f32 0.0, %v5790_v31  ;;  %527 = vmatmul.f32.gmra.mxu1 %v5787_v28  ;;  %v501_v37 = vpack.c.bf16 %v5787_v28, %v5773_v9  ;;  %v218_v28 = vld [vmem:[#allocation8] sm:$0xff] }
  0xe1   :  { %v4765_v38 = vpop.eup %4764  ;;  %v407_v39 = vadd.f32 %v4763_v21, %v406_v35  ;;  %v359_v40 = vmul.f32 1.442695, %v346_v36  ;;  %677 = vmatmul.bf16.vlgmr.msra.gmra.mxu2 %v501_v37 }
  0xe2   :  { %v4767_v42 = vpop.eup %4766  ;;  %v369_v44 = vadd.f32 1.0, %v4765_v38  ;;  %752 = vmatpush.bf16.msra.mxu3 %v4535_v53 }
  0xe3   :  { %v411_v45 = vsel %vm410_vm10, %v4763_v21, %v407_v39  ;;  %v419_v46 = vmul.f32 %v4767_v42, %v368_v23  ;;  %4768 = vpow2.f32 %v359_v40  ;;  %vm424_vm12 = vweird.f32 %v4767_v42 }
  0xe4   :  { %v416_v47 = vsel %vm413_vm11, %v415_v43, %v411_v45  ;;  %4770 = vrcp.f32 %v369_v44  ;;  %v336_v49 = vpop.f32.mrf.mxu0  ;;  %vm425_vm14 = vmor %vm423_vm13, %vm424_vm12  ;;  %v442_v10 = vand.u32 2147483647, %v369_v44  ;;  %v444_v12 = vand.u32 2147483648, %v369_v44 }
  0xe5   :  { %v5803_v50 = vmul.f32 %v416_v47, %v5763_v48  ;;  %v420_v51 = vsub.f32 1.0, %v419_v46  ;;  %v5806_v52 = vadd.f32 %v5734_v29, %v336_v49  ;;  %vm438_vm1 = vweird.f32 %v369_v44 }
  0xe6   :  { %753 = vmatpush.bf16.msra.mxu3 %v4534_v61  ;;  %v445_v18 = vor.u32 1.1754944e-38, %v444_v12  ;;  %vm443_vm3 = vcmp.eq.f32.partialorder %v442_v10, 8.507059e+37  ;;  %v4744_v12 = vld [vmem:[%s8102_s7] ss:$0 sm:$0xff] }
  0xe7   :  { %8214 = vst [vmem:[#allocation18_spill] sm:$0xff] %v5803_v50  ;;  %v421_v55 = vmul.f32 %v4767_v42, %v420_v51  ;;  %v347_v58 = vsub.f32 0.0, %v5806_v52  ;;  %530 = vmatmul.f32.gmra.mxu1 %v5803_v50 }
  0xe9   :  { %v4769_v59 = vpop.eup %4768  ;;  %v422_v48 = vadd.f32 %v4767_v42, %v421_v55  ;;  %v361_v60 = vmul.f32 1.442695, %v347_v58 }
  0xea   :  { %v4771_v62 = vpop.eup %4770  ;;  %v370_v0 = vadd.f32 1.0, %v4769_v59  ;;  %754 = vmatpush.bf16.msra.mxu3 %v4533_v8 }
  0xeb   :  { %v426_v1 = vsel %vm425_vm14, %v4767_v42, %v422_v48  ;;  %v434_v2 = vmul.f32 %v4771_v62, %v369_v44  ;;  %4772 = vpow2.f32 %v361_v60  ;;  %vm439_vm0 = vweird.f32 %v4771_v62 }
  0xec   :  { %v431_v3 = vsel %vm428_vm15, %v430_v63, %v426_v1  ;;  %4774 = vrcp.f32 %v370_v0  ;;  %v338_v4 = vpop.f32.mrf.mxu0  ;;  %vm440_vm2 = vmor %vm438_vm1, %vm439_vm0  ;;  %v459_v25 = vand.u32 2147483648, %v370_v0  ;;  %v457_v27 = vand.u32 2147483647, %v370_v0 }
  0xed   :  { %v5817_v5 = vmul.f32 %v431_v3, %v5767_v57  ;;  %v435_v6 = vsub.f32 1.0, %v434_v2  ;;  %v5820_v7 = vadd.f32 %v5734_v29, %v338_v4  ;;  %vm453_vm5 = vweird.f32 %v370_v0 }
  0xee   :  { %v460_v34 = vor.u32 1.1754944e-38, %v459_v25  ;;  %vm458_vm7 = vcmp.eq.f32.partialorder %v457_v27, 8.507059e+37 }
  0xef   :  { %8215 = vst [vmem:[#allocation19_spill] sm:$0xff] %v5817_v5  ;;  %v436_v13 = vmul.f32 %v4771_v62, %v435_v6  ;;  %v348_v14 = vsub.f32 0.0, %v5820_v7  ;;  %533 = vmatmul.f32.gmra.mxu1 %v5817_v5  ;;  %v502_v57 = vpack.c.bf16 %v5817_v5, %v5803_v50 }
  0xf1   :  { %v4773_v15 = vpop.eup %4772  ;;  %v437_v16 = vadd.f32 %v4771_v62, %v436_v13  ;;  %v363_v29 = vmul.f32 1.442695, %v348_v14  ;;  %682 = vmatmul.bf16.gmra.mxu2 %v502_v57 }
  0xf2   :  { %v4775_v17 = vpop.eup %4774  ;;  %v371_v19 = vadd.f32 1.0, %v4773_v15 }
  0xf3   :  { %v441_v20 = vsel %vm440_vm2, %v4771_v62, %v437_v16  ;;  %v449_v21 = vmul.f32 %v4775_v17, %v370_v0  ;;  %4776 = vpow2.f32 %v363_v29  ;;  %vm454_vm4 = vweird.f32 %v4775_v17 }
  0xf4   :  { %v446_v22 = vsel %vm443_vm3, %v445_v18, %v441_v20  ;;  %4778 = vrcp.f32 %v371_v19  ;;  %vm455_vm6 = vmor %vm453_vm5, %vm454_vm4  ;;  %v474_v40 = vand.u32 2147483648, %v371_v19  ;;  %v472_v42 = vand.u32 2147483647, %v371_v19 }
  0xf5   :  { %v5830_v23 = vmul.f32 %v446_v22, %v5776_v11  ;;  %v450_v24 = vsub.f32 1.0, %v449_v21  ;;  %vm468_vm9 = vweird.f32 %v371_v19 }
  0xf6   :  { %v475_v46 = vor.u32 1.1754944e-38, %v474_v40  ;;  %vm473_vm11 = vcmp.eq.f32.partialorder %v472_v42, 8.507059e+37 }
  0xf7   :  { %8216 = vst [vmem:[#allocation20_spill] sm:$0xff] %v5830_v23  ;;  %v451_v26 = vmul.f32 %v4775_v17, %v450_v24  ;;  %536 = vmatmul.f32.gmra.mxu1 %v5830_v23 }
  0xf9   :  { %v4777_v30 = vpop.eup %4776  ;;  %v452_v32 = vadd.f32 %v4775_v17, %v451_v26 }
  0xfa   :  { %v4779_v33 = vpop.eup %4778  ;;  %v372_v35 = vadd.f32 1.0, %v4777_v30 }
  0xfb   :  { %v456_v36 = vsel %vm455_vm6, %v4775_v17, %v452_v32  ;;  %v464_v37 = vmul.f32 %v4779_v33, %v371_v19  ;;  %vm469_vm8 = vweird.f32 %v4779_v33 }
  0xfc   :  { %v461_v38 = vsel %vm458_vm7, %v460_v34, %v456_v36  ;;  %4780 = vrcp.f32 %v372_v35  ;;  %vm470_vm10 = vmor %vm468_vm9, %vm469_vm8  ;;  %v489_v54 = vand.u32 2147483648, %v372_v35  ;;  %v487_v56 = vand.u32 2147483647, %v372_v35 }
  0xfd   :  { %v5834_v11 = vmul.f32 %v461_v38, %v5790_v31  ;;  %v465_v39 = vsub.f32 1.0, %v464_v37  ;;  %vm483_vm13 = vweird.f32 %v372_v35 }
  0xfe   :  { %v490_v59 = vor.u32 1.1754944e-38, %v489_v54  ;;  %vm488_vm15 = vcmp.eq.f32.partialorder %v487_v56, 8.507059e+37 }
  0xff   :  { %8217 = vst [vmem:[#allocation21_spill] sm:$0xff] %v5834_v11  ;;  %v466_v41 = vmul.f32 %v4779_v33, %v465_v39  ;;  %539 = vmatmul.f32.gmra.mxu1 %v5834_v11  ;;  %v503_v43 = vpack.c.bf16 %v5834_v11, %v5830_v23  ;;  %v8245_v23 = vmov 8  }
 0x101   :  { %v467_v44 = vadd.f32 %v4779_v33, %v466_v41  ;;  %687 = vmatmul.bf16.gmra.mxu2 %v503_v43 }
 0x102   :  { %v4781_v45 = vpop.eup %4780 }
 0x103   :  { %v471_v47 = vsel %vm470_vm10, %v4779_v33, %v467_v44  ;;  %v479_v31 = vmul.f32 %v4781_v45, %v372_v35  ;;  %vm484_vm12 = vweird.f32 %v4781_v45 }
 0x104   :  { %v476_v49 = vsel %vm473_vm11, %v475_v46, %v471_v47  ;;  %vm485_vm14 = vmor %vm483_vm13, %vm484_vm12 }
 0x105   :  { %v5840_v51 = vmul.f32 %v476_v49, %v5806_v52  ;;  %v480_v53 = vsub.f32 1.0, %v479_v31 }
 0x107   :  { %8218 = vst [vmem:[#allocation22_spill] sm:$0xff] %v5840_v51  ;;  %v481_v55 = vmul.f32 %v4781_v45, %v480_v53  ;;  %542 = vmatmul.f32.gmra.mxu1 %v5840_v51 }
 0x109   :  { %v482_v58 = vadd.f32 %v4781_v45, %v481_v55 }
 0x10b   :  { %v486_v48 = vsel %vm485_vm14, %v4781_v45, %v482_v58 }
 0x10c   :  { %v491_v60 = vsel %vm488_vm15, %v490_v59, %v486_v48 }
 0x10d   :  { %v5844_v61 = vmul.f32 %v491_v60, %v5820_v7  ;;  %v8123_v7 = vmov 0  }
 0x10e   :  { %4617 = vset.pattern.permute.xlu2 %v8123_v7  ;;  %4616 = vset.pattern.permute.xlu1 %v8123_v7 }
 0x10f   :  { %8219 = vst [vmem:[#allocation23_spill] sm:$0xff] %v5844_v61  ;;  %545 = vmatmul.f32.gmra.mxu1 %v5844_v61  ;;  %v504_v52 = vpack.c.bf16 %v5844_v61, %v5840_v51  ;;  %v698_v62 = vpack.c.bf16 %v5844_v61, %v5844_v61  ;;  %4615 = vset.pattern.permute.xlu0 %v8123_v7  ;;  %v4553_v7 = vld [vmem:[#allocation5 + $0x60] sm:$0xff]  ;;  %v4552_v51 = vld [vmem:[#allocation5 + $0x58] sm:$0xff] }
 0x111   :  { %692 = vmatmul.bf16.gmra.mxu2 %v504_v52  ;;  %755 = vmatmul.bf16.vlgmr.msra.gmra.mxu3 %v698_v62 }
 0x154   :  { %v5851_v63 = vpop.f32.mrf.mxu1 }
 0x155   :  { %8220 = vst [vmem:[#allocation24_spill] sm:$0xff] %v5851_v63 }
 0x15c   :  { %v528_v0 = vpop.f32.mrf.mxu1 }
 0x15d   :  { %v5873_v20 = vadd.f32 %v4744_v12, %v528_v0 }
 0x15f   :  { %v558_v30 = vand.u32 2147483647, %v5873_v20 }
 0x161   :  { %v566_v40 = vsub.f32 0.0, %v558_v30 }
 0x163   :  { %v575_v46 = vmul.f32 1.442695, %v566_v40  ;;  %v8119_v40 = vmov 1  }
 0x164   :  { %v531_v1 = vpop.f32.mrf.mxu1  ;;  %v678_v2 = vpop.f32.mrf.mxu2 }
 0x165   :  { %v5868_v16 = vadd.f32 %v4744_v12, %v531_v1 }
 0x167   :  { %v559_v25 = vand.u32 2147483647, %v5868_v16 }
 0x169   :  { %v567_v35 = vsub.f32 0.0, %v559_v25 }
 0x16b   :  { %v577_v43 = vmul.f32 1.442695, %v567_v35 }
 0x16c   :  { %v534_v3 = vpop.f32.mrf.mxu1  ;;  %v5853_v4 = vpop.f32.mrf.mxu2 }
 0x16d   :  { %v5865_v57 = vadd.f32 %v4744_v12, %v534_v3 }
 0x16f   :  { %v560_v21 = vand.u32 2147483647, %v5865_v57 }
 0x171   :  { %v568_v32 = vsub.f32 0.0, %v560_v21 }
 0x173   :  { %v579_v41 = vmul.f32 1.442695, %v568_v32 }
 0x174   :  { %v537_v6 = vpop.f32.mrf.mxu1  ;;  %v683_v8 = vpop.f32.mrf.mxu2 }
 0x175   :  { %v5863_v14 = vadd.f32 %v4744_v12, %v537_v6 }
 0x177   :  { %v561_v29 = vand.u32 2147483647, %v5863_v14 }
 0x179   :  { %v569_v26 = vsub.f32 0.0, %v561_v29 }
 0x17b   :  { %v581_v36 = vmul.f32 1.442695, %v569_v26 }
 0x17c   :  { %v540_v10 = vpop.f32.mrf.mxu1  ;;  %v685_v17 = vpop.f32.mrf.mxu2 }
 0x17d   :  { %v5861_v13 = vadd.f32 %v4744_v12, %v540_v10 }
 0x17f   :  { %v562_v15 = vand.u32 2147483647, %v5861_v13  ;;  %v554_v35 = vmax.f32 %v5861_v13, 0.0 }
 0x181   :  { %v570_v22 = vsub.f32 0.0, %v562_v15 }
 0x183   :  { %v583_v33 = vmul.f32 1.442695, %v570_v22 }
 0x184   :  { %v543_v18 = vpop.f32.mrf.mxu1  ;;  %v688_v39 = vpop.f32.mrf.mxu2 }
 0x185   :  { %v5871_v19 = vadd.f32 %v4744_v12, %v543_v18 }
 0x187   :  { %v563_v24 = vand.u32 2147483647, %v5871_v19 }
 0x189   :  { %v571_v27 = vsub.f32 0.0, %v563_v24 }
 0x18b   :  { %v585_v34 = vmul.f32 1.442695, %v571_v27 }
 0x18c   :  { %v546_v37 = vpop.f32.mrf.mxu1  ;;  %v690_v48 = vpop.f32.mrf.mxu2 }
 0x18d   :  { %4782 = vpow2.f32 %v585_v34  ;;  %v5879_v38 = vadd.f32 %v4744_v12, %v546_v37 }
 0x18e   :  { %4784 = vpow2.f32 %v583_v33 }
 0x18f   :  { %v564_v42 = vand.u32 2147483647, %v5879_v38  ;;  %4786 = vpow2.f32 %v581_v36  ;;  %v556_v27 = vmax.f32 %v5879_v38, 0.0  ;;  %v553_v38 = vmax.f32 %v5863_v14, 0.0 }
 0x190   :  { %4788 = vpow2.f32 %v579_v41 }
 0x191   :  { %v572_v44 = vsub.f32 0.0, %v564_v42  ;;  %4790 = vpow2.f32 %v577_v43 }
 0x193   :  { %v4783_v45 = vpop.eup %4782  ;;  %v587_v47 = vmul.f32 1.442695, %v572_v44  ;;  %v552_v44 = vmax.f32 %v5865_v57, 0.0 }
 0x194   :  { %v5882_v31 = vpop.f32.mrf.mxu3  ;;  %v4785_v49 = vpop.eup %4784  ;;  %v595_v55 = vadd.f32 1.0, %v4783_v45 }
 0x195   :  { %4792 = vpow2.f32 %v587_v47  ;;  %v5885_v53 = vmul.f32 %v5882_v31, %v678_v2  ;;  %v4787_v54 = vpop.eup %4786  ;;  %v5888_v56 = vmul.f32 %v5882_v31, %v683_v8  ;;  %v5891_v58 = vmul.f32 %v5882_v31, %v688_v39 }
 0x196   :  { %4794 = vpow2.f32 %v575_v46  ;;  %v594_v59 = vadd.f32 1.0, %v4785_v49  ;;  %v4789_v60 = vpop.eup %4788  ;;  %v593_v52 = vadd.f32 1.0, %v4787_v54  ;;  %v5898_v8 = vmul.f32 %v5882_v31, %v5853_v4  ;;  %v693_v4 = vpop.f32.mrf.mxu2 }
 0x197   :  { %1177 = vperm.xlu0 %4615, %v5885_v53   ;;  %1187 = vperm.xlu1 %4616, %v5888_v56   ;;  %v4791_v62 = vpop.eup %4790  ;;  %4796 = vlog2.f32 %v595_v55  ;;  %v592_v1 = vadd.f32 1.0, %v4789_v60  ;;  %v5901_v12 = vmul.f32 %v5882_v31, %v685_v17  ;;  %v5904_v15 = vmul.f32 %v5882_v31, %v690_v48 }
 0x198   :  { %1197 = vperm.xlu2 %4617, %v5891_v58   ;;  %4798 = vlog2.f32 %v594_v59  ;;  %v591_v10 = vadd.f32 1.0, %v4791_v62  ;;  %v555_v17 = vmax.f32 %v5871_v19, 0.0  ;;  %v5912_v32 = vmul.f32 %v5882_v31, %v693_v4 }
 0x199   :  { %4800 = vlog2.f32 %v593_v52  ;;  %v551_v47 = vmax.f32 %v5868_v16, 0.0  ;;  %v550_v55 = vmax.f32 %v5873_v20, 0.0  ;;  %v8117_v60 = vmov 2  }
 0x19a   :  { %v8115_v52 = vmov 3   ;;  %v8113_v62 = vmov 4  }
 0x19b   :  { %v4793_v0 = vpop.eup %4792 }
 0x19c   :  { %v596_v2 = vadd.f32 1.0, %v4793_v0  ;;  %v758_v3 = vpop.f32.mrf.mxu3  ;;  %v4795_v6 = vpop.eup %4794  ;;  %v8111_v0 = vmov 5  }
 0x19d   :  { %v4797_v29 = vpop.eup %4796  ;;  %v590_v18 = vadd.f32 1.0, %v4795_v6  ;;  %v8109_v3 = vmov 6  }
 0x19e   :  { %4802 = vlog2.f32 %v596_v2  ;;  %v4799_v21 = vpop.eup %4798  ;;  %v610_v24 = vmul.f32 0.6931472, %v4797_v29 }
 0x19f   :  { %1182 = vperm.xlu0 %4615, %v5898_v8   ;;  %4804 = vlog2.f32 %v592_v1  ;;  %1192 = vperm.xlu1 %4616, %v5901_v12   ;;  %v4801_v22 = vpop.eup %4800  ;;  %v608_v26 = vmul.f32 0.6931472, %v4799_v21  ;;  %v8121_v21 = vmov 7  }
 0x1a0   :  { %1202 = vperm.xlu2 %4617, %v5904_v15   ;;  %4806 = vlog2.f32 %v591_v10  ;;  %v606_v34 = vmul.f32 0.6931472, %v4801_v22  ;;  %v5915_v36 = vadd.f32 %v610_v24, %v555_v17 }
 0x1a1   :  { %4808 = vlog2.f32 %v590_v18  ;;  %v5923_v41 = vadd.f32 %v608_v26, %v554_v35 }
 0x1a2   :  { %8221 = vst [vmem:[#allocation25_spill] sm:$0xff] %v5915_v36  ;;  %v5932_v45 = vadd.f32 %v606_v34, %v553_v38  ;;  %v8125_v38 = vmov 9  }
 0x1a3   :  { %8223 = vst [vmem:[#allocation27_spill] sm:$0xff] %v5923_v41 }
 0x1a4   :  { %v4803_v25 = vpop.eup %4802  ;;  %8225 = vst [vmem:[#allocation29_spill] sm:$0xff] %v5932_v45 }
 0x1a5   :  { %v612_v30 = vmul.f32 0.6931472, %v4803_v25  ;;  %v4805_v33 = vpop.eup %4804 }
 0x1a6   :  { %v4807_v39 = vpop.eup %4806  ;;  %v604_v19 = vmul.f32 0.6931472, %v4805_v33 }
 0x1a7   :  { %v5917_v37 = vadd.f32 %v612_v30, %v556_v27  ;;  %1207 = vperm.xlu0 %4615, %v5912_v32   ;;  %4620 = vset.pattern.permute.xlu1 %v8119_v40  ;;  %v4809_v42 = vpop.eup %4808  ;;  %v602_v43 = vmul.f32 0.6931472, %v4807_v39  ;;  %v8127_v27 = vmov 8  }
 0x1a8   :  { %4618 = vset.pattern.permute.xlu2 %v8119_v40  ;;  %1240 = vperm.xlu1 %4620, %v5888_v56   ;;  %v600_v14 = vmul.f32 0.6931472, %v4809_v42  ;;  %v5939_v49 = vadd.f32 %v604_v19, %v552_v44 }
 0x1a9   :  { %8222 = vst [vmem:[#allocation26_spill] sm:$0xff] %v5917_v37  ;;  %1232 = vperm.xlu2 %4618, %v5885_v53   ;;  %v5929_v13 = vadd.f32 %v5917_v37, %v5915_v36  ;;  %v5946_v59 = vadd.f32 %v602_v43, %v551_v47 }
 0x1aa   :  { %8226 = vst [vmem:[#allocation30_spill] sm:$0xff] %v5939_v49  ;;  %v5954_v48 = vadd.f32 %v600_v14, %v550_v55 }
 0x1ab   :  { %8224 = vst [vmem:[#allocation28_spill] sm:$0xff] %v5929_v13  ;;  %v5936_v46 = vadd.f32 %v5929_v13, %v5923_v41 }
 0x1ac   :  { %8228 = vst [vmem:[#allocation32_spill] sm:$0xff] %v5946_v59 }
 0x1ad   :  { %v5943_v54 = vadd.f32 %v5936_v46, %v5932_v45  ;;  %8229 = vst [vmem:[#allocation33_spill] sm:$0xff] %v5954_v48  ;;  %v8260_v45 = vmov 13  }
 0x1af   :  { %8227 = vst [vmem:[#allocation31_spill] sm:$0xff] %v5943_v54  ;;  %4619 = vset.pattern.permute.xlu0 %v8119_v40  ;;  %v5951_v57 = vadd.f32 %v5943_v54, %v5939_v49  ;;  %v6182_v54 = vperm.slane %v218_v28, 7 }
 0x1b0   :  { %1236 = vperm.xlu0 %4619, %v5898_v8   ;;  %1248 = vperm.xlu1 %4620, %v5891_v58  }
 0x1b1   :  { %1244 = vperm.xlu2 %4618, %v5901_v12   ;;  %v5960_v16 = vadd.f32 %v5951_v57, %v5946_v59  ;;  %8259 = vst [vmem:[#allocation61_spill] sm:$0xff] %v6182_v54 }
 0x1b3   :  { %v5964_v20 = vadd.f32 %v5960_v16, %v5954_v48 }
 0x1b5   :  { %8230 = vst [vmem:[#allocation34_spill] sm:$0xff] %v5964_v20 }
 0x1b8   :  { %1256 = vperm.xlu0 %4619, %v5912_v32   ;;  %4623 = vset.pattern.permute.xlu1 %v8117_v60 }
 0x1b9   :  { %1252 = vperm.xlu2 %4618, %v5904_v15   ;;  %1288 = vperm.xlu1 %4623, %v5888_v56  }
 0x1c0   :  { %4622 = vset.pattern.permute.xlu0 %v8117_v60 }
 0x1c1   :  { %4621 = vset.pattern.permute.xlu2 %v8117_v60  ;;  %1284 = vperm.xlu0 %4622, %v5898_v8  }
 0x1c2   :  { %1296 = vperm.xlu1 %4623, %v5891_v58   ;;  %1280 = vperm.xlu2 %4621, %v5885_v53  }
 0x1c9   :  { %1304 = vperm.xlu0 %4622, %v5912_v32  }
 0x1ca   :  { %4626 = vset.pattern.permute.xlu1 %v8115_v52  ;;  %1292 = vperm.xlu2 %4621, %v5901_v12  }
 0x1cb   :  { %1336 = vperm.xlu1 %4626, %v5888_v56  }
 0x1d1   :  { %4625 = vset.pattern.permute.xlu0 %v8115_v52 }
 0x1d2   :  { %1300 = vperm.xlu2 %4621, %v5904_v15   ;;  %1332 = vperm.xlu0 %4625, %v5898_v8  }
 0x1d3   :  { %1344 = vperm.xlu1 %4626, %v5891_v58  }
 0x1da   :  { %4624 = vset.pattern.permute.xlu2 %v8115_v52  ;;  %1352 = vperm.xlu0 %4625, %v5912_v32  }
 0x1db   :  { %4629 = vset.pattern.permute.xlu1 %v8113_v62  ;;  %1328 = vperm.xlu2 %4624, %v5885_v53  }
 0x1dc   :  { %1384 = vperm.xlu1 %4629, %v5888_v56  }
 0x1e2   :  { %4628 = vset.pattern.permute.xlu0 %v8113_v62 }
 0x1e3   :  { %1340 = vperm.xlu2 %4624, %v5901_v12   ;;  %1380 = vperm.xlu0 %4628, %v5898_v8  }
 0x1e4   :  { %1392 = vperm.xlu1 %4629, %v5891_v58  }
 0x1eb   :  { %1348 = vperm.xlu2 %4624, %v5904_v15   ;;  %1400 = vperm.xlu0 %4628, %v5912_v32  }
 0x1ec   :  { %4632 = vset.pattern.permute.xlu1 %v8111_v0 }
 0x1ed   :  { %1432 = vperm.xlu1 %4632, %v5888_v56  }
 0x1f2   :  { %v5996_v1 = vpop.permute.xlu2 %1197 }
 0x1f3   :  { %4627 = vset.pattern.permute.xlu2 %v8113_v62  ;;  %4631 = vset.pattern.permute.xlu0 %v8111_v0  ;;  %v4555_v62 = vld [vmem:[#allocation5 + $0x70] sm:$0xff] }
 0x1f4   :  { %1376 = vperm.xlu2 %4627, %v5885_v53   ;;  %1428 = vperm.xlu0 %4631, %v5898_v8  }
 0x1f5   :  { %1440 = vperm.xlu1 %4632, %v5891_v58  }
 0x1fa   :  { %v6003_v2 = vpop.permute.xlu2 %1202 }
 0x1fb   :  { %8231 = vst [vmem:[#allocation35_spill] sm:$0xff] %v6003_v2 }
 0x1fc   :  { %1388 = vperm.xlu2 %4627, %v5901_v12   ;;  %1448 = vperm.xlu0 %4631, %v5912_v32  }
 0x1fd   :  { %4635 = vset.pattern.permute.xlu1 %v8109_v3 }
 0x1fe   :  { %1480 = vperm.xlu1 %4635, %v5888_v56  }
 0x203   :  { %v6009_v6 = vpop.permute.xlu2 %1232 }
 0x204   :  { %8232 = vst [vmem:[#allocation36_spill] sm:$0xff] %v6009_v6  ;;  %1396 = vperm.xlu2 %4627, %v5904_v15   ;;  %4634 = vset.pattern.permute.xlu0 %v8109_v3  ;;  %v6172_v6 = vperm.slane %v218_v28, 6 }
 0x205   :  { %1476 = vperm.xlu0 %4634, %v5898_v8  }
 0x206   :  { %1488 = vperm.xlu1 %4635, %v5891_v58   ;;  %8256 = vst [vmem:[#allocation58_spill] sm:$0xff] %v6172_v6 }
 0x209   :  { %v6015_v10 = vpop.permute.xlu0 %1177  ;;  %v6017_v29 = vpop.permute.xlu1 %1187 }
 0x20a   :  { %8233 = vst [vmem:[#allocation37_spill] sm:$0xff] %v6015_v10 }
 0x20b   :  { %v6019_v18 = vpop.permute.xlu2 %1244 }
 0x20c   :  { %8234 = vst [vmem:[#allocation38_spill] sm:$0xff] %v6019_v18  ;;  %4630 = vset.pattern.permute.xlu2 %v8111_v0  ;;  %v4556_v0 = vld [vmem:[#allocation5 + $0x78] sm:$0xff]  ;;  %v8254_v18 = vmov 9  }
 0x20d   :  { %1424 = vperm.xlu2 %4630, %v5885_v53   ;;  %1496 = vperm.xlu0 %4634, %v5912_v32  }
 0x20e   :  { %4638 = vset.pattern.permute.xlu1 %v8121_v21  ;;  %2286 = vmatpush.bf16.msrb.mxu1 %v4556_v0 }
 0x20f   :  { %1528 = vperm.xlu1 %4638, %v5888_v56  }
 0x211   :  { %v6026_v4 = vpop.permute.xlu0 %1182  ;;  %v6028_v22 = vpop.permute.xlu1 %1192 }
 0x212   :  { %8235 = vst [vmem:[#allocation39_spill] sm:$0xff] %v6028_v22  ;;  %2287 = vmatpush.bf16.msrb.mxu1 %v4555_v62  ;;  %v8138_v62 = vmov 11  }
 0x213   :  { %v6030_v24 = vpop.permute.xlu2 %1252 }
 0x214   :  { %8236 = vst [vmem:[#allocation40_spill] sm:$0xff] %v6030_v24  ;;  %v6151_v24 = vperm.slane %v218_v28, 3 }
 0x215   :  { %1436 = vperm.xlu2 %4630, %v5901_v12   ;;  %4637 = vset.pattern.permute.xlu0 %v8121_v21 }
 0x216   :  { %1524 = vperm.xlu0 %4637, %v5898_v8   ;;  %8251 = vst [vmem:[#allocation54_spill] sm:$0xff] %v6151_v24 }
 0x217   :  { %1536 = vperm.xlu1 %4638, %v5891_v58  }
 0x219   :  { %v6036_v25 = vpop.permute.xlu0 %1207 }
 0x21a   :  { %v6038_v17 = vpop.permute.xlu1 %1240 }
 0x21c   :  { %v6040_v26 = vpop.permute.xlu2 %1280 }
 0x21d   :  { %8237 = vst [vmem:[#allocation41_spill] sm:$0xff] %v6040_v26  ;;  %1444 = vperm.xlu2 %4630, %v5904_v15  }
 0x21e   :  { %1544 = vperm.xlu0 %4637, %v5912_v32  }
 0x21f   :  { %4641 = vset.pattern.permute.xlu1 %v8127_v27 }
 0x220   :  { %1576 = vperm.xlu1 %4641, %v5888_v56  }
 0x222   :  { %v6046_v30 = vpop.permute.xlu0 %1236  ;;  %v6048_v33 = vpop.permute.xlu1 %1248 }
 0x224   :  { %v6050_v34 = vpop.permute.xlu2 %1292 }
 0x225   :  { %8238 = vst [vmem:[#allocation42_spill] sm:$0xff] %v6050_v34  ;;  %4633 = vset.pattern.permute.xlu2 %v8109_v3  ;;  %v8130_v3 = vmov 10  }
 0x226   :  { %1472 = vperm.xlu2 %4633, %v5885_v53   ;;  %4640 = vset.pattern.permute.xlu0 %v8127_v27 }
 0x227   :  { %1572 = vperm.xlu0 %4640, %v5898_v8  }
 0x228   :  { %1584 = vperm.xlu1 %4641, %v5891_v58  }
 0x22a   :  { %v6057_v35 = vpop.permute.xlu0 %1256 }
 0x22b   :  { %v6059_v39 = vpop.permute.xlu1 %1288 }
 0x22c   :  { %v6061_v19 = vpop.permute.xlu2 %1300 }
 0x22d   :  { %8239 = vst [vmem:[#allocation43_spill] sm:$0xff] %v6061_v19 }
 0x22e   :  { %1484 = vperm.xlu2 %4633, %v5901_v12  }
 0x22f   :  { %1592 = vperm.xlu0 %4640, %v5912_v32  }
 0x230   :  { %4644 = vset.pattern.permute.xlu1 %v8125_v38 }
 0x231   :  { %1624 = vperm.xlu1 %4644, %v5888_v56  }
 0x233   :  { %v6067_v42 = vpop.permute.xlu0 %1284 }
 0x234   :  { %v6069_v43 = vpop.permute.xlu1 %1296 }
 0x235   :  { %v6071_v44 = vpop.permute.xlu2 %1328 }
 0x236   :  { %8240 = vst [vmem:[#allocation44_spill] sm:$0xff] %v6071_v44  ;;  %1492 = vperm.xlu2 %4633, %v5904_v15   ;;  %v6167_v44 = vperm.slane %v218_v28, 5 }
 0x237   :  { %4643 = vset.pattern.permute.xlu0 %v8125_v38 }
 0x238   :  { %1620 = vperm.xlu0 %4643, %v5898_v8   ;;  %8255 = vst [vmem:[#allocation57_spill] sm:$0xff] %v6167_v44  ;;  %v822_v26 = vmul.f32 %v6167_v44, %v5960_v16 }
 0x239   :  { %1632 = vperm.xlu1 %4644, %v5891_v58  }
 0x23b   :  { %v6077_v14 = vpop.permute.xlu0 %1304 }
 0x23d   :  { %v6079_v47 = vpop.permute.xlu1 %1336  ;;  %v6081_v55 = vpop.permute.xlu2 %1340 }
 0x23e   :  { %8241 = vst [vmem:[#allocation45_spill] sm:$0xff] %v6081_v55  ;;  %4636 = vset.pattern.permute.xlu2 %v8121_v21  ;;  %v4554_v21 = vld [vmem:[#allocation5 + $0x68] sm:$0xff]  ;;  %v6159_v55 = vperm.slane %v218_v28, 4 }
 0x23f   :  { %1520 = vperm.xlu2 %4636, %v5885_v53   ;;  %2288 = vmatpush.bf16.msrb.mxu1 %v4554_v21  ;;  %v4551_v21 = vld [vmem:[#allocation5 + $0x50] sm:$0xff] }
 0x240   :  { %1640 = vperm.xlu0 %4643, %v5912_v32   ;;  %8253 = vst [vmem:[#allocation56_spill] sm:$0xff] %v6159_v55 }
 0x241   :  { %4647 = vset.pattern.permute.xlu1 %v8130_v3 }
 0x242   :  { %1672 = vperm.xlu1 %4647, %v5888_v56  }
 0x243   :  { %2289 = vmatpush.bf16.msrb.mxu1 %v4553_v7  ;;  %v4550_v7 = vld [vmem:[#allocation5 + $0x48] sm:$0xff] }
 0x244   :  { %v6088_v52 = vpop.permute.xlu0 %1332 }
 0x245   :  { %v6090_v60 = vpop.permute.xlu1 %1344  ;;  %v6092_v40 = vpop.permute.xlu2 %1348 }
 0x246   :  { %8242 = vst [vmem:[#allocation46_spill] sm:$0xff] %v6092_v40 }
 0x247   :  { %1532 = vperm.xlu2 %4636, %v5901_v12   ;;  %2290 = vmatpush.bf16.msrb.mxu1 %v4552_v51  ;;  %v4549_v51 = vld [vmem:[#allocation5 + $0x40] sm:$0xff] }
 0x248   :  { %4646 = vset.pattern.permute.xlu0 %v8130_v3 }
 0x249   :  { %1668 = vperm.xlu0 %4646, %v5898_v8  }
 0x24a   :  { %1680 = vperm.xlu1 %4647, %v5891_v58  }
 0x24b   :  { %2291 = vmatpush.bf16.msrb.mxu1 %v4551_v21  ;;  %v5398_v21 = vld [vmem:[#allocation2] sm:$0xff] }
 0x24c   :  { %v6098_v0 = vpop.permute.xlu0 %1352 }
 0x24e   :  { %v6100_v38 = vpop.permute.xlu1 %1384  ;;  %v6102_v27 = vpop.permute.xlu2 %1376 }
 0x24f   :  { %8243 = vst [vmem:[#allocation47_spill] sm:$0xff] %v6102_v27  ;;  %1540 = vperm.xlu2 %4636, %v5904_v15   ;;  %2292 = vmatpush.bf16.msrb.mxu1 %v4550_v7  ;;  %v813_v27 = vmul.f32 %v6159_v55, %v5960_v16 }
 0x251   :  { %1688 = vperm.xlu0 %4646, %v5912_v32  }
 0x252   :  { %4650 = vset.pattern.permute.xlu1 %v8138_v62 }
 0x253   :  { %1720 = vperm.xlu1 %4650, %v5888_v56   ;;  %2293 = vmatpush.bf16.msrb.mxu1 %v4549_v51  ;;  %v6136_v51 = vperm.slane %v218_v28, 1 }
 0x255   :  { %v6108_v3 = vpop.permute.xlu0 %1380  ;;  %8248 = vst [vmem:[#allocation51_spill] sm:$0xff] %v6136_v51  ;;  %v786_v40 = vmul.f32 %v6136_v51, %v5960_v16 }
 0x256   :  { %v6110_v11 = vpop.permute.xlu1 %1392  ;;  %v6112_v36 = vpop.permute.xlu2 %1388  ;;  %2294 = vmatmul.bf16.vlgmr.msrb.gmra.mxu1 %v5398_v21  ;;  %v6142_v21 = vperm.slane %v218_v28, 2 }
 0x257   :  { %8244 = vst [vmem:[#allocation48_spill] sm:$0xff] %v6112_v36  ;;  %4639 = vset.pattern.permute.xlu2 %v8245_v23  ;;  %v937_v13 = vmul.f32 1.442695, %v786_v40  ;;  %v804_v36 = vmul.f32 %v6151_v24, %v5960_v16 }
 0x258   :  { %1568 = vperm.xlu2 %4639, %v5885_v53   ;;  %8250 = vst [vmem:[#allocation53_spill] sm:$0xff] %v6142_v21  ;;  %v795_v2 = vmul.f32 %v6142_v21, %v5960_v16 }
 0x259   :  { %4649 = vset.pattern.permute.xlu0 %v8138_v62  ;;  %v8144_v62 = vmov 12   ;;  %4810 = vpow2.f32 %v937_v13  ;;  %v969_v40 = vmul.f32 1.442695, %v804_v36  ;;  %v1001_v36 = vmul.f32 1.442695, %v822_v26 }
 0x25a   :  { %1716 = vperm.xlu0 %4649, %v5898_v8   ;;  %v953_v22 = vmul.f32 1.442695, %v795_v2  ;;  %v985_v2 = vmul.f32 1.442695, %v813_v27 }
 0x25b   :  { %1728 = vperm.xlu1 %4650, %v5891_v58  }
 0x25d   :  { %v6119_v41 = vpop.permute.xlu0 %1400 }
 0x25e   :  { %v6121_v5 = vpop.permute.xlu2 %1396 }
 0x25f   :  { %8246 = vst [vmem:[#allocation49_spill] sm:$0xff] %v6121_v5  ;;  %v6123_v50 = vpop.permute.xlu1 %1432  ;;  %v6139_v5 = vperm.slane %v218_v28, 0 }
 0x260   :  { %1580 = vperm.xlu2 %4639, %v5901_v12  }
 0x261   :  { %8249 = vst [vmem:[#allocation52_spill] sm:$0xff] %v6139_v5  ;;  %v777_v19 = vmul.f32 %v6139_v5, %v5960_v16 }
 0x262   :  { %1736 = vperm.xlu0 %4649, %v5912_v32  }
 0x263   :  { %4653 = vset.pattern.permute.xlu1 %v8144_v62 }
 0x264   :  { %1768 = vperm.xlu1 %4653, %v5888_v56  }
 0x266   :  { %v6129_v7 = vpop.permute.xlu0 %1428 }
 0x267   :  { %v6131_v61 = vpop.permute.xlu1 %1440  ;;  %v6133_v9 = vpop.permute.xlu2 %1424 }
 0x268   :  { %8247 = vst [vmem:[#allocation50_spill] sm:$0xff] %v6133_v9  ;;  %1588 = vperm.xlu2 %4639, %v5904_v15   ;;  %v921_v9 = vmul.f32 1.442695, %v777_v19  ;;  %v8152_v19 = vmov 13  }
 0x26a   :  { %4652 = vset.pattern.permute.xlu0 %v8144_v62  ;;  %4812 = vpow2.f32 %v921_v9 }
 0x26b   :  { %1764 = vperm.xlu0 %4652, %v5898_v8   ;;  %4814 = vpow2.f32 %v953_v22  ;;  %v840_v22 = vmul.f32 %v6182_v54, %v5960_v16 }
 0x26c   :  { %1776 = vperm.xlu1 %4653, %v5891_v58   ;;  %4816 = vpow2.f32 %v969_v40 }
 0x26d   :  { %4818 = vpow2.f32 %v985_v2  ;;  %v1033_v2 = vmul.f32 1.442695, %v840_v22  ;;  %v782_v22 = vmul.f32 %v6139_v5, %v5917_v37 }
 0x26e   :  { %v6153_v62 = vpop.permute.xlu0 %1448  ;;  %4820 = vpow2.f32 %v1001_v36 }
 0x26f   :  { %v6155_v49 = vpop.permute.xlu2 %1436 }
 0x270   :  { %8252 = vst [vmem:[#allocation55_spill] sm:$0xff] %v6155_v49  ;;  %v6161_v34 = vpop.permute.xlu1 %1480  ;;  %4642 = vset.pattern.permute.xlu2 %v8254_v18  ;;  %v5399_v49 = vld [vmem:[#allocation2 + $0x8] sm:$0xff] }
 0x271   :  { %1616 = vperm.xlu2 %4642, %v5885_v53   ;;  %2299 = vmatmul.bf16.gmra.mxu1 %v5399_v49  ;;  %v831_v49 = vmul.f32 %v6172_v6, %v5960_v16 }
 0x273   :  { %1784 = vperm.xlu0 %4652, %v5912_v32   ;;  %v1017_v9 = vmul.f32 1.442695, %v831_v49 }
 0x274   :  { %4656 = vset.pattern.permute.xlu1 %v8152_v19  ;;  %v4811_v19 = vpop.eup %4810 }
 0x275   :  { %1816 = vperm.xlu1 %4656, %v5888_v56   ;;  %v4813_v27 = vpop.eup %4812  ;;  %v1264_v63 = vmul.f32 %v4811_v19, %v6046_v30  ;;  %4822 = vpow2.f32 %v1017_v9 }
 0x276   :  { %v1216_v28 = vmul.f32 %v4813_v27, %v6026_v4  ;;  %4824 = vpow2.f32 %v1033_v2  ;;  %v5400_v4 = vld [vmem:[#allocation2 + $0x10] sm:$0xff] }
 0x277   :  { %v6178_v10 = vpop.permute.xlu2 %1444  ;;  %v1477_v13 = vpop.permute.xlu0 %1476 }
 0x278   :  { %8257 = vst [vmem:[#allocation59_spill] sm:$0xff] %v6178_v10  ;;  %v6180_v20 = vpop.permute.xlu1 %1488  ;;  %v4815_v10 = vpop.eup %4814  ;;  %v1272_v49 = vadd.f32 %v1264_v63, %v1216_v28  ;;  %v791_v63 = vmul.f32 %v6136_v51, %v5917_v37 }
 0x279   :  { %8258 = vst [vmem:[#allocation60_spill] sm:$0xff] %v6180_v20  ;;  %1628 = vperm.xlu2 %4642, %v5901_v12   ;;  %v1312_v26 = vmul.f32 %v4815_v10, %v6067_v42  ;;  %v4817_v40 = vpop.eup %4816 }
 0x27a   :  { %v1360_v48 = vmul.f32 %v4817_v40, %v6088_v52  ;;  %v4819_v30 = vpop.eup %4818  ;;  %v6212_v40 = vld [vmem:[#allocation8 + $0x8] sm:$0xff] }
 0x27b   :  { %4655 = vset.pattern.permute.xlu0 %v8260_v45  ;;  %v1320_v36 = vadd.f32 %v1312_v26, %v1272_v49  ;;  %v1408_v18 = vmul.f32 %v4819_v30, %v6108_v3  ;;  %v4821_v10 = vpop.eup %4820  ;;  %v800_v3 = vmul.f32 %v6142_v21, %v5917_v37  ;;  %v8157_v26 = vmov 14  }
 0x27c   :  { %1812 = vperm.xlu0 %4655, %v5898_v8   ;;  %v1456_v42 = vmul.f32 %v4821_v10, %v6129_v7  ;;  %v4823_v9 = vpop.eup %4822  ;;  %v809_v7 = vmul.f32 %v6151_v24, %v5917_v37  ;;  %v931_v30 = vmul.f32 1.442695, %v782_v22 }
 0x27d   :  { %1824 = vperm.xlu1 %4656, %v5891_v58   ;;  %v1368_v52 = vadd.f32 %v1360_v48, %v1320_v36  ;;  %v1504_v28 = vmul.f32 %v4823_v9, %v1477_v13  ;;  %v947_v48 = vmul.f32 1.442695, %v791_v63  ;;  %v4825_v49 = vpop.eup %4824  ;;  %v818_v36 = vmul.f32 %v6159_v55, %v5917_v37 }
 0x27e   :  { %v963_v13 = vmul.f32 1.442695, %v800_v3  ;;  %v8264_v9 = vmov 10   ;;  %v6224_v63 = vperm.slane %v6212_v40, 0  ;;  %v979_v22 = vmul.f32 1.442695, %v809_v7 }
 0x27f   :  { %v6194_v59 = vpop.permute.xlu0 %1496  ;;  %v1416_v27 = vadd.f32 %v1408_v18, %v1368_v52  ;;  %4826 = vpow2.f32 %v947_v48 }
 0x280   :  { %v6196_v19 = vpop.permute.xlu2 %1472  ;;  %8265 = vst [vmem:[#allocation65_spill] sm:$0xff] %v6224_v63  ;;  %v849_v3 = vmul.f32 %v6224_v63, %v5960_v16  ;;  %4828 = vpow2.f32 %v931_v30 }
 0x281   :  { %8261 = vst [vmem:[#allocation62_spill] sm:$0xff] %v6196_v19  ;;  %v6199_v20 = vpop.permute.xlu1 %1528  ;;  %1636 = vperm.xlu2 %4642, %v5904_v15   ;;  %2304 = vmatmul.bf16.gmra.mxu1 %v5400_v4  ;;  %v1464_v2 = vadd.f32 %v1456_v42, %v1416_v27  ;;  %v827_v42 = vmul.f32 %v6167_v44, %v5917_v37  ;;  %4830 = vpow2.f32 %v963_v13 }
 0x282   :  { %4832 = vpow2.f32 %v979_v22  ;;  %v1049_v48 = vmul.f32 1.442695, %v849_v3  ;;  %v854_v3 = vmul.f32 %v6224_v63, %v5917_v37 }
 0x283   :  { %v1512_v4 = vadd.f32 %v1504_v28, %v1464_v2  ;;  %v8266_v28 = vmov 14   ;;  %v995_v2 = vmul.f32 1.442695, %v818_v36 }
 0x284   :  { %1832 = vperm.xlu0 %4655, %v5912_v32  }
 0x285   :  { %4659 = vset.pattern.permute.xlu1 %v8157_v26  ;;  %4834 = vpow2.f32 %v995_v2 }
 0x286   :  { %1864 = vperm.xlu1 %4659, %v5888_v56  }
 0x288   :  { %v6218_v10 = vpop.permute.xlu2 %1484  ;;  %v1525_v18 = vpop.permute.xlu0 %1524 }
 0x289   :  { %8262 = vst [vmem:[#allocation63_spill] sm:$0xff] %v6218_v10  ;;  %v6220_v52 = vpop.permute.xlu1 %1536  ;;  %4645 = vset.pattern.permute.xlu2 %v8264_v9  ;;  %v1552_v26 = vmul.f32 %v4825_v49, %v1525_v18  ;;  %v836_v49 = vmul.f32 %v6172_v6, %v5917_v37  ;;  %v1011_v18 = vmul.f32 1.442695, %v827_v42  ;;  %v5401_v42 = vld [vmem:[#allocation2 + $0x18] sm:$0xff] }
 0x28a   :  { %8263 = vst [vmem:[#allocation64_spill] sm:$0xff] %v6220_v52  ;;  %1664 = vperm.xlu2 %4645, %v5885_v53  }
 0x28b   :  { %v1560_v27 = vadd.f32 %v1552_v26, %v1512_v4  ;;  %v845_v26 = vmul.f32 %v6182_v54, %v5917_v37  ;;  %v4827_v4 = vpop.eup %4826  ;;  %v1027_v13 = vmul.f32 1.442695, %v836_v49  ;;  %4836 = vpow2.f32 %v1011_v18 }
 0x28c   :  { %4658 = vset.pattern.permute.xlu0 %v8266_v28  ;;  %v4829_v36 = vpop.eup %4828  ;;  %v1269_v10 = vmul.f32 %v4827_v4, %v6057_v35  ;;  %4838 = vpow2.f32 %v1049_v48  ;;  %v8159_v4 = vmov 15  }
 0x28d   :  { %1860 = vperm.xlu0 %4658, %v5898_v8   ;;  %v4831_v22 = vpop.eup %4830  ;;  %v1043_v9 = vmul.f32 1.442695, %v845_v26  ;;  %4840 = vpow2.f32 %v1027_v13  ;;  %v1059_v26 = vmul.f32 1.442695, %v854_v3 }
 0x28e   :  { %1872 = vperm.xlu1 %4659, %v5891_v58   ;;  %v1317_v2 = vmul.f32 %v4831_v22, %v6077_v14  ;;  %v4833_v49 = vpop.eup %4832 }
 0x28f   :  { %v1365_v18 = vmul.f32 %v4833_v49, %v6098_v0  ;;  %4842 = vpow2.f32 %v1043_v9  ;;  %v6260_v9 = vperm.slane %v6212_v40, 1 }
 0x290   :  { %v6238_v7 = vpop.permute.xlu2 %1492  ;;  %v1545_v30 = vpop.permute.xlu0 %1544  ;;  %4844 = vpow2.f32 %v1059_v26 }
 0x291   :  { %8267 = vst [vmem:[#allocation66_spill] sm:$0xff] %v6238_v7  ;;  %2309 = vmatmul.bf16.gmra.mxu1 %v5401_v42  ;;  %v1221_v7 = vmul.f32 %v4829_v36, %v6036_v25  ;;  %v4835_v42 = vpop.eup %4834  ;;  %v858_v49 = vmul.f32 %v6260_v9, %v5960_v16 }
 0x292   :  { %v6241_v19 = vpop.permute.xlu1 %1576  ;;  %1676 = vperm.xlu2 %4645, %v5901_v12   ;;  %v4837_v48 = vpop.eup %4836  ;;  %v1413_v25 = vmul.f32 %v4835_v42, %v6119_v41  ;;  %8270 = vst [vmem:[#allocation69_spill] sm:$0xff] %v6260_v9 }
 0x293   :  { %v1277_v35 = vadd.f32 %v1269_v10, %v1221_v7  ;;  %v4839_v14 = vpop.eup %4838  ;;  %v1461_v10 = vmul.f32 %v4837_v48, %v6153_v62  ;;  %v1065_v42 = vmul.f32 1.442695, %v858_v49 }
 0x295   :  { %1880 = vperm.xlu0 %4658, %v5912_v32   ;;  %v1325_v52 = vadd.f32 %v1317_v2, %v1277_v35  ;;  %4846 = vpow2.f32 %v1065_v42 }
 0x296   :  { %4662 = vset.pattern.permute.xlu1 %v8159_v4 }
 0x297   :  { %1912 = vperm.xlu1 %4662, %v5888_v56   ;;  %v1373_v22 = vadd.f32 %v1365_v18, %v1325_v52  ;;  %v4841_v56 = vpop.eup %4840 }
 0x298   :  { %v1509_v41 = vmul.f32 %v4841_v56, %v6194_v59  ;;  %v4843_v52 = vpop.eup %4842 }
 0x299   :  { %v6253_v36 = vpop.permute.xlu2 %1520  ;;  %v1573_v13 = vpop.permute.xlu0 %1572  ;;  %v1421_v3 = vadd.f32 %v1413_v25, %v1373_v22  ;;  %v1557_v35 = vmul.f32 %v4843_v52, %v1545_v30 }
 0x29a   :  { %8268 = vst [vmem:[#allocation67_spill] sm:$0xff] %v6253_v36  ;;  %v6256_v0 = vpop.permute.xlu1 %1584  ;;  %1684 = vperm.xlu2 %4645, %v5904_v15   ;;  %v1600_v7 = vmul.f32 %v4839_v14, %v1573_v13  ;;  %v4845_v48 = vpop.eup %4844 }
 0x29b   :  { %8269 = vst [vmem:[#allocation68_spill] sm:$0xff] %v6256_v0  ;;  %v1469_v62 = vadd.f32 %v1461_v10, %v1421_v3  ;;  %v695_v13 = vpop.f32.mrf.mxu2  ;;  %v8274_v10 = vmov 0   ;;  %v4847_v3 = vpop.eup %4846 }
 0x29c   :  { %v1608_v2 = vadd.f32 %v1600_v7, %v1560_v27  ;;  %v8272_v27 = vmov 11  }
 0x29d   :  { %4661 = vset.pattern.permute.xlu0 %v8159_v4  ;;  %v1517_v18 = vadd.f32 %v1509_v41, %v1469_v62  ;;  %v6288_v62 = vperm.slane %v6212_v40, 2 }
 0x29e   :  { %1908 = vperm.xlu0 %4661, %v5898_v8   ;;  %v6277_v8 = vmul.f32 %v5882_v31, %v695_v13 }
 0x29f   :  { %1920 = vperm.xlu1 %4662, %v5891_v58   ;;  %v1565_v59 = vadd.f32 %v1557_v35, %v1517_v18  ;;  %v863_v58 = vmul.f32 %v6260_v9, %v5917_v37  ;;  %8277 = vst [vmem:[#allocation74_spill] sm:$0xff] %v6288_v62  ;;  %v8278_v35 = vmov 1   ;;  %v872_v13 = vmul.f32 %v6288_v62, %v5917_v37 }
 0x2a1   :  { %v6268_v26 = vpop.permute.xlu2 %1532  ;;  %v1593_v25 = vpop.permute.xlu0 %1592  ;;  %v1075_v7 = vmul.f32 1.442695, %v863_v58  ;;  %v8281_v58 = vmov 2  }
 0x2a2   :  { %8271 = vst [vmem:[#allocation70_spill] sm:$0xff] %v6268_v26  ;;  %4648 = vset.pattern.permute.xlu2 %v8272_v27  ;;  %v1605_v14 = vmul.f32 %v4845_v48, %v1593_v25  ;;  %v6342_v26 = vperm.slane %v6212_v40, 4 }
 0x2a3   :  { %v6271_v22 = vpop.permute.xlu1 %1624  ;;  %1712 = vperm.xlu2 %4648, %v5885_v53   ;;  %4848 = vpow2.f32 %v1075_v7  ;;  %v1091_v7 = vmul.f32 1.442695, %v872_v13  ;;  %v4523_v13 = vld [vmem:[#allocation7 + $0x30] sm:$0xff] }
 0x2a4   :  { %8273 = vst [vmem:[#allocation71_spill] sm:$0xff] %v6271_v22  ;;  %v1613_v30 = vadd.f32 %v1605_v14, %v1565_v59 }
 0x2a5   :  { %8293 = vst [vmem:[#allocation85_spill] sm:$0xff] %v6342_v26 }
 0x2a6   :  { %1928 = vperm.xlu0 %4661, %v5912_v32   ;;  %v867_v32 = vmul.f32 %v6288_v62, %v5960_v16 }
 0x2a7   :  { %4663 = vset.pattern.permute.xlu1 %v8274_v10 }
 0x2a8   :  { %1212 = vperm.xlu1 %4663, %v6277_v8   ;;  %v1081_v18 = vmul.f32 1.442695, %v867_v32  ;;  %v8283_v32 = vmov 12  }
 0x2a9   :  { %v6282_v56 = vpop.permute.xlu2 %1540  ;;  %v4849_v42 = vpop.eup %4848 }
 0x2aa   :  { %8275 = vst [vmem:[#allocation72_spill] sm:$0xff] %v6282_v56  ;;  %v1621_v41 = vpop.permute.xlu0 %1620  ;;  %4850 = vpow2.f32 %v1081_v18  ;;  %v6311_v18 = vperm.slane %v6212_v40, 3  ;;  %v8287_v56 = vmov 3  }
 0x2ab   :  { %v6284_v49 = vpop.permute.xlu1 %1632  ;;  %1724 = vperm.xlu2 %4648, %v5901_v12   ;;  %v1648_v52 = vmul.f32 %v4847_v3, %v1621_v41  ;;  %v4524_v3 = vld [vmem:[#allocation7 + $0x38] sm:$0xff]  ;;  %4852 = vpow2.f32 %v1091_v7 }
 0x2ac   :  { %8276 = vst [vmem:[#allocation73_spill] sm:$0xff] %v6284_v49  ;;  %2027 = vmatpush.bf16.msrb.mxu3 %v4524_v3 }
 0x2ad   :  { %v1656_v31 = vadd.f32 %v1648_v52, %v1608_v2  ;;  %8285 = vst [vmem:[#allocation79_spill] sm:$0xff] %v6311_v18 }
 0x2ae   :  { %4680 = vset.pattern.permute.xlu0 %v8274_v10  ;;  %v805_v10 = vmul.f32 %v6151_v24, %v5951_v57 }
 0x2b0   :  { %4664 = vset.pattern.permute.xlu1 %v8278_v35  ;;  %v4851_v52 = vpop.eup %4850  ;;  %2028 = vmatpush.bf16.msrb.mxu3 %v4523_v13  ;;  %v780_v13 = vmul.f32 %v6139_v5, %v5936_v46 }
 0x2b1   :  { %1260 = vperm.xlu1 %4664, %v6277_v8   ;;  %v4853_v37 = vpop.eup %4852 }
 0x2b2   :  { %v6295_v48 = vpop.permute.xlu2 %1568  ;;  %v1641_v25 = vpop.permute.xlu0 %1640 }
 0x2b3   :  { %8279 = vst [vmem:[#allocation75_spill] sm:$0xff] %v6295_v48  ;;  %1732 = vperm.xlu2 %4648, %v5904_v15   ;;  %v1653_v59 = vmul.f32 %v4849_v42, %v1641_v25 }
 0x2b4   :  { %v6298_v14 = vpop.permute.xlu1 %1672 }
 0x2b5   :  { %8280 = vst [vmem:[#allocation76_spill] sm:$0xff] %v6298_v14  ;;  %v1661_v2 = vadd.f32 %v1653_v59, %v1613_v30  ;;  %v876_v59 = vmul.f32 %v6311_v18, %v5960_v16 }
 0x2b7   :  { %v1097_v3 = vmul.f32 1.442695, %v876_v59  ;;  %v789_v59 = vmul.f32 %v6136_v51, %v5936_v46 }
 0x2b9   :  { %4665 = vset.pattern.permute.xlu1 %v8281_v58  ;;  %v4522_v58 = vld [vmem:[#allocation7 + $0x28] sm:$0xff]  ;;  %4854 = vpow2.f32 %v1097_v3 }
 0x2ba   :  { %v6303_v41 = vpop.permute.xlu2 %1580  ;;  %1308 = vperm.xlu1 %4665, %v6277_v8   ;;  %2029 = vmatpush.bf16.msrb.mxu3 %v4522_v58 }
 0x2bb   :  { %8282 = vst [vmem:[#allocation77_spill] sm:$0xff] %v6303_v41  ;;  %4651 = vset.pattern.permute.xlu2 %v8283_v32  ;;  %v1669_v4 = vpop.permute.xlu0 %1668 }
 0x2bc   :  { %v6307_v42 = vpop.permute.xlu1 %1680  ;;  %1760 = vperm.xlu2 %4651, %v5885_v53   ;;  %v1696_v30 = vmul.f32 %v4851_v52, %v1669_v4 }
 0x2bd   :  { %8284 = vst [vmem:[#allocation78_spill] sm:$0xff] %v6307_v42 }
 0x2be   :  { %v1704_v25 = vadd.f32 %v1696_v30, %v1656_v31  ;;  %v4521_v30 = vld [vmem:[#allocation7 + $0x20] sm:$0xff] }
 0x2bf   :  { %2030 = vmatpush.bf16.msrb.mxu3 %v4521_v30  ;;  %v4855_v58 = vpop.eup %4854 }
 0x2c2   :  { %v6315_v35 = vpop.permute.xlu2 %1588  ;;  %4666 = vset.pattern.permute.xlu1 %v8287_v56  ;;  %v4520_v56 = vld [vmem:[#allocation7 + $0x18] sm:$0xff] }
 0x2c3   :  { %8286 = vst [vmem:[#allocation80_spill] sm:$0xff] %v6315_v35  ;;  %1356 = vperm.xlu1 %4666, %v6277_v8   ;;  %v1689_v4 = vpop.permute.xlu0 %1688  ;;  %v778_v35 = vmul.f32 %v6139_v5, %v5951_v57  ;;  %2031 = vmatpush.bf16.msrb.mxu3 %v4520_v56  ;;  %v4519_v5 = vld [vmem:[#allocation7 + $0x10] sm:$0xff]  ;;  %v807_v56 = vmul.f32 %v6151_v24, %v5936_v46 }
 0x2c4   :  { %1772 = vperm.xlu2 %4651, %v5901_v12   ;;  %v1701_v52 = vmul.f32 %v4853_v37, %v1689_v4  ;;  %v8291_v37 = vmov 4   ;;  %v927_v4 = vmul.f32 1.442695, %v780_v13  ;;  %v885_v13 = vmul.f32 %v6342_v26, %v5960_v16 }
 0x2c5   :  { %v6320_v31 = vpop.permute.xlu1 %1720  ;;  %v923_v48 = vmul.f32 1.442695, %v778_v35  ;;  %v814_v35 = vmul.f32 %v6159_v55, %v5951_v57 }
 0x2c6   :  { %8288 = vst [vmem:[#allocation81_spill] sm:$0xff] %v6320_v31  ;;  %v6322_v7 = vadd.f32 %v1701_v52, %v1661_v2  ;;  %v787_v2 = vmul.f32 %v6136_v51, %v5951_v57  ;;  %v796_v52 = vmul.f32 %v6142_v21, %v5951_v57  ;;  %4856 = vpow2.f32 %v927_v4 }
 0x2c7   :  { %2032 = vmatpush.bf16.msrb.mxu3 %v4519_v5  ;;  %v971_v4 = vmul.f32 1.442695, %v805_v10  ;;  %v8295_v5 = vmov 5   ;;  %v832_v10 = vmul.f32 %v6172_v6, %v5951_v57 }
 0x2c8   :  { %8289 = vst [vmem:[#allocation82_spill] sm:$0xff] %v6322_v7  ;;  %v939_v51 = vmul.f32 1.442695, %v787_v2 }
 0x2cb   :  { %v6330_v41 = vpop.permute.xlu2 %1616  ;;  %4667 = vset.pattern.permute.xlu1 %v8291_v37  ;;  %v943_v37 = vmul.f32 1.442695, %v789_v59 }
 0x2cc   :  { %8290 = vst [vmem:[#allocation83_spill] sm:$0xff] %v6330_v41  ;;  %1780 = vperm.xlu2 %4651, %v5904_v15   ;;  %1404 = vperm.xlu1 %4667, %v6277_v8   ;;  %v1717_v3 = vpop.permute.xlu0 %1716  ;;  %v798_v41 = vmul.f32 %v6142_v21, %v5936_v46 }
 0x2cd   :  { %v6339_v30 = vpop.permute.xlu1 %1728  ;;  %v1744_v7 = vmul.f32 %v4855_v58, %v1717_v3  ;;  %v955_v58 = vmul.f32 1.442695, %v796_v52  ;;  %4858 = vpow2.f32 %v943_v37  ;;  %v1113_v3 = vmul.f32 1.442695, %v885_v13 }
 0x2ce   :  { %8292 = vst [vmem:[#allocation84_spill] sm:$0xff] %v6339_v30  ;;  %v959_v59 = vmul.f32 1.442695, %v798_v41  ;;  %4860 = vpow2.f32 %v923_v48  ;;  %v823_v52 = vmul.f32 %v6167_v44, %v5951_v57  ;;  %v975_v37 = vmul.f32 1.442695, %v807_v56  ;;  %v4517_v56 = vld [vmem:[#allocation7] sm:$0xff] }
 0x2cf   :  { %v6346_v36 = vadd.f32 %v1744_v7, %v1704_v25  ;;  %v4518_v25 = vld [vmem:[#allocation7 + $0x8] sm:$0xff]  ;;  %v816_v7 = vmul.f32 %v6159_v55, %v5936_v46  ;;  %4862 = vpow2.f32 %v939_v51  ;;  %v825_v48 = vmul.f32 %v6167_v44, %v5936_v46 }
 0x2d0   :  { %4864 = vpow2.f32 %v955_v58  ;;  %v987_v51 = vmul.f32 1.442695, %v814_v35  ;;  %2033 = vmatpush.bf16.msrb.mxu3 %v4518_v25  ;;  %v834_v58 = vmul.f32 %v6172_v6, %v5936_v46  ;;  %v1003_v44 = vmul.f32 1.442695, %v823_v52 }
 0x2d1   :  { %4866 = vpow2.f32 %v959_v59  ;;  %v1007_v35 = vmul.f32 1.442695, %v825_v48  ;;  %v841_v55 = vmul.f32 %v6182_v54, %v5951_v57  ;;  %v843_v6 = vmul.f32 %v6182_v54, %v5936_v46 }
 0x2d2   :  { %4868 = vpow2.f32 %v1113_v3  ;;  %v850_v52 = vmul.f32 %v6224_v63, %v5951_v57  ;;  %v8299_v54 = vmov 6  }
 0x2d3   :  { %v6358_v2 = vpop.permute.xlu2 %1628  ;;  %4870 = vpow2.f32 %v971_v4  ;;  %v1023_v4 = vmul.f32 1.442695, %v834_v58  ;;  %v1039_v21 = vmul.f32 1.442695, %v843_v6  ;;  %v2295_v30 = vpop.f32.mrf.mxu1  ;;  %v870_v6 = vmul.f32 %v6288_v62, %v5936_v46 }
 0x2d4   :  { %8294 = vst [vmem:[#allocation86_spill] sm:$0xff] %v6358_v2  ;;  %4654 = vset.pattern.permute.xlu2 %v8260_v45  ;;  %4668 = vset.pattern.permute.xlu1 %v8295_v5  ;;  %v6364_v41 = vpop.permute.xlu0 %1736  ;;  %v6374_v5 = vpop.eup %4856  ;;  %4872 = vpow2.f32 %v975_v37  ;;  %v852_v37 = vmul.f32 %v6224_v63, %v5936_v46  ;;  %v859_v63 = vmul.f32 %v6260_v9, %v5951_v57 }
 0x2d5   :  { %8296 = vst [vmem:[#allocation87_spill] sm:$0xff] %v6364_v41  ;;  %1808 = vperm.xlu2 %4654, %v5885_v53   ;;  %1452 = vperm.xlu1 %4668, %v6277_v8   ;;  %v991_v41 = vmul.f32 1.442695, %v816_v7  ;;  %v6378_v2 = vpop.eup %4858  ;;  %4874 = vpow2.f32 %v987_v51  ;;  %v1019_v7 = vmul.f32 1.442695, %v832_v10 }
 0x2d6   :  { %v6372_v13 = vpop.permute.xlu1 %1768  ;;  %v6380_v59 = vpop.eup %4860  ;;  %2034 = vmatpush.bf16.msrb.mxu3 %v4517_v56  ;;  %v131_v51 = vld [vmem:[%s8096_s1] sm:$0xf]  ;;  %v1035_v56 = vmul.f32 1.442695, %v841_v55  ;;  %v6418_v55 = vperm.slane %v6212_v40, 5 }
 0x2d7   :  { %8297 = vst [vmem:[#allocation88_spill] sm:$0xff] %v6372_v13  ;;  %v6384_v25 = vpop.eup %4862  ;;  %4876 = vpow2.f32 %v991_v41  ;;  %v6404_v41 = vld [vmem:[%s8099_s4 + $0x1] ss:$0 sm:$0xff]  ;;  %v1055_v27 = vmul.f32 1.442695, %v852_v37  ;;  %v888_v13 = vmul.f32 %v6342_v26, %v5936_v46 }
 0x2d8   :  { %v6388_v3 = vpop.eup %4864  ;;  %4878 = vpow2.f32 %v1003_v44  ;;  %8301 = vst [vmem:[#allocation91_spill] sm:$0xff] %v6418_v55  ;;  %v1067_v37 = vmul.f32 1.442695, %v859_v63  ;;  %v897_v22 = vmul.f32 %v6418_v55, %v5936_v46 }
 0x2d9   :  { %v6399_v10 = vpop.eup %4866  ;;  %4880 = vpow2.f32 %v1007_v35  ;;  %2035 = vmatmul.bf16.vlgmr.msrb.gmra.mxu3 %v131_v51  ;;  %v894_v51 = vmul.f32 %v6418_v55, %v5960_v16 }
 0x2da   :  { %v4869_v58 = vpop.eup %4868  ;;  %4882 = vpow2.f32 %v1019_v7 }
 0x2db   :  { %v6394_v48 = vpop.permute.xlu2 %1636  ;;  %v6412_v44 = vpop.eup %4870  ;;  %4884 = vpow2.f32 %v1023_v4  ;;  %v4310_v4 = vld [vmem:[%s8101_s6 + $0xf8] sm:$0xff] }
 0x2dc   :  { %8298 = vst [vmem:[#allocation89_spill] sm:$0xff] %v6394_v48  ;;  %v861_v48 = vmul.f32 %v6260_v9, %v5936_v46  ;;  %v6420_v35 = vpop.eup %4872  ;;  %v1051_v9 = vmul.f32 1.442695, %v850_v52  ;;  %4886 = vpow2.f32 %v1035_v56  ;;  %2482 = vmatpush.msrb.mxu2 %v4310_v4  ;;  %v6457_v4 = vperm.slane %v6212_v40, 6 }
 0x2dd   :  { %1820 = vperm.xlu2 %4654, %v5901_v12   ;;  %4669 = vset.pattern.permute.xlu1 %v8299_v54  ;;  %v1765_v24 = vpop.permute.xlu0 %1764  ;;  %v868_v54 = vmul.f32 %v6288_v62, %v5951_v57  ;;  %v6424_v7 = vpop.eup %4874  ;;  %v877_v62 = vmul.f32 %v6311_v18, %v5951_v57  ;;  %4888 = vpow2.f32 %v1039_v21 }
 0x2de   :  { %v6414_v45 = vpop.permute.xlu1 %1776  ;;  %v1792_v32 = vmul.f32 %v4869_v58, %v1765_v24  ;;  %1500 = vperm.xlu1 %4669, %v6277_v8   ;;  %v6434_v58 = vadd.f32 %v6404_v41, %v2295_v30  ;;  %v6439_v52 = vpop.eup %4876  ;;  %v886_v30 = vmul.f32 %v6342_v26, %v5951_v57  ;;  %8303 = vst [vmem:[#allocation93_spill] sm:$0xff] %v6457_v4  ;;  %4890 = vpow2.f32 %v1051_v9 }
 0x2df   :  { %8300 = vst [vmem:[#allocation90_spill] sm:$0xff] %v6414_v45  ;;  %v1071_v45 = vmul.f32 1.442695, %v861_v48  ;;  %v1083_v63 = vmul.f32 1.442695, %v868_v54  ;;  %v895_v48 = vmul.f32 %v6418_v55, %v5951_v57  ;;  %4892 = vpow2.f32 %v1055_v27 }
 0x2e0   :  { %v6429_v24 = vadd.f32 %v1792_v32, %v6346_v36  ;;  %8302 = vst [vmem:[#allocation92_spill] sm:$0xff] %v6434_v58  ;;  %v6443_v36 = vpop.eup %4878  ;;  %v879_v32 = vmul.f32 %v6311_v18, %v5936_v46  ;;  %v2315_v42 = vsub.f32 0.0, %v6434_v58  ;;  %v4309_v18 = vld [vmem:[%s8101_s6 + $0xf0] sm:$0xff]  ;;  %v1087_v26 = vmul.f32 1.442695, %v870_v6 }
 0x2e1   :  { %v6452_v56 = vpop.eup %4880  ;;  %v1129_v58 = vmul.f32 1.442695, %v894_v51  ;;  %2483 = vmatpush.msrb.mxu2 %v4309_v18  ;;  %v6468_v21 = vmul.f32 1.442695, %v877_v62  ;;  %v906_v9 = vmul.f32 %v6457_v4, %v5936_v46  ;;  %v6479_v51 = vmul.f32 1.442695, %v886_v30 }
 0x2e2   :  { %v6462_v49 = vpop.eup %4882  ;;  %v2323_v14 = vmul.f32 1.442695, %v2315_v42  ;;  %v6477_v6 = vmul.f32 1.442695, %v879_v32  ;;  %v6481_v42 = vmul.f32 1.442695, %v888_v13  ;;  %v904_v32 = vmul.f32 %v6457_v4, %v5951_v57  ;;  %v2297_v13 = vpop.f32.mrf.mxu1 }
 0x2e3   :  { %v6466_v54 = vpop.eup %4884  ;;  %v8306_v18 = vmov 7   ;;  %v6486_v62 = vmul.f32 1.442695, %v895_v48  ;;  %v903_v30 = vmul.f32 %v6457_v4, %v5960_v16  ;;  %v6507_v55 = vmul.f32 1.442695, %v897_v22 }
 0x2e4   :  { %v6464_v31 = vpop.permute.xlu2 %1664  ;;  %4894 = vpow2.f32 %v2323_v14  ;;  %v6484_v27 = vpop.eup %4886  ;;  %v6498_v14 = vadd.f32 %v6404_v41, %v2297_v13  ;;  %v6509_v4 = vmul.f32 1.442695, %v906_v9  ;;  %v1361_v13 = vmul.f32 %v6412_v44, %v6079_v47 }
 0x2e5   :  { %8304 = vst [vmem:[#allocation94_spill] sm:$0xff] %v6464_v31  ;;  %1828 = vperm.xlu2 %4654, %v5904_v15   ;;  %v6471_v0 = vpop.permute.xlu0 %1784  ;;  %4896 = vpow2.f32 %v1067_v37  ;;  %v6501_v37 = vperm.slane %v6212_v40, 7  ;;  %v6503_v48 = vpop.eup %4888  ;;  %v1267_v31 = vmul.f32 %v6378_v2, %v6048_v33  ;;  %v6532_v2 = vmul.f32 1.442695, %v904_v32 }
 0x2e6   :  { %8305 = vst [vmem:[#allocation95_spill] sm:$0xff] %v6471_v0  ;;  %4670 = vset.pattern.permute.xlu1 %v8306_v18  ;;  %v1265_v18 = vmul.f32 %v6384_v25, %v6038_v17  ;;  %4898 = vpow2.f32 %v1129_v58  ;;  %v1217_v17 = vmul.f32 %v6380_v59, %v6017_v29  ;;  %v1313_v25 = vmul.f32 %v6388_v3, %v6059_v39  ;;  %v4308_v58 = vld [vmem:[%s8101_s6 + $0xe8] sm:$0xff] }
 0x2e7   :  { %v6488_v0 = vpop.permute.xlu1 %1816  ;;  %1548 = vperm.xlu1 %4670, %v6277_v8   ;;  %8308 = vst [vmem:[#allocation97_spill] sm:$0xff] %v6498_v14  ;;  %4900 = vpow2.f32 %v1071_v45  ;;  %v2316_v40 = vsub.f32 0.0, %v6498_v14  ;;  %v4307_v45 = vld [vmem:[%s8101_s6 + $0xe0] sm:$0xff]  ;;  %v915_v33 = vmul.f32 %v6501_v37, %v5936_v46  ;;  %v1219_v29 = vmul.f32 %v6374_v5, %v5996_v1  ;;  %2484 = vmatpush.msrb.mxu2 %v4308_v58  ;;  %v4306_v1 = vld [vmem:[%s8101_s6 + $0xd8] sm:$0xff] }
 0x2e8   :  { %8307 = vst [vmem:[#allocation96_spill] sm:$0xff] %v6488_v0  ;;  %v6511_v0 = vpop.eup %4890  ;;  %v1315_v39 = vmul.f32 %v6399_v10, %v6069_v43  ;;  %v6534_v59 = vmul.f32 1.442695, %v903_v30  ;;  %v1273_v9 = vadd.f32 %v1265_v18, %v1217_v17  ;;  %4902 = vpow2.f32 %v1083_v63 }
 0x2e9   :  { %v6526_v22 = vpop.eup %4892  ;;  %v2325_v14 = vmul.f32 1.442695, %v2316_v40  ;;  %v1275_v43 = vadd.f32 %v1267_v31, %v1219_v29  ;;  %v1363_v10 = vmul.f32 %v6420_v35, %v6090_v60  ;;  %4904 = vpow2.f32 %v1087_v26  ;;  %2485 = vmatpush.msrb.mxu2 %v4307_v45  ;;  %v4305_v31 = vld [vmem:[%s8101_s6 + $0xd0] sm:$0xff]  ;;  %v8309_v29 = vld [vmem:[#allocation60_spill] sm:$0xff] }
 0x2ea   :  { %v4895_v3 = vpop.eup %4894  ;;  %v1321_v44 = vadd.f32 %v1313_v25, %v1273_v9  ;;  %v1409_v63 = vmul.f32 %v6424_v7, %v6100_v38  ;;  %v6556_v60 = vmul.f32 1.442695, %v915_v33  ;;  %v1411_v30 = vmul.f32 %v6439_v52, %v6110_v11 }
 0x2eb   :  { %v6543_v5 = vpop.eup %4896  ;;  %v6548_v18 = vadd.f32 1.0, %v4895_v3  ;;  %4906 = vpow2.f32 %v2325_v14  ;;  %v1323_v35 = vadd.f32 %v1315_v39, %v1275_v43  ;;  %2486 = vmatpush.msrb.mxu2 %v4306_v1  ;;  %v1457_v7 = vmul.f32 %v6443_v36, %v6123_v50 }
 0x2ec   :  { %v6538_v46 = vpop.permute.xlu2 %1676  ;;  %v4899_v47 = vpop.eup %4898  ;;  %v1369_v38 = vadd.f32 %v1361_v13, %v1321_v44  ;;  %v913_v14 = vmul.f32 %v6501_v37, %v5951_v57  ;;  %v1459_v40 = vmul.f32 %v6452_v56, %v6131_v61  ;;  %v4304_v57 = vld [vmem:[%s8101_s6 + $0xc8] sm:$0xff]  ;;  %v4303_v61 = vld [vmem:[%s8101_s6 + $0xc0] sm:$0xff]  ;;  %v1507_v39 = vmul.f32 %v6466_v54, %v8309_v29  ;;  %v4302_v13 = vld [vmem:[%s8101_s6 + $0xb8] sm:$0xff] }
 0x2ed   :  { %4657 = vset.pattern.permute.xlu2 %v8266_v28  ;;  %v6558_v26 = vpop.eup %4900  ;;  %4908 = vrcp.f32 %v6548_v18  ;;  %v1371_v52 = vadd.f32 %v1363_v10, %v1323_v35  ;;  %2487 = vmatpush.msrb.mxu2 %v4305_v31  ;;  %v1553_v3 = vmul.f32 %v6484_v27, %v6199_v20  ;;  %v8313_v35 = vld [vmem:[#allocation71_spill] sm:$0xff]  ;;  %vm2352_vm0 = vweird.f32 %v6548_v18 }
 0x2ee   :  { %1856 = vperm.xlu2 %4657, %v5885_v53   ;;  %v1813_v32 = vpop.permute.xlu0 %1812  ;;  %4910 = vpow2.f32 %v6468_v21  ;;  %v2300_v11 = vpop.f32.mrf.mxu1  ;;  %v1417_v36 = vadd.f32 %v1409_v63, %v1369_v38  ;;  %v1505_v21 = vmul.f32 %v6462_v49, %v6161_v34  ;;  %v8312_v63 = vld [vmem:[#allocation64_spill] sm:$0xff] }
 0x2ef   :  { %v6562_v17 = vpop.permute.xlu1 %1824  ;;  %v1840_v25 = vmul.f32 %v4899_v47, %v1813_v32  ;;  %4671 = vset.pattern.permute.xlu1 %v8245_v23  ;;  %v6578_v45 = vadd.f32 %v6404_v41, %v2300_v11  ;;  %v4903_v50 = vpop.eup %4902  ;;  %4912 = vpow2.f32 %v6477_v6  ;;  %v1419_v33 = vadd.f32 %v1411_v30, %v1371_v52  ;;  %2488 = vmatpush.msrb.mxu2 %v4304_v57 }
 0x2f0   :  { %1596 = vperm.xlu1 %4671, %v6277_v8   ;;  %v6591_v56 = vpop.eup %4904  ;;  %4914 = vpow2.f32 %v6479_v51  ;;  %v1465_v6 = vadd.f32 %v1457_v7, %v1417_v36  ;;  %v1555_v32 = vmul.f32 %v6503_v48, %v8312_v63  ;;  %v1649_v30 = vmul.f32 %v6543_v5, %v8313_v35  ;;  %v8315_v48 = vld [vmem:[#allocation68_spill] sm:$0xff] }
 0x2f1   :  { %v6575_v58 = vadd.f32 %v1840_v25, %v6429_v24  ;;  %v912_v24 = vmul.f32 %v6501_v37, %v5960_v16  ;;  %v2317_v34 = vsub.f32 0.0, %v6578_v45  ;;  %v4907_v49 = vpop.eup %4906  ;;  %4916 = vpow2.f32 %v6481_v42  ;;  %2489 = vmatpush.msrb.mxu2 %v4303_v61  ;;  %v8316_v36 = vld [vmem:[#allocation76_spill] sm:$0xff] }
 0x2f2   :  { %v1163_v16 = vmul.f32 1.442695, %v913_v14  ;;  %v1467_v51 = vadd.f32 %v1459_v40, %v1419_v33  ;;  %4918 = vpow2.f32 %v6486_v62  ;;  %v6608_v1 = vadd.f32 1.0, %v4907_v49  ;;  %v4301_v62 = vld [vmem:[%s8101_s6 + $0xb0] sm:$0xff] }
 0x2f3   :  { %v6605_v54 = vpop.eup %4908  ;;  %v2327_v43 = vmul.f32 1.442695, %v2317_v34  ;;  %v1513_v20 = vadd.f32 %v1505_v21, %v1465_v6  ;;  %v1601_v42 = vmul.f32 %v6511_v0, %v6241_v19  ;;  %4920 = vpow2.f32 %v6534_v59  ;;  %2490 = vmatpush.msrb.mxu2 %v4302_v13  ;;  %v8317_v6 = vld [vmem:[#allocation81_spill] sm:$0xff] }
 0x2f4   :  { %v6600_v9 = vpop.permute.xlu2 %1684  ;;  %v4911_v10 = vpop.eup %4910  ;;  %v2348_v47 = vmul.f32 %v6605_v54, %v6548_v18  ;;  %v1515_v44 = vadd.f32 %v1507_v39, %v1467_v51  ;;  %4922 = vrcp.f32 %v6608_v1  ;;  %v6624_v19 = vmul.f32 1.442695, %v912_v24  ;;  %v4299_v24 = vld [vmem:[%s8101_s6 + $0xa0] sm:$0xff] }
 0x2f5   :  { %8310 = vst [vmem:[#allocation60_spill] sm:$0xff] %v6600_v9  ;;  %v6626_v0 = vpop.eup %4912  ;;  %v1561_v31 = vadd.f32 %v1553_v3, %v1513_v20  ;;  %v8314_v25 = vmov 9   ;;  %4924 = vpow2.f32 %v2327_v43  ;;  %v1603_v11 = vmul.f32 %v6526_v22, %v8315_v48  ;;  %2491 = vmatpush.msrb.mxu2 %v4301_v62  ;;  %v4300_v22 = vld [vmem:[%s8101_s6 + $0xa8] sm:$0xff] }
 0x2f6   :  { %1868 = vperm.xlu2 %4657, %v5901_v12   ;;  %v6613_v27 = vpop.permute.xlu0 %1832  ;;  %v2349_v38 = vsub.f32 1.0, %v2348_v47  ;;  %v2302_v7 = vpop.f32.mrf.mxu1  ;;  %vm2353_vm1 = vweird.f32 %v6605_v54  ;;  %v1697_v21 = vmul.f32 %v4903_v50, %v8316_v36  ;;  %v2358_v61 = vand.u32 2147483648, %v6548_v18 }
 0x2f7   :  { %8311 = vst [vmem:[#allocation98_spill] sm:$0xff] %v6613_v27  ;;  %v4915_v14 = vpop.eup %4914  ;;  %v6639_v5 = vadd.f32 %v6404_v41, %v2302_v7  ;;  %v1609_v40 = vadd.f32 %v1601_v42, %v1561_v31  ;;  %v1563_v29 = vadd.f32 %v1555_v32, %v1515_v44  ;;  %4926 = vpow2.f32 %v6507_v55  ;;  %2492 = vmatpush.msrb.mxu2 %v4300_v22  ;;  %vm6662_vm2 = vmor %vm2352_vm0, %vm2353_vm1  ;;  %v4298_v55 = vld [vmem:[%s8101_s6 + $0x98] sm:$0xff]  ;;  %v8324_v7 = vld [vmem:[#allocation88_spill] sm:$0xff] }
 0x2f8   :  { %v6630_v59 = vpop.permute.xlu1 %1864  ;;  %4672 = vset.pattern.permute.xlu1 %v8314_v25  ;;  %v6641_v52 = vpop.eup %4916  ;;  %v2350_v57 = vmul.f32 %v6605_v54, %v2349_v38  ;;  %v2356_v39 = vand.u32 2147483647, %v6548_v18  ;;  %v1745_v3 = vmul.f32 %v4911_v10, %v8317_v6  ;;  %4928 = vpow2.f32 %v6532_v2  ;;  %v8320_v10 = vld [vmem:[#allocation73_spill] sm:$0xff]  ;;  %v8321_v44 = vld [vmem:[#allocation78_spill] sm:$0xff] }
 0x2f9   :  { %1644 = vperm.xlu1 %4672, %v6277_v8   ;;  %v4919_v33 = vpop.eup %4918  ;;  %v2318_v50 = vsub.f32 0.0, %v6639_v5  ;;  %v1657_v49 = vadd.f32 %v1649_v30, %v1609_v40  ;;  %v1611_v20 = vadd.f32 %v1603_v11, %v1563_v29  ;;  %v1651_v2 = vmul.f32 %v6558_v26, %v8320_v10  ;;  %2493 = vmatpush.msrb.mxu2 %v4299_v24  ;;  %v4297_v26 = vld [vmem:[%s8101_s6 + $0x90] sm:$0xff] }
 0x2fa   :  { %v4921_v34 = vpop.eup %4920  ;;  %v2351_v13 = vadd.f32 %v6605_v54, %v2350_v57  ;;  %4930 = vpow2.f32 %v1163_v16  ;;  %v1699_v63 = vmul.f32 %v6591_v56, %v8321_v44  ;;  %v2359_v32 = vor.u32 1.1754944e-38, %v2358_v61  ;;  %v8325_v61 = vld [vmem:[#allocation96_spill] sm:$0xff] }
 0x2fb   :  { %v6669_v43 = vpop.eup %4922  ;;  %v2329_v47 = vmul.f32 1.442695, %v2318_v50  ;;  %v1705_v62 = vadd.f32 %v1697_v21, %v1657_v49  ;;  %vm6686_vm3 = vcmp.eq.f32.partialorder %v2356_v39, 8.507059e+37  ;;  %2494 = vmatpush.msrb.mxu2 %v4298_v55  ;;  %v1793_v48 = vmul.f32 %v4915_v14, %v8324_v7  ;;  %v8327_v49 = vld [vmem:[#allocation84_spill] sm:$0xff] }
 0x2fc   :  { %v4925_v18 = vpop.eup %4924  ;;  %v2363_v31 = vmul.f32 %v6669_v43, %v6608_v1  ;;  %v2355_v16 = vsel %vm6662_vm2, %v6605_v54, %v2351_v13  ;;  %v1841_v54 = vmul.f32 %v4919_v33, %v8325_v61  ;;  %v8326_v22 = vmov 10  }
 0x2fd   :  { %v6673_v42 = vpop.permute.xlu2 %1712  ;;  %v6690_v56 = vadd.f32 1.0, %v4925_v18  ;;  %4932 = vpow2.f32 %v2329_v47  ;;  %v1753_v38 = vadd.f32 %v1745_v3, %v1705_v62  ;;  %v4927_v57 = vpop.eup %4926  ;;  %vm2367_vm4 = vweird.f32 %v6608_v1  ;;  %2495 = vmatpush.msrb.mxu2 %v4297_v26 }
 0x2fe   :  { %1876 = vperm.xlu2 %4657, %v5904_v15   ;;  %v2364_v36 = vsub.f32 1.0, %v2363_v31  ;;  %v2305_v21 = vpop.f32.mrf.mxu1  ;;  %vm2368_vm5 = vweird.f32 %v6669_v43  ;;  %v4929_v24 = vpop.eup %4928  ;;  %v2360_v14 = vsel %vm6686_vm3, %v2359_v32, %v2355_v16  ;;  %v2373_v39 = vand.u32 2147483648, %v6608_v1 }
 0x2ff   :  { %v1861_v30 = vpop.permute.xlu0 %1860  ;;  %4934 = vrcp.f32 %v6690_v56  ;;  %v1747_v6 = vmul.f32 %v6626_v0, %v8327_v49  ;;  %v2371_v3 = vand.u32 2147483647, %v6608_v1  ;;  %v6712_v13 = vadd.f32 %v6404_v41, %v2305_v21  ;;  %vm6721_vm6 = vmor %vm2367_vm4, %vm2368_vm5  ;;  %v4295_v1 = vld [vmem:[%s8101_s6 + $0x80] sm:$0xff] }
 0x300   :  { %v6693_v11 = vpop.permute.xlu1 %1872  ;;  %v1888_v40 = vmul.f32 %v4921_v34, %v1861_v30  ;;  %v2365_v33 = vmul.f32 %v6669_v43, %v2364_v36  ;;  %v4931_v50 = vpop.eup %4930  ;;  %v1659_v34 = vadd.f32 %v1651_v2, %v1611_v20  ;;  %v1801_v51 = vadd.f32 %v1793_v48, %v1753_v38  ;;  %v8330_v2 = vld [vmem:[#allocation92_spill] sm:$0xff]  ;;  %v8336_v38 = vld [vmem:[#allocation90_spill] sm:$0xff] }
 0x301   :  { %4673 = vset.pattern.permute.xlu1 %v8326_v22  ;;  %4936 = vpow2.f32 %v6509_v4  ;;  %v6726_v47 = vmul.f32 %v2360_v14, %v8330_v2  ;;  %v2319_v4 = vsub.f32 0.0, %v6712_v13  ;;  %v2374_v44 = vor.u32 1.1754944e-38, %v2373_v39 }
 0x302   :  { %v6703_v29 = vadd.f32 %v1888_v40, %v6575_v58  ;;  %1692 = vperm.xlu1 %4673, %v6277_v8   ;;  %v1889_v58 = vmul.f32 %v4929_v24, %v6630_v59  ;;  %v2366_v55 = vadd.f32 %v6669_v43, %v2365_v33  ;;  %v1707_v10 = vadd.f32 %v1699_v63, %v1659_v34  ;;  %v4296_v59 = vld [vmem:[%s8101_s6 + $0x88] sm:$0xff] }
 0x303   :  { %v4933_v0 = vpop.eup %4932  ;;  %8331 = vst [vmem:[#allocation64_spill] sm:$0xff] %v6726_v47  ;;  %4938 = vpow2.f32 %v6556_v60  ;;  %v1849_v62 = vadd.f32 %v1841_v54, %v1801_v51  ;;  %v8332_v63 = vmov 15   ;;  %2496 = vmatpush.msrb.mxu2 %v4296_v59  ;;  %vm6745_vm7 = vcmp.eq.f32.partialorder %v2371_v3, 8.507059e+37  ;;  %v8338_v3 = vld [vmem:[#allocation97_spill] sm:$0xff] }
 0x304   :  { %4940 = vpow2.f32 %v6624_v19  ;;  %v6740_v32 = vadd.f32 1.0, %v4933_v0  ;;  %v1755_v31 = vadd.f32 %v1747_v6, %v1707_v10  ;;  %v2370_v26 = vsel %vm6721_vm6, %v6669_v43, %v2366_v55  ;;  %v8343_v10 = vld [vmem:[#allocation32_spill] sm:$0xff] }
 0x305   :  { %v6728_v18 = vpop.permute.xlu2 %1724  ;;  %v4935_v60 = vpop.eup %4934  ;;  %v2331_v30 = vmul.f32 1.442695, %v2319_v4  ;;  %v1795_v19 = vmul.f32 %v6641_v52, %v8336_v38  ;;  %v1843_v7 = vmul.f32 %v4927_v57, %v6562_v17  ;;  %v1897_v48 = vadd.f32 %v1889_v58, %v1849_v62  ;;  %2497 = vmatpush.msrb.mxu2 %v4295_v1 }
 0x306   :  { %4660 = vset.pattern.permute.xlu2 %v8332_v63  ;;  %v2378_v40 = vmul.f32 %v4935_v60, %v6690_v56  ;;  %v2307_v36 = vpop.f32.mrf.mxu1  ;;  %vm2382_vm8 = vweird.f32 %v6690_v56  ;;  %v2386_v21 = vand.u32 2147483647, %v6690_v56  ;;  %4942 = vrcp.f32 %v6740_v32  ;;  %2498 = vmatmul.f32.vlgmr.msrb.gmra.mxu2 %v6726_v47 }
 0x307   :  { %1904 = vperm.xlu2 %4660, %v5885_v53   ;;  %v6750_v35 = vpop.permute.xlu0 %1880  ;;  %v2388_v53 = vand.u32 2147483648, %v6690_v56  ;;  %v4937_v61 = vpop.eup %4936  ;;  %v2375_v17 = vsel %vm6745_vm7, %v2374_v44, %v2370_v26  ;;  %v8337_v57 = vmov 11   ;;  %vm2383_vm9 = vweird.f32 %v4935_v60 }
 0x308   :  { %8335 = vst [vmem:[#allocation71_spill] sm:$0xff] %v6750_v35  ;;  %v2379_v54 = vsub.f32 1.0, %v2378_v40  ;;  %4944 = vpow2.f32 %v2331_v30  ;;  %v6766_v14 = vadd.f32 %v6404_v41, %v2307_v36  ;;  %v1803_v39 = vadd.f32 %v1795_v19, %v1755_v31  ;;  %vm6774_vm10 = vmor %vm2382_vm8, %vm2383_vm9  ;;  %v8383_v35 = vld [vmem:[#allocation74_spill] sm:$0xff] }
 0x309   :  { %v1913_v43 = vpop.permute.xlu1 %1912  ;;  %v4939_v24 = vpop.eup %4938  ;;  %v1891_v34 = vmul.f32 %v4937_v61, %v6693_v11  ;;  %v6770_v51 = vmul.f32 %v2375_v17, %v8338_v3  ;;  %v2389_v58 = vor.u32 1.1754944e-38, %v2388_v53  ;;  %vm2387_vm11 = vcmp.eq.f32.partialorder %v2386_v21, 8.507059e+37  ;;  %v8346_v17 = vld [vmem:[#allocation33_spill] sm:$0xff]  ;;  %v8352_v3 = vld [vmem:[#allocation24_spill] sm:$0xff] }
 0x30a   :  { %v1937_v52 = vmul.f32 %v4931_v50, %v1913_v43  ;;  %4674 = vset.pattern.permute.xlu1 %v8337_v57  ;;  %v4941_v33 = vpop.eup %4940  ;;  %v2380_v6 = vmul.f32 %v4935_v60, %v2379_v54  ;;  %v2320_v20 = vsub.f32 0.0, %v6766_v14  ;;  %v1851_v0 = vadd.f32 %v1843_v7, %v1803_v39 }
 0x30b   :  { %1740 = vperm.xlu1 %4674, %v6277_v8   ;;  %8339 = vst [vmem:[#allocation68_spill] sm:$0xff] %v6770_v51  ;;  %vm2397_vm12 = vweird.f32 %v6740_v32  ;;  %v2403_v19 = vand.u32 2147483648, %v6740_v32  ;;  %v2401_v40 = vand.u32 2147483647, %v6740_v32  ;;  %v8345_v36 = vmov 12  }
 0x30c   :  { %v1945_v49 = vadd.f32 %v1937_v52, %v1897_v48  ;;  %v2381_v11 = vadd.f32 %v4935_v60, %v2380_v6  ;;  %v4943_v4 = vpop.eup %4942  ;;  %v2333_v59 = vmul.f32 1.442695, %v2320_v20  ;;  %v1899_v56 = vadd.f32 %v1891_v34, %v1851_v0  ;;  %v5402_v6 = vld [vmem:[%s8102_s7] ss:$0 sm:$0xff] }
 0x30d   :  { %v6778_v55 = vpop.permute.xlu2 %1732  ;;  %v2393_v44 = vmul.f32 %v4943_v4, %v6740_v32  ;;  %vm2398_vm13 = vweird.f32 %v4943_v4  ;;  %v2404_v34 = vor.u32 1.1754944e-38, %v2403_v19  ;;  %v6820_v32 = vadd.f32 %v5402_v6, %v8352_v3 }
 0x30e   :  { %8342 = vst [vmem:[#allocation76_spill] sm:$0xff] %v6778_v55  ;;  %v6782_v2 = vmul.f32 %v1945_v49, %v8343_v10  ;;  %v2385_v1 = vsel %vm6774_vm10, %v4935_v60, %v2381_v11  ;;  %v2310_v31 = vpop.f32.mrf.mxu1  ;;  %v4945_v26 = vpop.eup %4944  ;;  %4946 = vpow2.f32 %v2333_v59  ;;  %2501 = vmatmul.f32.gmra.mxu2 %v6770_v51  ;;  %vm6806_vm14 = vmor %vm2397_vm12, %vm2398_vm13  ;;  %vm2402_vm15 = vcmp.eq.f32.partialorder %v2401_v40, 8.507059e+37  ;;  %v8385_v55 = vld [vmem:[#allocation41_spill] sm:$0xff] }
 0x30f   :  { %1916 = vperm.xlu2 %4660, %v5901_v12   ;;  %v2390_v16 = vsel %vm2387_vm11, %v2389_v58, %v2385_v1  ;;  %v2394_v7 = vsub.f32 1.0, %v2393_v44  ;;  %v2343_v48 = vadd.f32 1.0, %v4945_v26  ;;  %v6795_v43 = vadd.f32 %v6404_v41, %v2310_v31 }
 0x310   :  { %8344 = vst [vmem:[#allocation81_spill] sm:$0xff] %v6782_v2  ;;  %v1909_v62 = vpop.permute.xlu0 %1908  ;;  %v6799_v61 = vmul.f32 %v2390_v16, %v6578_v45  ;;  %v8354_v44 = vmov 13   ;;  %v8355_v19 = vmov 0   ;;  %v8382_v2 = vld [vmem:[#allocation37_spill] sm:$0xff] }
 0x311   :  { %v1921_v30 = vpop.permute.xlu1 %1920  ;;  %v1936_v38 = vmul.f32 %v4941_v33, %v1909_v62  ;;  %v2395_v53 = vmul.f32 %v4943_v4, %v2394_v7  ;;  %4948 = vrcp.f32 %v2343_v48  ;;  %v2321_v54 = vsub.f32 0.0, %v6795_v43 }
 0x312   :  { %v1939_v12 = vmul.f32 %v4939_v24, %v1921_v30  ;;  %v8350_v24 = vld [vmem:[#allocation29_spill] sm:$0xff]  ;;  %vm2412_vm0 = vweird.f32 %v2343_v48  ;;  %v2418_v62 = vand.u32 2147483648, %v2343_v48  ;;  %v2416_v26 = vand.u32 2147483647, %v2343_v48 }
 0x313   :  { %v1944_v60 = vadd.f32 %v1936_v38, %v6703_v29  ;;  %4675 = vset.pattern.permute.xlu1 %v8345_v36  ;;  %v2396_v39 = vadd.f32 %v4943_v4, %v2395_v53  ;;  %v2335_v20 = vmul.f32 1.442695, %v2321_v54 }
 0x314   :  { %v1947_v21 = vadd.f32 %v1939_v12, %v1899_v56  ;;  %1788 = vperm.xlu1 %4675, %v6277_v8   ;;  %v4947_v45 = vpop.eup %4946  ;;  %v557_v56 = vand.u32 2147483647, %v6820_v32  ;;  %vm2417_vm3 = vcmp.eq.f32.partialorder %v2416_v26, 8.507059e+37  ;;  %v8362_v26 = vld [vmem:[#allocation51_spill] sm:$0xff] }
 0x315   :  { %v6802_v52 = vmul.f32 %v1944_v60, %v8346_v17  ;;  %v2400_v50 = vsel %vm6806_vm14, %v4943_v4, %v2396_v39  ;;  %v2344_v58 = vadd.f32 1.0, %v4947_v45 }
 0x316   :  { %v6812_v33 = vmul.f32 %v1947_v21, %v8350_v24  ;;  %v6814_v49 = vpop.permute.xlu2 %1760  ;;  %2504 = vmatmul.f32.gmra.mxu2 %v6799_v61  ;;  %v2312_v0 = vpop.f32.mrf.mxu1  ;;  %v2405_v11 = vsel %vm2402_vm15, %v2404_v34, %v2400_v50  ;;  %v565_v7 = vsub.f32 0.0, %v557_v56 }
 0x317   :  { %8347 = vst [vmem:[#allocation73_spill] sm:$0xff] %v6802_v52  ;;  %1924 = vperm.xlu2 %4660, %v5904_v15   ;;  %v4949_v10 = vpop.eup %4948  ;;  %4950 = vrcp.f32 %v2344_v58  ;;  %v6831_v15 = vadd.f32 %v6404_v41, %v2312_v0  ;;  %v6834_v4 = vmul.f32 %v2405_v11, %v6639_v5  ;;  %v2419_v5 = vor.u32 1.1754944e-38, %v2418_v62 }
 0x318   :  { %8351 = vst [vmem:[#allocation78_spill] sm:$0xff] %v6812_v33  ;;  %v2408_v1 = vmul.f32 %v4949_v10, %v2343_v48  ;;  %4952 = vpow2.f32 %v2335_v20  ;;  %vm2413_vm1 = vweird.f32 %v4949_v10  ;;  %vm2427_vm4 = vweird.f32 %v2344_v58 }
 0x319   :  { %v2322_v30 = vsub.f32 0.0, %v6831_v15  ;;  %vm6842_vm2 = vmor %vm2412_vm0, %vm2413_vm1  ;;  %v2431_v17 = vand.u32 2147483647, %v2344_v58  ;;  %v2433_v29 = vand.u32 2147483648, %v2344_v58  ;;  %v573_v34 = vmul.f32 1.442695, %v565_v7 }
 0x31a   :  { %v6826_v59 = vpop.permute.xlu1 %1212  ;;  %v2409_v31 = vsub.f32 1.0, %v2408_v1 }
 0x31b   :  { %8353 = vst [vmem:[#allocation88_spill] sm:$0xff] %v6826_v59  ;;  %v2337_v60 = vmul.f32 1.442695, %v2322_v30  ;;  %v2434_v50 = vor.u32 1.1754944e-38, %v2433_v29  ;;  %vm2432_vm7 = vcmp.eq.f32.partialorder %v2431_v17, 8.507059e+37  ;;  %v8363_v29 = vld [vmem:[#allocation52_spill] sm:$0xff] }
 0x31c   :  { %4676 = vset.pattern.permute.xlu1 %v8354_v44  ;;  %v2410_v38 = vmul.f32 %v4949_v10, %v2409_v31 }
 0x31d   :  { %1836 = vperm.xlu1 %4676, %v6277_v8   ;;  %v4951_v12 = vpop.eup %4950  ;;  %4954 = vpow2.f32 %v2337_v60 }
 0x31e   :  { %v6837_v16 = vpop.permute.xlu2 %1772  ;;  %v2411_v40 = vadd.f32 %v4949_v10, %v2410_v38  ;;  %v2423_v21 = vmul.f32 %v4951_v12, %v2344_v58  ;;  %2507 = vmatmul.f32.gmra.mxu2 %v6834_v4  ;;  %v4953_v53 = vpop.eup %4952  ;;  %vm2428_vm5 = vweird.f32 %v4951_v12  ;;  %v8361_v58 = vld [vmem:[#allocation31_spill] sm:$0xff] }
 0x31f   :  { %4679 = vset.pattern.permute.xlu2 %v8355_v19  ;;  %v2345_v39 = vadd.f32 1.0, %v4953_v53  ;;  %vm2429_vm6 = vmor %vm2427_vm4, %vm2428_vm5  ;;  %v788_v30 = vmul.f32 %v8362_v26, %v8361_v58 }
 0x320   :  { %v2415_v54 = vsel %vm6842_vm2, %v4949_v10, %v2411_v40  ;;  %v2424_v48 = vsub.f32 1.0, %v2423_v21 }
 0x321   :  { %v2420_v45 = vsel %vm2417_vm3, %v2419_v5, %v2415_v54  ;;  %4956 = vrcp.f32 %v2345_v39  ;;  %v2448_v7 = vand.u32 2147483648, %v2345_v39  ;;  %vm2442_vm8 = vweird.f32 %v2345_v39  ;;  %v8369_v54 = vld [vmem:[#allocation54_spill] sm:$0xff] }
 0x322   :  { %v6852_v6 = vmul.f32 %v2420_v45, %v6712_v13  ;;  %v2425_v3 = vmul.f32 %v4951_v12, %v2424_v48  ;;  %4958 = vpow2.f32 %v573_v34  ;;  %v941_v17 = vmul.f32 1.442695, %v788_v30 }
 0x323   :  { %v6849_v24 = vpop.permute.xlu1 %1260  ;;  %v4955_v10 = vpop.eup %4954  ;;  %v2449_v48 = vor.u32 1.1754944e-38, %v2448_v7 }
 0x324   :  { %8358 = vst [vmem:[#allocation96_spill] sm:$0xff] %v6849_v24  ;;  %v2426_v0 = vadd.f32 %v4951_v12, %v2425_v3  ;;  %v2346_v56 = vadd.f32 1.0, %v4955_v10 }
 0x325   :  { %4677 = vset.pattern.permute.xlu1 %v8266_v28 }
 0x326   :  { %v6856_v20 = vpop.permute.xlu2 %1780  ;;  %1884 = vperm.xlu1 %4677, %v6277_v8   ;;  %v2430_v11 = vsel %vm2429_vm6, %v4951_v12, %v2426_v0  ;;  %2510 = vmatmul.f32.gmra.mxu2 %v6852_v6  ;;  %4960 = vrcp.f32 %v2346_v56  ;;  %v2446_v12 = vand.u32 2147483647, %v2345_v39  ;;  %vm2457_vm12 = vweird.f32 %v2346_v56 }
 0x327   :  { %8359 = vst [vmem:[#allocation84_spill] sm:$0xff] %v6856_v20  ;;  %v2435_v13 = vsel %vm2432_vm7, %v2434_v50, %v2430_v11  ;;  %v4957_v1 = vpop.eup %4956  ;;  %v8367_v50 = vld [vmem:[#allocation53_spill] sm:$0xff]  ;;  %v2463_v10 = vand.u32 2147483648, %v2346_v56  ;;  %v4572_v11 = vld [vmem:[%s8103_s8 + $0x78] sm:$0xff]  ;;  %v2461_v30 = vand.u32 2147483647, %v2346_v56 }
 0x328   :  { %v2438_v62 = vmul.f32 %v4957_v1, %v2345_v39  ;;  %v6865_v38 = vmul.f32 %v2435_v13, %v6766_v14  ;;  %v4959_v41 = vpop.eup %4958  ;;  %vm2443_vm9 = vweird.f32 %v4957_v1  ;;  %v779_v14 = vmul.f32 %v8363_v29, %v8361_v58  ;;  %v8366_v39 = vld [vmem:[#allocation34_spill] sm:$0xff]  ;;  %2643 = vmatpush.bf16.msra.mxu3 %v4572_v11 }
 0x329   :  { %v589_v53 = vadd.f32 1.0, %v4959_v41  ;;  %vm6873_vm10 = vmor %vm2442_vm8, %vm2443_vm9  ;;  %v785_v34 = vmul.f32 %v8362_v26, %v8366_v39  ;;  %vm2447_vm11 = vcmp.eq.f32.partialorder %v2446_v12, 8.507059e+37  ;;  %v776_v3 = vmul.f32 %v8363_v29, %v8366_v39 }
 0x32a   :  { %v2439_v5 = vsub.f32 1.0, %v2438_v62  ;;  %v794_v0 = vmul.f32 %v8367_v50, %v8366_v39  ;;  %v925_v7 = vmul.f32 1.442695, %v779_v14  ;;  %v797_v41 = vmul.f32 %v8367_v50, %v8361_v58 }
 0x32b   :  { %4962 = vlog2.f32 %v589_v53  ;;  %v935_v28 = vmul.f32 1.442695, %v785_v34  ;;  %v919_v14 = vmul.f32 1.442695, %v776_v3  ;;  %v2464_v11 = vor.u32 1.1754944e-38, %v2463_v10 }
 0x32c   :  { %v6860_v31 = vpop.permute.xlu1 %1308  ;;  %v2440_v40 = vmul.f32 %v4957_v1, %v2439_v5  ;;  %v4961_v21 = vpop.eup %4960  ;;  %4964 = vpow2.f32 %v941_v17  ;;  %vm2462_vm15 = vcmp.eq.f32.partialorder %v2461_v30, 8.507059e+37  ;;  %v957_v17 = vmul.f32 1.442695, %v797_v41 }
 0x32d   :  { %8360 = vst [vmem:[#allocation92_spill] sm:$0xff] %v6860_v31  ;;  %vm2458_vm13 = vweird.f32 %v4961_v21  ;;  %4966 = vpow2.f32 %v925_v7  ;;  %v866_v27 = vmul.f32 %v8383_v35, %v8366_v39  ;;  %v8388_v31 = vld [vmem:[#allocation44_spill] sm:$0xff] }
 0x32e   :  { %4678 = vset.pattern.permute.xlu1 %v8332_v63  ;;  %2513 = vmatmul.f32.gmra.mxu2 %v6865_v38  ;;  %v2441_v45 = vadd.f32 %v4957_v1, %v2440_v40  ;;  %v4571_v40 = vld [vmem:[%s8103_s8 + $0x70] sm:$0xff]  ;;  %vm6905_vm14 = vmor %vm2457_vm12, %vm2458_vm13  ;;  %4968 = vpow2.f32 %v935_v28 }
 0x32f   :  { %v6868_v60 = vpop.permute.xlu2 %1808  ;;  %1932 = vperm.xlu1 %4678, %v6277_v8   ;;  %v2453_v8 = vmul.f32 %v4961_v21, %v2346_v56  ;;  %2644 = vmatpush.bf16.msra.mxu3 %v4571_v40  ;;  %4970 = vpow2.f32 %v919_v14  ;;  %v4570_v40 = vld [vmem:[%s8103_s8 + $0x68] sm:$0xff] }
 0x330   :  { %v2445_v13 = vsel %vm6873_vm10, %v4957_v1, %v2441_v45  ;;  %v803_v1 = vmul.f32 %v8369_v54, %v8366_v39 }
 0x331   :  { %v2454_v62 = vsub.f32 1.0, %v2453_v8  ;;  %v2450_v5 = vsel %vm2447_vm11, %v2449_v48, %v2445_v13  ;;  %v806_v48 = vmul.f32 %v8369_v54, %v8361_v58  ;;  %v951_v13 = vmul.f32 1.442695, %v794_v0  ;;  %v6921_v0 = vpop.eup %4962  ;;  %v4569_v8 = vld [vmem:[%s8103_s8 + $0x60] sm:$0xff] }
 0x332   :  { %v6899_v45 = vmul.f32 %v2450_v5, %v6795_v43  ;;  %v8373_v43 = vld [vmem:[#allocation56_spill] sm:$0xff]  ;;  %v967_v10 = vmul.f32 1.442695, %v803_v1  ;;  %v8374_v5 = vld [vmem:[#allocation57_spill] sm:$0xff]  ;;  %v8375_v1 = vld [vmem:[#allocation58_spill] sm:$0xff]  ;;  %v6930_v63 = vpop.eup %4964 }
 0x333   :  { %v2455_v53 = vmul.f32 %v4961_v21, %v2454_v62  ;;  %v812_v62 = vmul.f32 %v8373_v43, %v8366_v39  ;;  %v815_v56 = vmul.f32 %v8373_v43, %v8361_v58  ;;  %v821_v44 = vmul.f32 %v8374_v5, %v8366_v39  ;;  %2645 = vmatpush.bf16.msra.mxu3 %v4570_v40 }
 0x334   :  { %8370 = vst [vmem:[#allocation97_spill] sm:$0xff] %v6899_v45  ;;  %v973_v30 = vmul.f32 1.442695, %v806_v48  ;;  %v824_v7 = vmul.f32 %v8374_v5, %v8361_v58  ;;  %4972 = vpow2.f32 %v951_v13  ;;  %v833_v14 = vmul.f32 %v8375_v1, %v8361_v58  ;;  %v8377_v13 = vld [vmem:[#allocation61_spill] sm:$0xff] }
 0x335   :  { %v6891_v12 = vpop.permute.xlu1 %1356  ;;  %v2456_v3 = vadd.f32 %v4961_v21, %v2455_v53  ;;  %v983_v28 = vmul.f32 1.442695, %v812_v62  ;;  %v830_v53 = vmul.f32 %v8375_v1, %v8366_v39  ;;  %4974 = vpow2.f32 %v957_v17  ;;  %v6944_v17 = vpop.eup %4966 }
 0x336   :  { %8368 = vst [vmem:[#allocation90_spill] sm:$0xff] %v6891_v12  ;;  %2516 = vmatmul.f32.gmra.mxu2 %v6899_v45  ;;  %4976 = vpow2.f32 %v967_v10  ;;  %v839_v62 = vmul.f32 %v8377_v13, %v8366_v39  ;;  %v8380_v10 = vld [vmem:[#allocation65_spill] sm:$0xff]  ;;  %v1021_v57 = vmul.f32 1.442695, %v833_v14  ;;  %v8395_v45 = vld [vmem:[#allocation42_spill] sm:$0xff] }
 0x337   :  { %v6909_v34 = vpop.permute.xlu2 %1820  ;;  %4681 = vset.pattern.permute.xlu1 %v8355_v19  ;;  %v2460_v19 = vsel %vm6905_vm14, %v4961_v21, %v2456_v3  ;;  %v989_v21 = vmul.f32 1.442695, %v815_v56  ;;  %4978 = vpow2.f32 %v973_v30  ;;  %v1005_v56 = vmul.f32 1.442695, %v824_v7  ;;  %2646 = vmatpush.bf16.msra.mxu3 %v4569_v8  ;;  %v4568_v30 = vld [vmem:[%s8103_s8 + $0x58] sm:$0xff] }
 0x338   :  { %v2465_v41 = vsel %vm2462_vm15, %v2464_v11, %v2460_v19  ;;  %v999_v11 = vmul.f32 1.442695, %v821_v44  ;;  %4980 = vpow2.f32 %v983_v28  ;;  %v1015_v40 = vmul.f32 1.442695, %v830_v53  ;;  %v8381_v53 = vld [vmem:[#allocation69_spill] sm:$0xff] }
 0x339   :  { %v6935_v48 = vmul.f32 %v2465_v41, %v6831_v15  ;;  %v842_v15 = vmul.f32 %v8377_v13, %v8361_v58  ;;  %v4969_v41 = vpop.eup %4968  ;;  %v848_v44 = vmul.f32 %v8380_v10, %v8366_v39  ;;  %4982 = vpow2.f32 %v989_v21  ;;  %v8399_v13 = vld [vmem:[#allocation67_spill] sm:$0xff] }
 0x33a   :  { %v4971_v36 = vpop.eup %4970  ;;  %v851_v22 = vmul.f32 %v8380_v10, %v8361_v58  ;;  %4984 = vpow2.f32 %v999_v11  ;;  %v1031_v28 = vmul.f32 1.442695, %v839_v62  ;;  %v857_v25 = vmul.f32 %v8381_v53, %v8366_v39 }
 0x33b   :  { %8376 = vst [vmem:[#allocation32_spill] sm:$0xff] %v6935_v48  ;;  %v4973_v7 = vpop.eup %4972  ;;  %4986 = vpow2.f32 %v1005_v56  ;;  %v1037_v21 = vmul.f32 1.442695, %v842_v15  ;;  %v860_v14 = vmul.f32 %v8381_v53, %v8361_v58  ;;  %v1215_v52 = vmul.f32 %v4971_v36, %v8382_v2  ;;  %2647 = vmatpush.bf16.msra.mxu3 %v4568_v30  ;;  %v8384_v15 = vld [vmem:[#allocation36_spill] sm:$0xff] }
 0x33c   :  { %v4975_v23 = vpop.eup %4974  ;;  %4988 = vpow2.f32 %v1015_v40  ;;  %v1047_v8 = vmul.f32 1.442695, %v848_v44  ;;  %v1053_v11 = vmul.f32 1.442695, %v851_v22  ;;  %v869_v62 = vmul.f32 %v8383_v35, %v8361_v58  ;;  %v8386_v40 = vld [vmem:[#allocation79_spill] sm:$0xff] }
 0x33d   :  { %v4977_v33 = vpop.eup %4976  ;;  %4990 = vpow2.f32 %v1021_v57  ;;  %v1263_v20 = vmul.f32 %v4969_v41, %v8384_v15  ;;  %v1311_v9 = vmul.f32 %v4973_v7, %v8385_v55  ;;  %v1069_v36 = vmul.f32 1.442695, %v860_v14  ;;  %v8389_v14 = vld [vmem:[#allocation47_spill] sm:$0xff] }
 0x33e   :  { %v6942_v3 = vpop.permute.xlu1 %1404  ;;  %2519 = vmatmul.f32.gmra.mxu2 %v6935_v48  ;;  %4992 = vpow2.f32 %v1031_v28  ;;  %v875_v44 = vmul.f32 %v8386_v40, %v8366_v39  ;;  %v1359_v59 = vmul.f32 %v4977_v33, %v8388_v31  ;;  %v1079_v30 = vmul.f32 1.442695, %v866_v27  ;;  %v4566_v27 = vld [vmem:[%s8103_s8 + $0x48] sm:$0xff]  ;;  %v8390_v31 = vld [vmem:[#allocation85_spill] sm:$0xff] }
 0x33f   :  { %8378 = vst [vmem:[#allocation33_spill] sm:$0xff] %v6942_v3  ;;  %v6948_v19 = vpop.permute.xlu2 %1828  ;;  %v1063_v3 = vmul.f32 1.442695, %v857_v25  ;;  %4994 = vpow2.f32 %v1037_v21  ;;  %v1271_v57 = vadd.f32 %v1263_v20, %v1215_v52  ;;  %v4567_v25 = vld [vmem:[%s8103_s8 + $0x50] sm:$0xff]  ;;  %v1085_v41 = vmul.f32 1.442695, %v869_v62 }
 0x340   :  { %8379 = vst [vmem:[#allocation29_spill] sm:$0xff] %v6948_v19  ;;  %v4979_v19 = vpop.eup %4978  ;;  %4996 = vpow2.f32 %v1047_v8  ;;  %v878_v7 = vmul.f32 %v8386_v40, %v8361_v58  ;;  %2648 = vmatpush.bf16.msra.mxu3 %v4567_v25  ;;  %v1095_v20 = vmul.f32 1.442695, %v875_v44  ;;  %v884_v8 = vmul.f32 %v8390_v31, %v8366_v39  ;;  %v8391_v62 = vld [vmem:[#allocation39_spill] sm:$0xff]  ;;  %v8396_v40 = vld [vmem:[#allocation62_spill] sm:$0xff] }
 0x341   :  { %v4981_v56 = vpop.eup %4980  ;;  %4998 = vpow2.f32 %v1053_v11  ;;  %v1319_v21 = vadd.f32 %v1311_v9, %v1271_v57  ;;  %v1218_v15 = vmul.f32 %v6944_v17, %v8391_v62  ;;  %v8392_v9 = vld [vmem:[#allocation50_spill] sm:$0xff]  ;;  %v8393_v25 = vld [vmem:[#allocation91_spill] sm:$0xff]  ;;  %v1314_v35 = vmul.f32 %v4975_v23, %v8395_v45 }
 0x342   :  { %v4983_v2 = vpop.eup %4982  ;;  %v1407_v52 = vmul.f32 %v4981_v56, %v8389_v14  ;;  %5000 = vpow2.f32 %v1063_v3  ;;  %v1101_v56 = vmul.f32 1.442695, %v878_v7  ;;  %v893_v14 = vmul.f32 %v8393_v25, %v8366_v39 }
 0x343   :  { %v4985_v22 = vpop.eup %4984  ;;  %5002 = vpow2.f32 %v1069_v36  ;;  %v8394_v36 = vld [vmem:[#allocation38_spill] sm:$0xff]  ;;  %v1111_v17 = vmul.f32 1.442695, %v884_v8  ;;  %v8402_v8 = vld [vmem:[#allocation75_spill] sm:$0xff] }
 0x344   :  { %v4987_v55 = vpop.eup %4986  ;;  %v1455_v57 = vmul.f32 %v4985_v22, %v8392_v9  ;;  %5004 = vpow2.f32 %v1079_v30  ;;  %v1266_v44 = vmul.f32 %v6930_v63, %v8394_v36  ;;  %2649 = vmatpush.bf16.msra.mxu3 %v4566_v27  ;;  %v8397_v22 = vld [vmem:[#allocation93_spill] sm:$0xff]  ;;  %v911_v36 = vmul.f32 %v6501_v37, %v8366_v39 }
 0x345   :  { %v4989_v28 = vpop.eup %4988  ;;  %5006 = vpow2.f32 %v1085_v41  ;;  %v902_v30 = vmul.f32 %v8397_v22, %v8366_v39 }
 0x346   :  { %v4991_v33 = vpop.eup %4990  ;;  %v1503_v10 = vmul.f32 %v4989_v28, %v8396_v40  ;;  %5008 = vpow2.f32 %v1095_v20  ;;  %v1274_v7 = vadd.f32 %v1266_v44, %v1218_v15  ;;  %v2475_v40 = vpack.c.bf16 %v6770_v51, %v6726_v47  ;;  %v8404_v47 = vld [vmem:[#allocation83_spill] sm:$0xff] }
 0x347   :  { %v6971_v12 = vpop.permute.xlu1 %1452  ;;  %v4993_v11 = vpop.eup %4992  ;;  %5010 = vpow2.f32 %v1101_v56  ;;  %v887_v28 = vmul.f32 %v8390_v31, %v8361_v58  ;;  %v8403_v56 = vld [vmem:[#allocation55_spill] sm:$0xff] }
 0x348   :  { %8387 = vst [vmem:[#allocation24_spill] sm:$0xff] %v6971_v12  ;;  %v6974_v24 = vpop.permute.xlu2 %1856  ;;  %v1367_v12 = vadd.f32 %v1359_v59, %v1319_v21  ;;  %v4995_v3 = vpop.eup %4994  ;;  %v8398_v21 = vld [vmem:[#allocation45_spill] sm:$0xff]  ;;  %v1551_v1 = vmul.f32 %v4993_v11, %v8399_v13  ;;  %v8401_v13 = vld [vmem:[#allocation48_spill] sm:$0xff]  ;;  %5012 = vpow2.f32 %v1111_v17 }
 0x349   :  { %v4997_v48 = vpop.eup %4996  ;;  %v1362_v62 = vmul.f32 %v4979_v19, %v8398_v21  ;;  %v1127_v19 = vmul.f32 1.442695, %v893_v14  ;;  %v1410_v27 = vmul.f32 %v4983_v2, %v8401_v13  ;;  %v1458_v21 = vmul.f32 %v4987_v55, %v8403_v56  ;;  %v8405_v2 = vld [vmem:[#allocation63_spill] sm:$0xff] }
 0x34a   :  { %v1415_v53 = vadd.f32 %v1407_v52, %v1367_v12  ;;  %v4999_v59 = vpop.eup %4998  ;;  %v4565_v12 = vld [vmem:[%s8103_s8 + $0x40] sm:$0xff]  ;;  %v1322_v52 = vadd.f32 %v1314_v35, %v1274_v7  ;;  %v1599_v11 = vmul.f32 %v4997_v48, %v8402_v8  ;;  %v1117_v35 = vmul.f32 1.442695, %v887_v28  ;;  %v8406_v7 = vld [vmem:[#allocation94_spill] sm:$0xff]  ;;  %s5582_s8 = smov [#allocation11]  }
 0x34b   :  { %v5001_v41 = vpop.eup %5000  ;;  %2650 = vmatpush.bf16.msra.mxu3 %v4565_v12  ;;  %5014 = vpow2.f32 %v1127_v19  ;;  %v1506_v17 = vmul.f32 %v4991_v33, %v8405_v2  ;;  %v1159_v55 = vmul.f32 1.442695, %v911_v36  ;;  %s4104_s22 = sshll.u32 %s5582_s8, 4  ;;  %s4105_s22 = int_to_ptr.vmem [resolvable:$true] %s4104_s22 }
 0x34c   :  { %v1463_v9 = vadd.f32 %v1455_v57, %v1415_v53  ;;  %v5003_v45 = vpop.eup %5002  ;;  %v1143_v57 = vmul.f32 1.442695, %v902_v30  ;;  %v1370_v44 = vadd.f32 %v1362_v62, %v1322_v52  ;;  %v1647_v14 = vmul.f32 %v5001_v41, %v8404_v47  ;;  %v8407_v41 = vld [vmem:[#allocation70_spill] sm:$0xff]  ;;  %v8408_v52 = vld [vmem:[#allocation77_spill] sm:$0xff] }
 0x34d   :  { %v5005_v53 = vpop.eup %5004  ;;  %v1554_v62 = vmul.f32 %v4995_v3, %v8407_v41  ;;  %v1602_v13 = vmul.f32 %v4999_v59, %v8408_v52  ;;  %v914_v3 = vmul.f32 %v6501_v37, %v8361_v58 }
 0x34e   :  { %v1511_v20 = vadd.f32 %v1503_v10, %v1463_v9  ;;  %v5007_v15 = vpop.eup %5006  ;;  %v896_v10 = vmul.f32 %v8393_v25, %v8361_v58  ;;  %2651 = vmatmul.bf16.vlgmr.msra.gmra.mxu3 %v2475_v40  ;;  %v1418_v48 = vadd.f32 %v1410_v27, %v1370_v44  ;;  %v1695_v9 = vmul.f32 %v5005_v53, %v8406_v7 }
 0x34f   :  { %5016 = vpow2.f32 %v1143_v57  ;;  %v1698_v59 = vmul.f32 %v5007_v15, %v6538_v46  ;;  %v2476_v46 = vpack.c.bf16 %v6834_v4, %v6799_v61 }
 0x350   :  { %v7000_v63 = vpop.permute.xlu2 %1868  ;;  %v7002_v23 = vpop.permute.xlu1 %1500  ;;  %v1559_v51 = vadd.f32 %v1551_v1, %v1511_v20  ;;  %v905_v1 = vmul.f32 %v8397_v22, %v8361_v58  ;;  %v1466_v47 = vadd.f32 %v1458_v21, %v1418_v48  ;;  %5018 = vpow2.f32 %v1117_v35 }
 0x351   :  { %8400 = vst [vmem:[#allocation31_spill] sm:$0xff] %v7002_v23  ;;  %v5009_v23 = vpop.eup %5008  ;;  %v1133_v33 = vmul.f32 1.442695, %v896_v10  ;;  %5020 = vpow2.f32 %v1159_v55  ;;  %v1165_v10 = vmul.f32 1.442695, %v914_v3  ;;  %v8410_v3 = vld [vmem:[#allocation28_spill] sm:$0xff] }
 0x352   :  { %v1607_v30 = vadd.f32 %v1599_v11, %v1559_v51  ;;  %v5011_v39 = vpop.eup %5010  ;;  %v1743_v28 = vmul.f32 %v5009_v23, %v6673_v42  ;;  %v1514_v53 = vadd.f32 %v1506_v17, %v1466_v47  ;;  %v1149_v11 = vmul.f32 1.442695, %v905_v1  ;;  %v8409_v23 = vld [vmem:[#allocation86_spill] sm:$0xff] }
 0x353   :  { %v5013_v40 = vpop.eup %5012  ;;  %v1650_v57 = vmul.f32 %v5003_v45, %v8409_v23  ;;  %5022 = vpow2.f32 %v1133_v33  ;;  %v598_v48 = vmul.f32 0.6931472, %v6921_v0  ;;  %v1746_v2 = vmul.f32 %v5011_v39, %v6728_v18  ;;  %v4548_v17 = vld [vmem:[#allocation10 + $0x38] sm:$0xff]  ;;  %v4547_v18 = vld [vmem:[#allocation10 + $0x30] sm:$0xff] }
 0x354   :  { %v1655_v12 = vadd.f32 %v1647_v14, %v1607_v30  ;;  %v1791_v20 = vmul.f32 %v5013_v40, %v6814_v49  ;;  %v5015_v8 = vpop.eup %5014  ;;  %v1562_v42 = vadd.f32 %v1554_v62, %v1514_v53  ;;  %5024 = vpow2.f32 %v1149_v11  ;;  %2110 = vmatpush.bf16.msrb.mxu0 %v4548_v17  ;;  %v8411_v23 = vld [vmem:[#allocation30_spill] sm:$0xff] }
 0x355   :  { %v1839_v44 = vmul.f32 %v5015_v8, %v6868_v60  ;;  %v5017_v56 = vpop.eup %5016  ;;  %v549_v60 = vmax.f32 %v6820_v32, 0.0  ;;  %5026 = vpow2.f32 %v1165_v10 }
 0x356   :  { %v1703_v27 = vadd.f32 %v1695_v9, %v1655_v12  ;;  %v1610_v21 = vadd.f32 %v1602_v13, %v1562_v42  ;;  %v1887_v49 = vmul.f32 %v5017_v56, %v6974_v24  ;;  %v5019_v35 = vpop.eup %5018  ;;  %v4546_v13 = vld [vmem:[#allocation10 + $0x28] sm:$0xff]  ;;  %v781_v42 = vmul.f32 %v8363_v29, %v8410_v3 }
 0x357   :  { %v5021_v30 = vpop.eup %5020  ;;  %v1794_v15 = vmul.f32 %v5019_v35, %v6837_v16  ;;  %v613_v47 = vadd.f32 %v598_v48, %v549_v60  ;;  %v792_v35 = vmul.f32 0.0, %v8362_v26  ;;  %v783_v48 = vmul.f32 0.0, %v8363_v29 }
 0x358   :  { %v7025_v19 = vpop.permute.xlu2 %1876  ;;  %v1751_v36 = vadd.f32 %v1743_v28, %v1703_v27  ;;  %v1658_v58 = vadd.f32 %v1650_v57, %v1610_v21  ;;  %2111 = vmatpush.bf16.msrb.mxu0 %v4547_v18  ;;  %v929_v56 = vmul.f32 1.442695, %v781_v42  ;;  %v817_v21 = vmul.f32 %v8373_v43, %v8410_v3  ;;  %v4544_v18 = vld [vmem:[#allocation10 + $0x18] sm:$0xff] }
 0x359   :  { %v7027_v51 = vpop.permute.xlu1 %1548  ;;  %v5023_v39 = vpop.eup %5022  ;;  %v949_v60 = vmul.f32 1.442695, %v792_v35 }
 0x35a   :  { %v1799_v14 = vadd.f32 %v1791_v20, %v1751_v36  ;;  %v1706_v24 = vadd.f32 %v1698_v59, %v1658_v58  ;;  %v1842_v32 = vmul.f32 %v5023_v39, %v6909_v34  ;;  %v5025_v12 = vpop.eup %5024  ;;  %v799_v36 = vmul.f32 %v8367_v50, %v8410_v3 }
 0x35b   :  { %v1890_v40 = vmul.f32 %v5025_v12, %v7000_v63  ;;  %v5027_v53 = vpop.eup %5026  ;;  %v790_v63 = vmul.f32 %v8362_v26, %v8410_v3  ;;  %v2477_v59 = vpack.c.bf16 %v6865_v38, %v6852_v6  ;;  %5028 = vpow2.f32 %v929_v56  ;;  %v8413_v12 = vld [vmem:[#allocation61_spill] sm:$0xff] }
 0x35c   :  { %v1847_v45 = vadd.f32 %v1839_v44, %v1799_v14  ;;  %v7040_v9 = vpop.f32.mrf.mxu3  ;;  %v1754_v41 = vadd.f32 %v1746_v2, %v1706_v24  ;;  %2112 = vmatpush.bf16.msrb.mxu0 %v4546_v13  ;;  %v808_v44 = vmul.f32 %v8369_v54, %v8410_v3  ;;  %v4545_v14 = vld [vmem:[#allocation10 + $0x20] sm:$0xff]  ;;  %v961_v10 = vmul.f32 1.442695, %v799_v36 }
 0x35d   :  { %v993_v17 = vmul.f32 1.442695, %v817_v21  ;;  %v933_v26 = vmul.f32 1.442695, %v783_v48 }
 0x35e   :  { %v1895_v1 = vadd.f32 %v1887_v49, %v1847_v45  ;;  %2656 = vmatmul.bf16.gmra.mxu3 %v2476_v46  ;;  %v1802_v28 = vadd.f32 %v1794_v15, %v1754_v41  ;;  %v945_v49 = vmul.f32 1.442695, %v790_v63  ;;  %v977_v2 = vmul.f32 1.442695, %v808_v44  ;;  %v8418_v63 = vld [vmem:[#allocation74_spill] sm:$0xff] }
 0x35f   :  { %v801_v45 = vmul.f32 0.0, %v8367_v50  ;;  %v819_v46 = vmul.f32 0.0, %v8373_v43  ;;  %v8412_v50 = vld [vmem:[#allocation58_spill] sm:$0xff]  ;;  %v871_v36 = vmul.f32 %v8418_v63, %v8410_v3 }
 0x360   :  { %v1850_v16 = vadd.f32 %v1842_v32, %v1802_v28  ;;  %2113 = vmatpush.bf16.msrb.mxu0 %v4545_v14  ;;  %5030 = vpow2.f32 %v945_v49  ;;  %v835_v15 = vmul.f32 %v8412_v50, %v8410_v3  ;;  %v837_v41 = vmul.f32 0.0, %v8412_v50  ;;  %v8419_v14 = vld [vmem:[#allocation97_spill] sm:$0xff]  ;;  %v8420_v49 = vld [vmem:[#allocation32_spill] sm:$0xff] }
 0x361   :  { %v1905_v7 = vpop.permute.xlu2 %1904  ;;  %5032 = vpow2.f32 %v961_v10  ;;  %v965_v29 = vmul.f32 1.442695, %v801_v45  ;;  %v7080_v39 = vpop.eup %5028  ;;  %v844_v28 = vmul.f32 %v8413_v12, %v8410_v3  ;;  %v2478_v35 = vpack.c.bf16 %v8420_v49, %v8419_v14  ;;  %v8421_v50 = vld [vmem:[#allocation96_spill] sm:$0xff] }
 0x362   :  { %v1935_v55 = vmul.f32 %v5021_v30, %v1905_v7  ;;  %v7045_v0 = vpop.permute.xlu1 %1596  ;;  %v1898_v20 = vadd.f32 %v1890_v40, %v1850_v16  ;;  %v826_v30 = vmul.f32 %v8374_v5, %v8410_v3  ;;  %v810_v7 = vmul.f32 0.0, %v8369_v54 }
 0x363   :  { %5034 = vpow2.f32 %v977_v2  ;;  %v1029_v21 = vmul.f32 1.442695, %v837_v41  ;;  %v1041_v48 = vmul.f32 1.442695, %v844_v28  ;;  %v8422_v41 = vld [vmem:[#allocation88_spill] sm:$0xff] }
 0x364   :  { %v1943_v62 = vadd.f32 %v1935_v55, %v1895_v1  ;;  %v2038_v27 = vpop.f32.mrf.mxu3  ;;  %5036 = vpow2.f32 %v993_v17  ;;  %v1009_v24 = vmul.f32 1.442695, %v826_v30  ;;  %v981_v1 = vmul.f32 1.442695, %v810_v7  ;;  %2114 = vmatpush.bf16.msrb.mxu0 %v4544_v18 }
 0x365   :  { %5038 = vpow2.f32 %v949_v60  ;;  %v828_v55 = vmul.f32 0.0, %v8374_v5  ;;  %v8414_v5 = vld [vmem:[#allocation65_spill] sm:$0xff]  ;;  %v2040_v7 = vsub.f32 0.0, %v7040_v9 }
 0x366   :  { %v7049_v33 = vmul.f32 %v1943_v62, %v613_v47  ;;  %5040 = vpow2.f32 %v933_v26  ;;  %v5031_v54 = vpop.eup %5030  ;;  %v997_v47 = vmul.f32 1.442695, %v819_v46  ;;  %v1025_v62 = vmul.f32 1.442695, %v835_v15 }
 0x367   :  { %5042 = vpow2.f32 %v965_v29  ;;  %v5033_v43 = vpop.eup %5032  ;;  %v853_v40 = vmul.f32 %v8414_v5, %v8410_v3  ;;  %v1013_v27 = vmul.f32 1.442695, %v828_v55 }
 0x368   :  { %5044 = vpow2.f32 %v1009_v24  ;;  %v7117_v24 = vmul.f32 1.442695, %v871_v36 }
 0x369   :  { %v1917_v52 = vpop.permute.xlu2 %1916  ;;  %v7089_v16 = vpop.eup %5034  ;;  %5046 = vpow2.f32 %v981_v1  ;;  %v1057_v2 = vmul.f32 1.442695, %v853_v40 }
 0x36a   :  { %v1938_v8 = vmul.f32 %v5027_v53, %v1917_v52  ;;  %v8415_v53 = vld [vmem:[#allocation26_spill] sm:$0xff]  ;;  %v8416_v52 = vld [vmem:[#allocation79_spill] sm:$0xff]  ;;  %5048 = vpow2.f32 %v997_v47  ;;  %v873_v47 = vmul.f32 0.0, %v8418_v63 }
 0x36b   :  { %v7051_v11 = vpop.permute.xlu1 %1644  ;;  %v881_v13 = vmul.f32 %v8416_v52, %v8415_v53  ;;  %v899_v44 = vmul.f32 %v8393_v25, %v8415_v53  ;;  %5050 = vpow2.f32 %v1025_v62  ;;  %v7133_v36 = vmul.f32 %v8397_v22, %v8415_v53 }
 0x36c   :  { %v1946_v34 = vadd.f32 %v1938_v8, %v1898_v20  ;;  %v846_v20 = vmul.f32 0.0, %v8413_v12  ;;  %v7094_v8 = vpop.eup %5036  ;;  %5052 = vpow2.f32 %v1013_v27  ;;  %v8423_v12 = vld [vmem:[#allocation92_spill] sm:$0xff]  ;;  %v880_v27 = vmul.f32 %v8416_v52, %v8410_v3 }
 0x36d   :  { %v5039_v56 = vpop.eup %5038  ;;  %v7108_v30 = vmul.f32 1.442695, %v881_v13  ;;  %v7120_v55 = vmul.f32 1.442695, %v899_v44  ;;  %5054 = vpow2.f32 %v1029_v21 }
 0x36e   :  { %v7056_v57 = vmul.f32 %v1946_v34, %v8411_v23  ;;  %2661 = vmatmul.bf16.gmra.mxu3 %v2477_v59  ;;  %v8417_v34 = vld [vmem:[#allocation69_spill] sm:$0xff]  ;;  %v890_v23 = vmul.f32 %v8390_v31, %v8415_v53  ;;  %v855_v59 = vmul.f32 0.0, %v8414_v5  ;;  %v5041_v10 = vpop.eup %5040  ;;  %v1045_v60 = vmul.f32 1.442695, %v846_v20 }
 0x36f   :  { %v862_v42 = vmul.f32 %v8417_v34, %v8410_v3  ;;  %v864_v45 = vmul.f32 0.0, %v8417_v34  ;;  %v5043_v17 = vpop.eup %5042  ;;  %v1270_v15 = vmul.f32 %v5039_v56, %v8421_v50  ;;  %5056 = vpow2.f32 %v1041_v48  ;;  %v8425_v56 = vld [vmem:[#allocation90_spill] sm:$0xff] }
 0x370   :  { %v7111_v26 = vpop.eup %5044  ;;  %v7115_v46 = vmul.f32 1.442695, %v890_v23  ;;  %v1061_v18 = vmul.f32 1.442695, %v855_v59  ;;  %v1222_v62 = vmul.f32 %v5041_v10, %v8422_v41  ;;  %v1318_v28 = vmul.f32 %v5043_v17, %v8423_v12  ;;  %v8424_v23 = vld [vmem:[#allocation40_spill] sm:$0xff]  ;;  %v8427_v17 = vld [vmem:[#allocation43_spill] sm:$0xff] }
 0x371   :  { %v7113_v29 = vmul.f32 1.442695, %v862_v42  ;;  %v5047_v1 = vpop.eup %5046  ;;  %v1077_v5 = vmul.f32 1.442695, %v864_v45  ;;  %5058 = vpow2.f32 %v1045_v60  ;;  %v2041_v20 = vmul.f32 1.442695, %v2040_v7 }
 0x372   :  { %v5049_v13 = vpop.eup %5048  ;;  %v882_v34 = vmul.f32 0.0, %v8416_v52  ;;  %v1268_v63 = vmul.f32 %v5031_v54, %v8424_v23  ;;  %v1278_v44 = vadd.f32 %v1270_v15, %v1222_v62  ;;  %v1366_v21 = vmul.f32 %v5047_v1, %v8425_v56  ;;  %v8428_v7 = vld [vmem:[#allocation33_spill] sm:$0xff]  ;;  %v8429_v23 = vld [vmem:[#allocation46_spill] sm:$0xff] }
 0x373   :  { %v5051_v42 = vpop.eup %5050  ;;  %5060 = vpow2.f32 %v1061_v18  ;;  %v1093_v48 = vmul.f32 1.442695, %v873_v47  ;;  %v891_v45 = vmul.f32 0.0, %v8390_v31  ;;  %v1316_v52 = vmul.f32 %v5033_v43, %v8427_v17  ;;  %v8430_v47 = vld [vmem:[#allocation24_spill] sm:$0xff] }
 0x374   :  { %v7070_v58 = vpop.permute.xlu1 %1692  ;;  %v5053_v59 = vpop.eup %5052  ;;  %v1326_v60 = vadd.f32 %v1318_v28, %v1278_v44  ;;  %v1414_v54 = vmul.f32 %v5049_v13, %v8428_v7  ;;  %5062 = vpow2.f32 %v1077_v5  ;;  %v1105_v41 = vmul.f32 1.442695, %v880_v27  ;;  %v8433_v7 = vld [vmem:[#allocation59_spill] sm:$0xff] }
 0x375   :  { %v5055_v50 = vpop.eup %5054  ;;  %5064 = vpow2.f32 %v2041_v20  ;;  %v1109_v15 = vmul.f32 1.442695, %v882_v34  ;;  %v900_v1 = vmul.f32 0.0, %v8393_v25  ;;  %v1462_v56 = vmul.f32 %v5053_v59, %v8430_v47  ;;  %v8431_v20 = vld [vmem:[#allocation31_spill] sm:$0xff] }
 0x376   :  { %v5057_v62 = vpop.eup %5056  ;;  %v1374_v18 = vadd.f32 %v1366_v21, %v1326_v60  ;;  %v889_v43 = vmul.f32 %v8390_v31, %v8410_v3  ;;  %5066 = vpow2.f32 %v1093_v48  ;;  %v1125_v28 = vmul.f32 1.442695, %v891_v45 }
 0x377   :  { %v909_v5 = vmul.f32 0.0, %v8397_v22  ;;  %5068 = vpow2.f32 %v1057_v2  ;;  %v1510_v34 = vmul.f32 %v5055_v50, %v8431_v20  ;;  %v898_v21 = vmul.f32 %v8393_v25, %v8410_v3 }
 0x378   :  { %v1422_v27 = vadd.f32 %v1414_v54, %v1374_v18  ;;  %5070 = vpow2.f32 %v1109_v15  ;;  %v1141_v59 = vmul.f32 1.442695, %v900_v1  ;;  %v918_v25 = vmul.f32 0.0, %v6501_v37 }
 0x379   :  { %5072 = vpow2.f32 %v7108_v30  ;;  %v1157_v54 = vmul.f32 1.442695, %v909_v5  ;;  %v1121_v50 = vmul.f32 1.442695, %v889_v43  ;;  %v8435_v43 = vld [vmem:[#allocation72_spill] sm:$0xff] }
 0x37a   :  { %v1470_v2 = vadd.f32 %v1462_v56, %v1422_v27  ;;  %5074 = vpow2.f32 %v1125_v28  ;;  %v1556_v28 = vmul.f32 %v5057_v62, %v8435_v43  ;;  %v916_v62 = vmul.f32 %v6501_v37, %v8410_v3 }
 0x37b   :  { %5076 = vpow2.f32 %v7113_v29  ;;  %v4541_v29 = vld [vmem:[#allocation10] sm:$0xff] }
 0x37c   :  { %v1518_v15 = vadd.f32 %v1510_v34, %v1470_v2  ;;  %5078 = vpow2.f32 %v1141_v59  ;;  %v8436_v34 = vld [vmem:[#allocation80_spill] sm:$0xff] }
 0x37d   :  { %v7083_v32 = vpop.permute.xlu1 %1740  ;;  %5080 = vpow2.f32 %v7117_v24  ;;  %v1137_v24 = vmul.f32 1.442695, %v898_v21 }
 0x37e   :  { %2666 = vmatmul.bf16.gmra.mxu3 %v2478_v35  ;;  %v8426_v35 = vld [vmem:[#allocation35_spill] sm:$0xff]  ;;  %5082 = vpow2.f32 %v1157_v54 }
 0x37f   :  { %v1220_v10 = vmul.f32 %v7080_v39, %v8426_v35  ;;  %v1364_v39 = vmul.f32 %v7089_v16, %v8429_v23  ;;  %v5059_v35 = vpop.eup %5058  ;;  %v8434_v23 = vld [vmem:[#allocation66_spill] sm:$0xff]  ;;  %5084 = vpow2.f32 %v1105_v41 }
 0x380   :  { %v5061_v44 = vpop.eup %5060  ;;  %v1558_v17 = vmul.f32 %v5059_v35, %v7027_v51  ;;  %v1508_v51 = vmul.f32 %v5051_v42, %v8434_v23  ;;  %v1173_v42 = vmul.f32 1.442695, %v918_v25  ;;  %5086 = vpow2.f32 %v1121_v50 }
 0x381   :  { %v1276_v12 = vadd.f32 %v1268_v63, %v1220_v10  ;;  %v4543_v63 = vld [vmem:[#allocation10 + $0x10] sm:$0xff]  ;;  %v5063_v48 = vpop.eup %5062  ;;  %v1606_v1 = vmul.f32 %v5061_v44, %v7045_v0  ;;  %v1169_v25 = vmul.f32 1.442695, %v916_v62 }
 0x382   :  { %v8432_v10 = vld [vmem:[#allocation49_spill] sm:$0xff]  ;;  %2115 = vmatpush.bf16.msrb.mxu0 %v4543_v63  ;;  %v5065_v60 = vpop.eup %5064  ;;  %v1654_v47 = vmul.f32 %v5063_v48, %v7051_v11 }
 0x383   :  { %v1324_v13 = vadd.f32 %v1316_v52, %v1276_v12  ;;  %v1412_v16 = vmul.f32 %v7094_v8, %v8432_v10  ;;  %v4542_v52 = vld [vmem:[#allocation10 + $0x8] sm:$0xff]  ;;  %v1460_v8 = vmul.f32 %v7111_v26, %v8433_v7  ;;  %v5067_v30 = vpop.eup %5066  ;;  %v1566_v26 = vadd.f32 %v1558_v17, %v1518_v15  ;;  %v8437_v48 = vld [vmem:[#allocation89_spill] sm:$0xff] }
 0x384   :  { %v5069_v18 = vpop.eup %5068  ;;  %v7167_v56 = vadd.f32 1.0, %v5065_v60  ;;  %v1702_v11 = vmul.f32 %v5067_v30, %v7070_v58  ;;  %v917_v10 = vmul.f32 %v6501_v37, %v8415_v53  ;;  %v1155_v37 = vmul.f32 1.442695, %v7133_v36 }
 0x385   :  { %v1372_v45 = vadd.f32 %v1364_v39, %v1324_v13  ;;  %v907_v39 = vmul.f32 %v8397_v22, %v8410_v3  ;;  %v5071_v35 = vpop.eup %5070  ;;  %v4580_v22 = vld [vmem:[%s8104_s9 + $0x78] sm:$0xff]  ;;  %v1614_v13 = vadd.f32 %v1606_v1, %v1566_v26  ;;  %v1604_v63 = vmul.f32 %v5069_v18, %v8436_v34  ;;  %v4579_v3 = vld [vmem:[%s8104_s9 + $0x70] sm:$0xff]  ;;  %v8440_v26 = vld [vmem:[#allocation87_spill] sm:$0xff] }
 0x386   :  { %v7125_v40 = vpop.permute.xlu1 %1788  ;;  %2116 = vmatpush.bf16.msrb.mxu0 %v4542_v52  ;;  %v5073_v5 = vpop.eup %5072  ;;  %5088 = vrcp.f32 %v7167_v56  ;;  %v1750_v41 = vmul.f32 %v5071_v35, %v7083_v32  ;;  %v1171_v36 = vmul.f32 1.442695, %v917_v10  ;;  %v8441_v35 = vld [vmem:[#allocation84_spill] sm:$0xff]  ;;  %v8444_v10 = vld [vmem:[#allocation82_spill] sm:$0xff]  ;;  %vm2049_vm0 = vweird.f32 %v7167_v56 }
 0x387   :  { %v1420_v12 = vadd.f32 %v1412_v16, %v1372_v45  ;;  %v5075_v27 = vpop.eup %5074  ;;  %v1662_v16 = vadd.f32 %v1654_v47, %v1614_v13  ;;  %v1153_v2 = vmul.f32 1.442695, %v907_v39  ;;  %5090 = vpow2.f32 %v1173_v42  ;;  %v8442_v42 = vld [vmem:[#allocation95_spill] sm:$0xff] }
 0x388   :  { %v5077_v44 = vpop.eup %5076  ;;  %5092 = vpow2.f32 %v7115_v46  ;;  %v1798_v32 = vmul.f32 %v5075_v27, %v7125_v40  ;;  %v8439_v46 = vld [vmem:[#allocation76_spill] sm:$0xff]  ;;  %v1749_v47 = vmul.f32 %v5073_v5, %v8440_v26 }
 0x389   :  { %v1468_v0 = vadd.f32 %v1460_v8, %v1420_v12  ;;  %v5079_v58 = vpop.eup %5078  ;;  %v1652_v45 = vmul.f32 %v5077_v44, %v8437_v48  ;;  %v1710_v52 = vadd.f32 %v1702_v11, %v1662_v16  ;;  %v8438_v8 = vld [vmem:[#allocation60_spill] sm:$0xff]  ;;  %5094 = vpow2.f32 %v1137_v24  ;;  %v4577_v11 = vld [vmem:[%s8104_s9 + $0x60] sm:$0xff] }
 0x38a   :  { %2117 = vmatpush.bf16.msrb.mxu0 %v4541_v29  ;;  %v5081_v17 = vpop.eup %5080  ;;  %5096 = vpow2.f32 %v7120_v55  ;;  %v4578_v40 = vld [vmem:[%s8104_s9 + $0x68] sm:$0xff]  ;;  %v1757_v16 = vadd.f32 %v1749_v47, %v8444_v10 }
 0x38b   :  { %v1516_v20 = vadd.f32 %v1508_v51, %v1468_v0  ;;  %v5083_v60 = vpop.eup %5082  ;;  %v1700_v54 = vmul.f32 %v5081_v17, %v8438_v8  ;;  %v1758_v15 = vadd.f32 %v1750_v41, %v1710_v52  ;;  %5098 = vpow2.f32 %v1153_v2  ;;  %v8445_v41 = vld [vmem:[#allocation98_spill] sm:$0xff] }
 0x38c   :  { %v5085_v50 = vpop.eup %5084  ;;  %5100 = vpow2.f32 %v1155_v37  ;;  %v8446_v37 = vld [vmem:[#allocation71_spill] sm:$0xff] }
 0x38d   :  { %v1564_v59 = vadd.f32 %v1556_v28, %v1516_v20  ;;  %v5087_v30 = vpop.eup %5086  ;;  %v1748_v23 = vmul.f32 %v5085_v50, %v8439_v46  ;;  %v1806_v39 = vadd.f32 %v1798_v32, %v1758_v15  ;;  %5102 = vpow2.f32 %v1169_v25  ;;  %v8443_v20 = vld [vmem:[#allocation29_spill] sm:$0xff]  ;;  %v1929_v32 = vpop.permute.xlu0 %1928  ;;  %v8448_v46 = vld [vmem:[#allocation23_spill] sm:$0xff] }
 0x38e   :  { %2721 = vmatpush.bf16.msra.mxu0 %v4580_v22  ;;  %v7195_v51 = vpop.eup %5088  ;;  %v1796_v0 = vmul.f32 %v5087_v30, %v8441_v35  ;;  %5104 = vpow2.f32 %v1171_v36  ;;  %v8447_v30 = vld [vmem:[#allocation16_spill] sm:$0xff] }
 0x38f   :  { %v7153_v31 = vpop.permute.xlu1 %1836  ;;  %v1612_v7 = vadd.f32 %v1604_v63, %v1564_v59  ;;  %v5091_v55 = vpop.eup %5090  ;;  %v2045_v34 = vmul.f32 %v7195_v51, %v7167_v56  ;;  %vm2050_vm1 = vweird.f32 %v7195_v51 }
 0x390   :  { %v1846_v1 = vmul.f32 %v5079_v58, %v7153_v31  ;;  %v5093_v29 = vpop.eup %5092  ;;  %v1925_v58 = vpop.permute.xlu2 %1924  ;;  %vm2051_vm2 = vmor %vm2049_vm0, %vm2050_vm1 }
 0x391   :  { %v1660_v12 = vadd.f32 %v1652_v45, %v1612_v7  ;;  %v5095_v28 = vpop.eup %5094  ;;  %v1797_v22 = vmul.f32 %v5093_v29, %v8442_v42  ;;  %v8452_v29 = vld [vmem:[#allocation81_spill] sm:$0xff]  ;;  %v4574_v42 = vld [vmem:[%s8104_s9 + $0x48] sm:$0xff] }
 0x392   :  { %2722 = vmatpush.bf16.msra.mxu0 %v4579_v3  ;;  %v1854_v43 = vadd.f32 %v1846_v1, %v1806_v39  ;;  %v5097_v27 = vpop.eup %5096  ;;  %v1844_v5 = vmul.f32 %v5095_v28, %v8443_v20  ;;  %v8449_v39 = vld [vmem:[#allocation17_spill] sm:$0xff]  ;;  %v2055_v28 = vand.u32 2147483648, %v7167_v56 }
 0x393   :  { %v1708_v31 = vadd.f32 %v1700_v54, %v1660_v12  ;;  %v5099_v44 = vpop.eup %5098  ;;  %v1805_v17 = vadd.f32 %v1797_v22, %v1757_v16  ;;  %v2046_v54 = vsub.f32 1.0, %v2045_v34  ;;  %v1959_v12 = vmul.f32 %v7049_v33, %v8447_v30  ;;  %v8453_v22 = vld [vmem:[#allocation19_spill] sm:$0xff]  ;;  %v8456_v34 = vld [vmem:[#allocation78_spill] sm:$0xff] }
 0x394   :  { %v5101_v59 = vpop.eup %5100  ;;  %v1892_v45 = vmul.f32 %v5099_v44, %v7025_v19  ;;  %v2056_v10 = vor.u32 1.1754944e-38, %v2055_v28  ;;  %v4573_v16 = vld [vmem:[%s8104_s9 + $0x40] sm:$0xff]  ;;  %v8461_v28 = vmov 1  }
 0x395   :  { %v1756_v24 = vadd.f32 %v1748_v23, %v1708_v31  ;;  %v5103_v3 = vpop.eup %5102  ;;  %v1893_v52 = vmul.f32 %v5101_v59, %v8446_v37  ;;  %v8451_v31 = vld [vmem:[#allocation18_spill] sm:$0xff]  ;;  %v4747_v59 = vld [vmem:[%s8106_s11] ss:$0 sm:$0xff] }
 0x396   :  { %2723 = vmatpush.bf16.msra.mxu0 %v4578_v40  ;;  %v1940_v8 = vmul.f32 %v5103_v3, %v1925_v58  ;;  %v5105_v50 = vpop.eup %5104  ;;  %v4575_v40 = vld [vmem:[%s8104_s9 + $0x50] sm:$0xff]  ;;  %v1961_v35 = vmul.f32 %v8452_v29, %v8451_v31  ;;  %v1977_v37 = vmul.f32 %v4747_v59, %v8448_v46 }
 0x397   :  { %v1804_v48 = vadd.f32 %v1796_v0, %v1756_v24  ;;  %v1941_v1 = vmul.f32 %v5105_v50, %v1929_v32  ;;  %v1962_v24 = vmul.f32 %v7056_v57, %v8453_v22  ;;  %v4746_v22 = vld [vmem:[%s8102_s7 + $0x1] ss:$0 sm:$0xff] }
 0x398   :  { %v1885_v21 = vpop.permute.xlu1 %1884 }
 0x399   :  { %v1894_v18 = vmul.f32 %v5083_v60, %v1885_v21  ;;  %v1845_v21 = vmul.f32 %v5097_v27, %v8445_v41  ;;  %v4576_v60 = vld [vmem:[%s8104_s9 + $0x58] sm:$0xff]  ;;  %v1852_v7 = vadd.f32 %v1844_v5, %v1804_v48  ;;  %v8455_v5 = vld [vmem:[#allocation20_spill] sm:$0xff]  ;;  %v8458_v41 = vld [vmem:[#allocation21_spill] sm:$0xff] }
 0x39a   :  { %2724 = vmatpush.bf16.msra.mxu0 %v4577_v11  ;;  %v8459_v48 = vld [vmem:[#allocation22_spill] sm:$0xff] }
 0x39b   :  { %v1902_v63 = vadd.f32 %v1894_v18, %v1854_v43  ;;  %v1853_v15 = vadd.f32 %v1845_v21, %v1805_v17  ;;  %v1900_v19 = vadd.f32 %v1892_v45, %v1852_v7  ;;  %v8450_v18 = vld [vmem:[#allocation73_spill] sm:$0xff]  ;;  %v2053_v43 = vand.u32 2147483647, %v7167_v56 }
 0x39d   :  { %v1901_v36 = vadd.f32 %v1893_v52, %v1853_v15  ;;  %v1948_v26 = vadd.f32 %v1940_v8, %v1900_v19  ;;  %vm2054_vm3 = vcmp.eq.f32.partialorder %v2053_v43, 8.507059e+37 }
 0x39e   :  { %2725 = vmatpush.bf16.msra.mxu0 %v4576_v60 }
 0x39f   :  { %v1949_v0 = vadd.f32 %v1941_v1, %v1901_v36 }
 0x3a1   :  { %v1933_v13 = vpop.permute.xlu1 %1932 }
 0x3a2   :  { %v1942_v62 = vmul.f32 %v5091_v55, %v1933_v13  ;;  %v1960_v55 = vmul.f32 %v8450_v18, %v8449_v39  ;;  %2726 = vmatpush.bf16.msra.mxu0 %v4575_v40  ;;  %v8454_v13 = vld [vmem:[#allocation27_spill] sm:$0xff] }
 0x3a3   :  { %v1956_v11 = vmul.f32 %v1948_v26, %v8454_v13 }
 0x3a4   :  { %v1950_v2 = vadd.f32 %v1942_v62, %v1902_v63  ;;  %v1963_v63 = vmul.f32 %v8456_v34, %v8455_v5  ;;  %v8457_v62 = vld [vmem:[#allocation25_spill] sm:$0xff] }
 0x3a5   :  { %v1957_v44 = vmul.f32 %v1949_v0, %v8457_v62  ;;  %v1964_v57 = vmul.f32 %v1956_v11, %v8458_v41 }
 0x3a6   :  { %v1958_v25 = vmul.f32 %v1950_v2, %v8415_v53  ;;  %v2047_v53 = vmul.f32 %v7195_v51, %v2046_v54  ;;  %2727 = vmatpush.bf16.msra.mxu0 %v4574_v42 }
 0x3a7   :  { %v1965_v45 = vmul.f32 %v1957_v44, %v8459_v48 }
 0x3a8   :  { %v1966_v23 = vmul.f32 %v1958_v25, %v8448_v46  ;;  %v2048_v27 = vadd.f32 %v7195_v51, %v2047_v53  ;;  %v7252_v25 = vpop.f32.mrf.mxu2 }
 0x3aa   :  { %v1967_v47 = vadd.f32 %v1966_v23, %v1959_v12  ;;  %v2052_v21 = vsel %vm2051_vm2, %v7195_v51, %v2048_v27  ;;  %2728 = vmatpush.bf16.msra.mxu0 %v4573_v16  ;;  %v2672_v51 = vpack.c.bf16 %v8420_v49, %v8420_v49 }
 0x3ab   :  { %v2057_v3 = vsel %vm2054_vm3, %v2056_v10, %v2052_v21 }
 0x3ac   :  { %v1968_v33 = vadd.f32 %v1967_v47, %v1960_v55  ;;  %v2059_v52 = vmul.f32 %v2057_v3, %v7040_v9 }
 0x3ae   :  { %v1969_v20 = vadd.f32 %v1968_v33, %v1961_v35 }
 0x3b0   :  { %v1970_v56 = vadd.f32 %v1969_v20, %v1962_v24  ;;  %v7254_v15 = vpop.f32.mrf.mxu2  ;;  %v8462_v20 = vmov 2  }
 0x3b1   :  { %v7320_v3 = vadd.f32 %v4746_v22, %v7254_v15 }
 0x3b2   :  { %v1971_v58 = vadd.f32 %v1970_v56, %v1963_v63 }
 0x3b4   :  { %v1972_v2 = vadd.f32 %v1971_v58, %v1964_v57 }
 0x3b6   :  { %v1973_v17 = vadd.f32 %v1972_v2, %v1965_v45 }
 0x3b8   :  { %v1978_v32 = vadd.f32 %v1977_v37, %v1973_v17  ;;  %v2505_v19 = vpop.f32.mrf.mxu2 }
 0x3b9   :  { %v7314_v59 = vadd.f32 %v4746_v22, %v2505_v19 }
 0x3ba   :  { %v2060_v60 = vmul.f32 %v2059_v52, %v1978_v32  ;;  %v8463_v52 = vmov 3  }
 0x3bb   :  { %v2533_v17 = vand.u32 2147483647, %v7314_v59 }
 0x3bc   :  { %v2061_v7 = vpack.c.bf16 %v2060_v60, %v2060_v60 }
 0x3be   :  { %2118 = vmatmul.bf16.vlgmr.msrb.gmra.mxu0 %v2061_v7 }
 0x3c0   :  { %v2508_v12 = vpop.f32.mrf.mxu2 }
 0x3c1   :  { %v7308_v10 = vadd.f32 %v4746_v22, %v2508_v12 }
 0x3c3   :  { %v2534_v58 = vand.u32 2147483647, %v7308_v10 }
 0x3c5   :  { %v2542_v2 = vsub.f32 0.0, %v2534_v58 }
 0x3c7   :  { %v2553_v7 = vmul.f32 1.442695, %v2542_v2 }
 0x3c8   :  { %v2511_v40 = vpop.f32.mrf.mxu2 }
 0x3c9   :  { %v7304_v62 = vadd.f32 %v4746_v22, %v2511_v40 }
 0x3cb   :  { %v2535_v41 = vand.u32 2147483647, %v7304_v62 }
 0x3cd   :  { %v2543_v48 = vsub.f32 0.0, %v2535_v41 }
 0x3ce   :  { %2729 = vmatmul.bf16.vlgmr.msra.gmra.mxu0 %v2672_v51  ;;  %v2532_v51 = vand.u32 2147483647, %v7320_v3 }
 0x3cf   :  { %v2555_v37 = vmul.f32 1.442695, %v2543_v48  ;;  %v2526_v48 = vmax.f32 %v7308_v10, 0.0 }
 0x3d0   :  { %v2514_v35 = vpop.f32.mrf.mxu2 }
 0x3d1   :  { %v2652_v8 = vpop.f32.mrf.mxu3  ;;  %v7300_v5 = vadd.f32 %v4746_v22, %v2514_v35  ;;  %v8464_v35 = vmov 4  }
 0x3d3   :  { %v2536_v44 = vand.u32 2147483647, %v7300_v5 }
 0x3d5   :  { %v2544_v57 = vsub.f32 0.0, %v2536_v44 }
 0x3d7   :  { %v2557_v45 = vmul.f32 1.442695, %v2544_v57 }
 0x3d8   :  { %v2517_v42 = vpop.f32.mrf.mxu2 }
 0x3d9   :  { %v2654_v54 = vpop.f32.mrf.mxu3  ;;  %v7292_v13 = vadd.f32 %v4746_v22, %v2517_v42 }
 0x3db   :  { %v2537_v27 = vand.u32 2147483647, %v7292_v13 }
 0x3dd   :  { %v2545_v63 = vsub.f32 0.0, %v2537_v27 }
 0x3df   :  { %v2559_v16 = vmul.f32 1.442695, %v2545_v63  ;;  %v2528_v63 = vmax.f32 %v7300_v5, 0.0 }
 0x3e0   :  { %v2520_v24 = vpop.f32.mrf.mxu2 }
 0x3e1   :  { %v2657_v50 = vpop.f32.mrf.mxu3  ;;  %v7294_v11 = vadd.f32 %v4746_v22, %v2520_v24  ;;  %5106 = vpow2.f32 %v2559_v16 }
 0x3e3   :  { %v2538_v34 = vand.u32 2147483647, %v7294_v11  ;;  %v2530_v22 = vmax.f32 %v7294_v11, 0.0  ;;  %v2527_v11 = vmax.f32 %v7304_v62, 0.0 }
 0x3e5   :  { %v2546_v56 = vsub.f32 0.0, %v2538_v34 }
 0x3e7   :  { %v2561_v21 = vmul.f32 1.442695, %v2546_v56  ;;  %v5107_v32 = vpop.eup %5106 }
 0x3e9   :  { %v2659_v1 = vpop.f32.mrf.mxu3  ;;  %5108 = vpow2.f32 %v2561_v21 }
 0x3ea   :  { %5110 = vpow2.f32 %v2557_v45 }
 0x3eb   :  { %5112 = vpow2.f32 %v2555_v37  ;;  %v2525_v37 = vmax.f32 %v7314_v59, 0.0 }
 0x3ec   :  { %5114 = vpow2.f32 %v2553_v7 }
 0x3ef   :  { %v5109_v60 = vpop.eup %5108 }
 0x3f0   :  { %v5111_v15 = vpop.eup %5110 }
 0x3f1   :  { %v2662_v9 = vpop.f32.mrf.mxu3  ;;  %v5113_v12 = vpop.eup %5112 }
 0x3f9   :  { %v2664_v23 = vpop.f32.mrf.mxu3 }
 0x401   :  { %v2667_v26 = vpop.f32.mrf.mxu3 }
 0x409   :  { %v2669_v0 = vpop.f32.mrf.mxu3 }
 0x43b   :  { %v7256_v30 = vpop.f32.mrf.mxu0 }
 0x43c   :  { %8460 = vst [vmem:[#allocation51_spill] sm:$0xff] %v7256_v30 }
 0x443   :  { %v2121_v46 = vpop.f32.mrf.mxu0 }
 0x44b   :  { %v2730_v36 = vpop.f32.mrf.mxu0 }
 0x44c   :  { %v7258_v39 = vmul.f32 %v2730_v36, %v2652_v8  ;;  %v7260_v18 = vmul.f32 %v2730_v36, %v2654_v54  ;;  %v7262_v55 = vmul.f32 %v2730_v36, %v2657_v50  ;;  %v7267_v47 = vmul.f32 %v2730_v36, %v2662_v9 }
 0x44d   :  { %v7269_v31 = vmul.f32 %v2730_v36, %v2667_v26  ;;  %v7271_v29 = vmul.f32 %v2730_v36, %v2659_v1  ;;  %v7276_v33 = vmul.f32 %v2730_v36, %v2669_v0  ;;  %v7278_v43 = vmul.f32 %v2730_v36, %v2664_v23  ;;  %v5115_v23 = vpop.eup %5114 }
 0x44e   :  { %3161 = vperm.xlu1 %4681, %v7262_v55   ;;  %3156 = vperm.xlu0 %4680, %v7260_v18   ;;  %v2541_v8 = vsub.f32 0.0, %v2533_v17  ;;  %v2569_v54 = vadd.f32 1.0, %v5107_v32  ;;  %v2570_v50 = vadd.f32 1.0, %v5109_v60  ;;  %v2540_v1 = vsub.f32 0.0, %v2532_v51 }
 0x44f   :  { %3151 = vperm.xlu2 %4679, %v7258_v39   ;;  %v2568_v9 = vadd.f32 1.0, %v5111_v15  ;;  %v2567_v36 = vadd.f32 1.0, %v5113_v12  ;;  %v8465_v60 = vmov 5   ;;  %v2524_v51 = vmax.f32 %v7320_v3, 0.0 }
 0x450   :  { %v2551_v19 = vmul.f32 1.442695, %v2541_v8  ;;  %5116 = vlog2.f32 %v2569_v54  ;;  %v2549_v46 = vmul.f32 1.442695, %v2540_v1 }
 0x451   :  { %5118 = vlog2.f32 %v2570_v50 }
 0x452   :  { %5120 = vpow2.f32 %v2551_v19  ;;  %v7386_v19 = vld [vmem:[#allocation8 + $0x10] sm:$0xff] }
 0x453   :  { %v2732_v53 = vpop.f32.mrf.mxu0  ;;  %5122 = vlog2.f32 %v2568_v9  ;;  %v7394_v9 = vperm.slane %v7386_v19, 0  ;;  %v7397_v12 = vperm.slane %v7386_v19, 1 }
 0x454   :  { %5124 = vpow2.f32 %v2549_v46  ;;  %v2566_v53 = vadd.f32 1.0, %v5115_v23 }
 0x455   :  { %5126 = vlog2.f32 %v2567_v36  ;;  %v8466_v36 = vmov 6  }
 0x456   :  { %3171 = vperm.xlu1 %4681, %v7267_v47   ;;  %3181 = vperm.xlu0 %4680, %v7269_v31   ;;  %v5117_v40 = vpop.eup %5116  ;;  %5128 = vlog2.f32 %v2566_v53 }
 0x457   :  { %3166 = vperm.xlu2 %4679, %v7271_v29   ;;  %v5119_v26 = vpop.eup %5118  ;;  %v2584_v42 = vmul.f32 0.6931472, %v5117_v40 }
 0x458   :  { %v5121_v0 = vpop.eup %5120  ;;  %v2586_v24 = vmul.f32 0.6931472, %v5119_v26 }
 0x459   :  { %v5123_v27 = vpop.eup %5122 }
 0x45a   :  { %v5125_v34 = vpop.eup %5124  ;;  %v2582_v44 = vmul.f32 0.6931472, %v5123_v27  ;;  %v7339_v16 = vadd.f32 %v2586_v24, %v2530_v22 }
 0x45b   :  { %v5127_v41 = vpop.eup %5126 }
 0x45c   :  { %v2580_v57 = vmul.f32 0.6931472, %v5127_v41  ;;  %v7346_v5 = vadd.f32 %v2582_v44, %v2528_v63  ;;  %v5129_v58 = vpop.eup %5128 }
 0x45d   :  { %v2578_v45 = vmul.f32 0.6931472, %v5129_v58 }
 0x45e   :  { %3186 = vperm.xlu1 %4681, %v7276_v33   ;;  %4683 = vset.pattern.permute.xlu0 %v8461_v28  ;;  %v7354_v2 = vadd.f32 %v2580_v57, %v2527_v11 }
 0x45f   :  { %3176 = vperm.xlu2 %4679, %v7278_v43   ;;  %3210 = vperm.xlu0 %4683, %v7260_v18   ;;  %v7363_v32 = vadd.f32 %v2578_v45, %v2526_v48 }
 0x466   :  { %4684 = vset.pattern.permute.xlu1 %v8461_v28 }
 0x467   :  { %4682 = vset.pattern.permute.xlu2 %v8461_v28  ;;  %3214 = vperm.xlu1 %4684, %v7262_v55   ;;  %v2529_v28 = vmax.f32 %v7292_v13, 0.0  ;;  %v2564_v13 = vadd.f32 1.0, %v5125_v34 }
 0x468   :  { %3230 = vperm.xlu0 %4683, %v7269_v31   ;;  %3206 = vperm.xlu2 %4682, %v7258_v39  }
 0x469   :  { %v7337_v56 = vadd.f32 %v2584_v42, %v2529_v28 }
 0x46b   :  { %v7351_v21 = vadd.f32 %v7339_v16, %v7337_v56 }
 0x46d   :  { %v7358_v17 = vadd.f32 %v7351_v21, %v7346_v5  ;;  %v2755_v11 = vmul.f32 %v7394_v9, %v7351_v21  ;;  %v2764_v58 = vmul.f32 %v7397_v12, %v7351_v21 }
 0x46f   :  { %3222 = vperm.xlu1 %4684, %v7267_v47   ;;  %v7368_v10 = vadd.f32 %v7358_v17, %v7354_v2 }
 0x470   :  { %4686 = vset.pattern.permute.xlu0 %v8462_v20  ;;  %3218 = vperm.xlu2 %4682, %v7271_v29  }
 0x471   :  { %3258 = vperm.xlu0 %4686, %v7260_v18   ;;  %v7376_v59 = vadd.f32 %v7368_v10, %v7363_v32  ;;  %v2762_v28 = vmul.f32 %v7397_v12, %v7368_v10 }
 0x473   :  { %v2915_v27 = vmul.f32 1.442695, %v2762_v28 }
 0x477   :  { %3234 = vperm.xlu1 %4684, %v7276_v33  }
 0x478   :  { %3226 = vperm.xlu2 %4682, %v7278_v43  }
 0x479   :  { %3278 = vperm.xlu0 %4686, %v7269_v31  }
 0x47f   :  { %4687 = vset.pattern.permute.xlu1 %v8462_v20 }
 0x480   :  { %4685 = vset.pattern.permute.xlu2 %v8462_v20  ;;  %3262 = vperm.xlu1 %4687, %v7262_v55   ;;  %v2565_v20 = vadd.f32 1.0, %v5121_v0 }
 0x481   :  { %4689 = vset.pattern.permute.xlu0 %v8463_v52  ;;  %3254 = vperm.xlu2 %4685, %v7258_v39  }
 0x482   :  { %3306 = vperm.xlu0 %4689, %v7260_v18   ;;  %5130 = vlog2.f32 %v2565_v20 }
 0x483   :  { %5132 = vlog2.f32 %v2564_v13 }
 0x488   :  { %3270 = vperm.xlu1 %4687, %v7267_v47   ;;  %v5131_v62 = vpop.eup %5130 }
 0x489   :  { %3266 = vperm.xlu2 %4685, %v7271_v29   ;;  %v5133_v7 = vpop.eup %5132 }
 0x48a   :  { %3326 = vperm.xlu0 %4689, %v7269_v31   ;;  %v2574_v8 = vmul.f32 0.6931472, %v5133_v7 }
 0x48c   :  { %v7380_v15 = vadd.f32 %v2574_v8, %v2524_v51  ;;  %v2919_v8 = vmul.f32 1.442695, %v2764_v58 }
 0x490   :  { %3282 = vperm.xlu1 %4687, %v7276_v33  }
 0x491   :  { %3274 = vperm.xlu2 %4685, %v7278_v43  }
 0x492   :  { %4692 = vset.pattern.permute.xlu0 %v8464_v35 }
 0x493   :  { %3354 = vperm.xlu0 %4692, %v7260_v18  }
 0x498   :  { %4690 = vset.pattern.permute.xlu1 %v8463_v52 }
 0x499   :  { %4688 = vset.pattern.permute.xlu2 %v8463_v52  ;;  %3310 = vperm.xlu1 %4690, %v7262_v55   ;;  %v2576_v52 = vmul.f32 0.6931472, %v5131_v62  ;;  %v8467_v62 = vmov 7  }
 0x49a   :  { %3302 = vperm.xlu2 %4688, %v7258_v39  }
 0x49b   :  { %3374 = vperm.xlu0 %4692, %v7269_v31   ;;  %v7372_v54 = vadd.f32 %v2576_v52, %v2525_v37  ;;  %v2903_v52 = vmul.f32 1.442695, %v2755_v11 }
 0x49d   :  { %v7384_v1 = vadd.f32 %v7376_v59, %v7372_v54 }
 0x49f   :  { %v7391_v3 = vadd.f32 %v7384_v1, %v7380_v15  ;;  %v2751_v34 = vmul.f32 %v7394_v9, %v7384_v1  ;;  %v2760_v41 = vmul.f32 %v7397_v12, %v7384_v1 }
 0x4a1   :  { %3318 = vperm.xlu1 %4690, %v7267_v47   ;;  %v2750_v23 = vmul.f32 %v7394_v9, %v7391_v3  ;;  %v2759_v40 = vmul.f32 %v7397_v12, %v7391_v3  ;;  %v2895_v48 = vmul.f32 1.442695, %v2751_v34  ;;  %v2911_v37 = vmul.f32 1.442695, %v2760_v41 }
 0x4a2   :  { %3314 = vperm.xlu2 %4688, %v7271_v29  }
 0x4a3   :  { %4695 = vset.pattern.permute.xlu0 %v8465_v60  ;;  %v2893_v26 = vmul.f32 1.442695, %v2750_v23  ;;  %v2909_v53 = vmul.f32 1.442695, %v2759_v40  ;;  %v2752_v23 = vmul.f32 %v7394_v9, %v7376_v59  ;;  %v7441_v40 = vperm.slane %v7386_v19, 2 }
 0x4a4   :  { %3402 = vperm.xlu0 %4695, %v7260_v18  }
 0x4a5   :  { %5134 = vpow2.f32 %v2893_v26  ;;  %v2897_v34 = vmul.f32 1.442695, %v2752_v23  ;;  %v2754_v23 = vmul.f32 %v7394_v9, %v7358_v17 }
 0x4a6   :  { %5136 = vpow2.f32 %v2909_v53 }
 0x4a9   :  { %v3152_v50 = vpop.permute.xlu2 %3151  ;;  %3330 = vperm.xlu1 %4690, %v7276_v33  }
 0x4aa   :  { %3322 = vperm.xlu2 %4688, %v7278_v43  }
 0x4ab   :  { %v5135_v20 = vpop.eup %5134 }
 0x4ac   :  { %3422 = vperm.xlu0 %4695, %v7269_v31   ;;  %v5137_v63 = vpop.eup %5136  ;;  %v3189_v13 = vmul.f32 %v5135_v20, %v3152_v50  ;;  %v2765_v20 = vmul.f32 %v7397_v12, %v7339_v16 }
 0x4b1   :  { %v3167_v46 = vpop.permute.xlu2 %3166  ;;  %4693 = vset.pattern.permute.xlu1 %v8464_v35 }
 0x4b2   :  { %4691 = vset.pattern.permute.xlu2 %v8464_v35  ;;  %3358 = vperm.xlu1 %4693, %v7262_v55   ;;  %v2753_v35 = vmul.f32 %v7394_v9, %v7368_v10 }
 0x4b3   :  { %3350 = vperm.xlu2 %4691, %v7258_v39  }
 0x4b4   :  { %4698 = vset.pattern.permute.xlu0 %v8466_v36  ;;  %v2899_v42 = vmul.f32 1.442695, %v2753_v35  ;;  %v2761_v35 = vmul.f32 %v7397_v12, %v7376_v59 }
 0x4b5   :  { %3450 = vperm.xlu0 %4698, %v7260_v18  }
 0x4b6   :  { %5138 = vpow2.f32 %v2899_v42  ;;  %v2756_v42 = vmul.f32 %v7394_v9, %v7339_v16 }
 0x4b7   :  { %5140 = vpow2.f32 %v2915_v27 }
 0x4b8   :  { %5142 = vpow2.f32 %v2895_v48 }
 0x4b9   :  { %v7409_v0 = vpop.permute.xlu2 %3176  ;;  %5144 = vpow2.f32 %v2911_v37 }
 0x4ba   :  { %3366 = vperm.xlu1 %4693, %v7267_v47   ;;  %5146 = vpow2.f32 %v2903_v52  ;;  %v2769_v52 = vmul.f32 %v7441_v40, %v7384_v1 }
 0x4bb   :  { %3362 = vperm.xlu2 %4691, %v7271_v29   ;;  %5148 = vpow2.f32 %v2919_v8 }
 0x4bc   :  { %v5139_v50 = vpop.eup %5138  ;;  %5150 = vpow2.f32 %v2897_v34  ;;  %v2771_v34 = vmul.f32 %v7441_v40, %v7368_v10 }
 0x4bd   :  { %3470 = vperm.xlu0 %4698, %v7269_v31   ;;  %v5141_v26 = vpop.eup %5140  ;;  %v3192_v28 = vmul.f32 %v5139_v50, %v3167_v46  ;;  %v2768_v46 = vmul.f32 %v7441_v40, %v7391_v3 }
 0x4be   :  { %v5143_v41 = vpop.eup %5142 }
 0x4bf   :  { %v2925_v37 = vmul.f32 1.442695, %v2768_v46  ;;  %v8468_v46 = vmov 8  }
 0x4c0   :  { %v7418_v22 = vpop.permute.xlu1 %3161  ;;  %v3157_v24 = vpop.permute.xlu0 %3156 }
 0x4c1   :  { %v3190_v50 = vmul.f32 %v5143_v41, %v3157_v24 }
 0x4c2   :  { %v3207_v44 = vpop.permute.xlu2 %3206  ;;  %3378 = vperm.xlu1 %4693, %v7276_v33  }
 0x4c3   :  { %v3237_v57 = vmul.f32 %v5137_v63, %v3207_v44  ;;  %3370 = vperm.xlu2 %4691, %v7278_v43   ;;  %v2913_v44 = vmul.f32 1.442695, %v2761_v35 }
 0x4c5   :  { %v7430_v45 = vadd.f32 %v3237_v57, %v3189_v13  ;;  %4701 = vset.pattern.permute.xlu0 %v8467_v62  ;;  %v2905_v13 = vmul.f32 1.442695, %v2756_v42  ;;  %v2921_v57 = vmul.f32 1.442695, %v2765_v20  ;;  %5152 = vpow2.f32 %v2913_v44 }
 0x4c6   :  { %3498 = vperm.xlu0 %4701, %v7260_v18   ;;  %v2763_v42 = vmul.f32 %v7397_v12, %v7358_v17  ;;  %v2927_v20 = vmul.f32 1.442695, %v2769_v52 }
 0x4c7   :  { %5154 = vpow2.f32 %v2905_v13 }
 0x4c8   :  { %v7434_v7 = vpop.permute.xlu1 %3171  ;;  %v7436_v51 = vpop.permute.xlu0 %3181  ;;  %5156 = vpow2.f32 %v2921_v57  ;;  %v2917_v41 = vmul.f32 1.442695, %v2763_v42  ;;  %v2931_v57 = vmul.f32 1.442695, %v2771_v34 }
 0x4c9   :  { %5158 = vpow2.f32 %v2925_v37  ;;  %v2766_v37 = vmul.f32 0.0, %v7397_v12  ;;  %v2774_v12 = vmul.f32 %v7441_v40, %v7339_v16 }
 0x4ca   :  { %v3219_v53 = vpop.permute.xlu2 %3218  ;;  %4696 = vset.pattern.permute.xlu1 %v8465_v60  ;;  %5160 = vpow2.f32 %v2927_v20 }
 0x4cb   :  { %v3240_v27 = vmul.f32 %v5141_v26, %v3219_v53  ;;  %4694 = vset.pattern.permute.xlu2 %v8465_v60  ;;  %3406 = vperm.xlu1 %4696, %v7262_v55   ;;  %v5145_v60 = vpop.eup %5144  ;;  %v2923_v34 = vmul.f32 1.442695, %v2766_v37 }
 0x4cc   :  { %3398 = vperm.xlu2 %4694, %v7258_v39   ;;  %v5147_v58 = vpop.eup %5146 }
 0x4cd   :  { %v7453_v63 = vadd.f32 %v3240_v27, %v3192_v28  ;;  %v5149_v8 = vpop.eup %5148  ;;  %v3194_v35 = vmul.f32 %v5147_v58, %v7409_v0  ;;  %v2901_v0 = vmul.f32 1.442695, %v2754_v23 }
 0x4ce   :  { %3518 = vperm.xlu0 %4701, %v7269_v31   ;;  %v5151_v44 = vpop.eup %5150 }
 0x4cf   :  { %v5153_v13 = vpop.eup %5152  ;;  %5162 = vpow2.f32 %v2901_v0 }
 0x4d0   :  { %v7458_v11 = vpop.permute.xlu1 %3186  ;;  %v5155_v58 = vpop.eup %5154  ;;  %5164 = vpow2.f32 %v2917_v41 }
 0x4d1   :  { %v3211_v48 = vpop.permute.xlu0 %3210  ;;  %v5157_v52 = vpop.eup %5156  ;;  %5166 = vpow2.f32 %v2931_v57 }
 0x4d2   :  { %v3238_v26 = vmul.f32 %v5145_v60, %v3211_v48  ;;  %v3227_v53 = vpop.permute.xlu2 %3226  ;;  %v2757_v60 = vmul.f32 0.0, %v7394_v9 }
 0x4d3   :  { %v3242_v28 = vmul.f32 %v5149_v8, %v3227_v53  ;;  %3414 = vperm.xlu1 %4696, %v7267_v47   ;;  %v3191_v8 = vmul.f32 %v5151_v44, %v7418_v22  ;;  %v3195_v53 = vmul.f32 %v5155_v58, %v7436_v51  ;;  %v2773_v51 = vmul.f32 %v7441_v40, %v7351_v21 }
 0x4d4   :  { %v7468_v27 = vadd.f32 %v3238_v26, %v3190_v50  ;;  %3410 = vperm.xlu2 %4694, %v7271_v29   ;;  %v5159_v26 = vpop.eup %5158  ;;  %v2907_v9 = vmul.f32 1.442695, %v2757_v60 }
 0x4d5   :  { %v7471_v24 = vadd.f32 %v3242_v28, %v3194_v35  ;;  %v5161_v44 = vpop.eup %5160 }
 0x4d6   :  { %4704 = vset.pattern.permute.xlu0 %v8468_v46  ;;  %v5163_v41 = vpop.eup %5162  ;;  %5168 = vpow2.f32 %v2907_v9 }
 0x4d7   :  { %3546 = vperm.xlu0 %4704, %v7260_v18   ;;  %v5165_v60 = vpop.eup %5164  ;;  %5170 = vpow2.f32 %v2923_v34  ;;  %v3193_v57 = vmul.f32 %v5163_v41, %v7434_v7 }
 0x4d9   :  { %v3215_v48 = vpop.permute.xlu1 %3214 }
 0x4da   :  { %v3239_v50 = vmul.f32 %v5153_v13, %v3215_v48  ;;  %v3231_v23 = vpop.permute.xlu0 %3230  ;;  %v2937_v13 = vmul.f32 1.442695, %v2774_v12  ;;  %v2935_v48 = vmul.f32 1.442695, %v2773_v51 }
 0x4db   :  { %v3243_v35 = vmul.f32 %v5157_v52, %v3231_v23  ;;  %v3255_v28 = vpop.permute.xlu2 %3254  ;;  %3426 = vperm.xlu1 %4696, %v7276_v33   ;;  %v7494_v52 = vperm.slane %v7386_v19, 3  ;;  %v2770_v23 = vmul.f32 %v7441_v40, %v7376_v59 }
 0x4dc   :  { %v7482_v42 = vadd.f32 %v3239_v50, %v3191_v8  ;;  %v3285_v20 = vmul.f32 %v5159_v26, %v3255_v28  ;;  %3418 = vperm.xlu2 %4694, %v7278_v43   ;;  %v5167_v8 = vpop.eup %5166  ;;  %5172 = vpow2.f32 %v2937_v13 }
 0x4dd   :  { %v3251_v22 = vadd.f32 %v3243_v35, %v3195_v53  ;;  %5174 = vpow2.f32 %v2935_v48  ;;  %v2777_v7 = vmul.f32 %v7494_v52, %v7391_v3  ;;  %v5169_v28 = vpop.eup %5168  ;;  %v2778_v12 = vmul.f32 %v7494_v52, %v7384_v1 }
 0x4de   :  { %v7490_v0 = vadd.f32 %v3285_v20, %v7430_v45  ;;  %v5171_v34 = vpop.eup %5170  ;;  %v2929_v51 = vmul.f32 1.442695, %v2770_v23 }
 0x4df   :  { %3566 = vperm.xlu0 %4704, %v7269_v31   ;;  %v2941_v41 = vmul.f32 1.442695, %v2777_v7  ;;  %v2943_v48 = vmul.f32 1.442695, %v2778_v12 }
 0x4e0   :  { %5176 = vpow2.f32 %v2929_v51 }
 0x4e1   :  { %v3223_v58 = vpop.permute.xlu1 %3222  ;;  %5178 = vpow2.f32 %v2941_v41 }
 0x4e2   :  { %v3241_v37 = vmul.f32 %v5165_v60, %v3223_v58  ;;  %v5173_v13 = vpop.eup %5172  ;;  %v3196_v60 = vmul.f32 %v5169_v28, %v7458_v11  ;;  %v2780_v11 = vmul.f32 %v7494_v52, %v7368_v10  ;;  %5180 = vpow2.f32 %v2943_v48 }
 0x4e3   :  { %v3259_v50 = vpop.permute.xlu0 %3258  ;;  %v3267_v45 = vpop.permute.xlu2 %3266  ;;  %4699 = vset.pattern.permute.xlu1 %v8466_v36 }
 0x4e4   :  { %v7500_v26 = vadd.f32 %v3241_v37, %v3193_v57  ;;  %v3286_v53 = vmul.f32 %v5161_v44, %v3259_v50  ;;  %v3288_v35 = vmul.f32 %v5167_v8, %v3267_v45  ;;  %4697 = vset.pattern.permute.xlu2 %v8466_v36  ;;  %3454 = vperm.xlu1 %4699, %v7262_v55   ;;  %v8469_v36 = vmov 9  }
 0x4e5   :  { %3446 = vperm.xlu2 %4697, %v7258_v39   ;;  %v2772_v45 = vmul.f32 %v7441_v40, %v7358_v17  ;;  %v2947_v12 = vmul.f32 1.442695, %v2780_v11  ;;  %v8470_v11 = vmov 10  }
 0x4e6   :  { %v3294_v9 = vadd.f32 %v3286_v53, %v7468_v27  ;;  %v7509_v20 = vadd.f32 %v3288_v35, %v7453_v63  ;;  %v5175_v27 = vpop.eup %5174  ;;  %v2783_v35 = vmul.f32 %v7494_v52, %v7339_v16 }
 0x4e7   :  { %4707 = vset.pattern.permute.xlu0 %v8469_v36  ;;  %v2933_v7 = vmul.f32 1.442695, %v2772_v45  ;;  %v5177_v28 = vpop.eup %5176 }
 0x4e8   :  { %3594 = vperm.xlu0 %4707, %v7260_v18   ;;  %v2953_v51 = vmul.f32 1.442695, %v2783_v35  ;;  %v5179_v41 = vpop.eup %5178 }
 0x4e9   :  { %v3235_v44 = vpop.permute.xlu1 %3234  ;;  %5182 = vpow2.f32 %v2933_v7 }
 0x4ea   :  { %v3244_v58 = vmul.f32 %v5171_v34, %v3235_v44  ;;  %v2775_v44 = vmul.f32 0.0, %v7441_v40  ;;  %5184 = vpow2.f32 %v2947_v12 }
 0x4eb   :  { %v3279_v57 = vpop.permute.xlu0 %3278  ;;  %v3275_v63 = vpop.permute.xlu2 %3274  ;;  %5186 = vpow2.f32 %v2953_v51 }
 0x4ec   :  { %v7516_v37 = vadd.f32 %v3244_v58, %v3196_v60  ;;  %v3291_v8 = vmul.f32 %v5173_v13, %v3279_v57  ;;  %v3290_v50 = vmul.f32 %v5175_v27, %v3275_v63  ;;  %3462 = vperm.xlu1 %4699, %v7267_v47   ;;  %v5181_v60 = vpop.eup %5180  ;;  %v2939_v40 = vmul.f32 1.442695, %v2775_v44 }
 0x4ed   :  { %3458 = vperm.xlu2 %4697, %v7271_v29   ;;  %v2782_v63 = vmul.f32 %v7494_v52, %v7351_v21 }
 0x4ee   :  { %v3299_v23 = vadd.f32 %v3291_v8, %v3251_v22  ;;  %v7525_v53 = vadd.f32 %v3290_v50, %v7471_v24  ;;  %v7533_v24 = vperm.slane %v7386_v19, 4  ;;  %5188 = vpow2.f32 %v2939_v40 }
 0x4ef   :  { %v2951_v7 = vmul.f32 1.442695, %v2782_v63 }
 0x4f0   :  { %3614 = vperm.xlu0 %4707, %v7269_v31   ;;  %v2787_v45 = vmul.f32 %v7533_v24, %v7384_v1 }
 0x4f1   :  { %5190 = vpow2.f32 %v2951_v7 }
 0x4f2   :  { %v3263_v34 = vpop.permute.xlu1 %3262 }
 0x4f3   :  { %v3287_v13 = vmul.f32 %v5177_v28, %v3263_v34  ;;  %v2959_v34 = vmul.f32 1.442695, %v2787_v45 }
 0x4f4   :  { %v3307_v22 = vpop.permute.xlu0 %3306  ;;  %v3303_v58 = vpop.permute.xlu2 %3302  ;;  %3474 = vperm.xlu1 %4699, %v7276_v33  }
 0x4f5   :  { %v7536_v48 = vadd.f32 %v3287_v13, %v7482_v42  ;;  %v3334_v27 = vmul.f32 %v5181_v60, %v3307_v22  ;;  %v3333_v57 = vmul.f32 %v5179_v41, %v3303_v58  ;;  %3466 = vperm.xlu2 %4697, %v7278_v43   ;;  %v5183_v42 = vpop.eup %5182  ;;  %v2786_v22 = vmul.f32 %v7533_v24, %v7391_v3 }
 0x4f6   :  { %v5185_v28 = vpop.eup %5184  ;;  %5192 = vpow2.f32 %v2959_v34  ;;  %v2781_v34 = vmul.f32 %v7494_v52, %v7358_v17 }
 0x4f7   :  { %v3342_v8 = vadd.f32 %v3334_v27, %v3294_v9  ;;  %v7542_v50 = vadd.f32 %v3333_v57, %v7490_v0  ;;  %v5187_v51 = vpop.eup %5186  ;;  %v2779_v0 = vmul.f32 %v7494_v52, %v7376_v59  ;;  %v2957_v63 = vmul.f32 1.442695, %v2786_v22 }
 0x4f8   :  { %4710 = vset.pattern.permute.xlu0 %v8470_v11  ;;  %v5189_v57 = vpop.eup %5188  ;;  %v2949_v22 = vmul.f32 1.442695, %v2781_v34 }
 0x4f9   :  { %3642 = vperm.xlu0 %4710, %v7260_v18  }
 0x4fa   :  { %v3271_v35 = vpop.permute.xlu1 %3270 }
 0x4fb   :  { %v3289_v12 = vmul.f32 %v5183_v42, %v3271_v35  ;;  %v5191_v35 = vpop.eup %5190 }
 0x4fc   :  { %v3327_v44 = vpop.permute.xlu0 %3326  ;;  %v3315_v9 = vpop.permute.xlu2 %3314  ;;  %4702 = vset.pattern.permute.xlu1 %v8467_v62 }
 0x4fd   :  { %v7552_v41 = vadd.f32 %v3289_v12, %v7500_v26  ;;  %v3339_v13 = vmul.f32 %v5187_v51, %v3327_v44  ;;  %v3336_v60 = vmul.f32 %v5185_v28, %v3315_v9  ;;  %4700 = vset.pattern.permute.xlu2 %v8467_v62  ;;  %3502 = vperm.xlu1 %4702, %v7262_v55   ;;  %v2945_v62 = vmul.f32 1.442695, %v2779_v0  ;;  %v5193_v28 = vpop.eup %5192 }
 0x4fe   :  { %3494 = vperm.xlu2 %4700, %v7258_v39   ;;  %v2792_v26 = vmul.f32 %v7533_v24, %v7339_v16  ;;  %v7573_v44 = vperm.slane %v7386_v19, 5 }
 0x4ff   :  { %v3347_v58 = vadd.f32 %v3339_v13, %v3299_v23  ;;  %v7560_v27 = vadd.f32 %v3336_v60, %v7509_v20  ;;  %5194 = vpow2.f32 %v2945_v62  ;;  %v8471_v60 = vmov 11  }
 0x500   :  { %v2969_v42 = vmul.f32 1.442695, %v2792_v26  ;;  %5196 = vpow2.f32 %v2957_v63  ;;  %v2796_v13 = vmul.f32 %v7573_v44, %v7384_v1 }
 0x501   :  { %3662 = vperm.xlu0 %4710, %v7269_v31  }
 0x502   :  { %v3283_v40 = vpop.permute.xlu1 %3282  ;;  %5198 = vpow2.f32 %v2969_v42 }
 0x503   :  { %v3292_v45 = vmul.f32 %v5189_v57, %v3283_v40  ;;  %v2784_v40 = vmul.f32 0.0, %v7494_v52  ;;  %5200 = vpow2.f32 %v2949_v22  ;;  %v2791_v52 = vmul.f32 %v7533_v24, %v7351_v21 }
 0x504   :  { %v3323_v7 = vpop.permute.xlu2 %3322 }
 0x505   :  { %v7566_v23 = vadd.f32 %v3292_v45, %v7516_v37  ;;  %v3338_v20 = vmul.f32 %v5191_v35, %v3323_v7  ;;  %v3355_v12 = vpop.permute.xlu0 %3354  ;;  %3510 = vperm.xlu1 %4702, %v7267_v47   ;;  %v2789_v37 = vmul.f32 %v7533_v24, %v7368_v10  ;;  %v5195_v26 = vpop.eup %5194  ;;  %v2975_v45 = vmul.f32 1.442695, %v2796_v13 }
 0x506   :  { %v3382_v51 = vmul.f32 %v5193_v28, %v3355_v12  ;;  %3506 = vperm.xlu2 %4700, %v7271_v29   ;;  %v2955_v12 = vmul.f32 1.442695, %v2784_v40  ;;  %v2967_v22 = vmul.f32 1.442695, %v2791_v52 }
 0x507   :  { %v7576_v9 = vadd.f32 %v3338_v20, %v7525_v53  ;;  %v2963_v62 = vmul.f32 1.442695, %v2789_v37  ;;  %v5197_v53 = vpop.eup %5196  ;;  %v2801_v37 = vmul.f32 %v7573_v44, %v7339_v16 }
 0x508   :  { %v3390_v0 = vadd.f32 %v3382_v51, %v3342_v8  ;;  %v5199_v42 = vpop.eup %5198 }
 0x509   :  { %4713 = vset.pattern.permute.xlu0 %v8471_v60  ;;  %5202 = vpow2.f32 %v2963_v62 }
 0x50a   :  { %3690 = vperm.xlu0 %4713, %v7260_v18   ;;  %5204 = vpow2.f32 %v2975_v45  ;;  %v2788_v45 = vmul.f32 %v7533_v24, %v7376_v59 }
 0x50b   :  { %v3311_v57 = vpop.permute.xlu1 %3310  ;;  %5206 = vpow2.f32 %v2955_v12  ;;  %v8472_v12 = vmov 12  }
 0x50c   :  { %v3335_v63 = vmul.f32 %v5195_v26, %v3311_v57  ;;  %v2985_v57 = vmul.f32 1.442695, %v2801_v37  ;;  %5208 = vpow2.f32 %v2967_v22  ;;  %v2961_v52 = vmul.f32 1.442695, %v2788_v45 }
 0x50d   :  { %v3375_v35 = vpop.permute.xlu0 %3374  ;;  %v3351_v7 = vpop.permute.xlu2 %3350  ;;  %3522 = vperm.xlu1 %4702, %v7276_v33   ;;  %v2798_v45 = vmul.f32 %v7573_v44, %v7368_v10 }
 0x50e   :  { %v7587_v8 = vadd.f32 %v3335_v63, %v7536_v48  ;;  %v3387_v28 = vmul.f32 %v5199_v42, %v3375_v35  ;;  %v3381_v20 = vmul.f32 %v5197_v53, %v3351_v7  ;;  %3514 = vperm.xlu2 %4700, %v7278_v43   ;;  %v5201_v48 = vpop.eup %5200  ;;  %v7608_v35 = vperm.slane %v7386_v19, 6 }
 0x50f   :  { %v5203_v62 = vpop.eup %5202  ;;  %5210 = vpow2.f32 %v2985_v57 }
 0x510   :  { %v3395_v34 = vadd.f32 %v3387_v28, %v3347_v58  ;;  %v7593_v51 = vadd.f32 %v3381_v20, %v7542_v50  ;;  %v5205_v58 = vpop.eup %5204  ;;  %v2805_v20 = vmul.f32 %v7608_v35, %v7384_v1  ;;  %5212 = vpow2.f32 %v2961_v52 }
 0x512   :  { %3714 = vperm.xlu0 %4713, %v7276_v33  }
 0x513   :  { %v3319_v13 = vpop.permute.xlu1 %3318 }
 0x514   :  { %v3337_v26 = vmul.f32 %v5201_v48, %v3319_v13 }
 0x515   :  { %v3363_v40 = vpop.permute.xlu2 %3362  ;;  %4705 = vset.pattern.permute.xlu1 %v8468_v46 }
 0x516   :  { %v7600_v50 = vadd.f32 %v3337_v26, %v7552_v41  ;;  %v3384_v53 = vmul.f32 %v5203_v62, %v3363_v40  ;;  %v3403_v63 = vpop.permute.xlu0 %3402  ;;  %4703 = vset.pattern.permute.xlu2 %v8468_v46  ;;  %3550 = vperm.xlu1 %4705, %v7262_v55   ;;  %v2795_v41 = vmul.f32 %v7573_v44, %v7391_v3  ;;  %v5207_v46 = vpop.eup %5206  ;;  %v2991_v26 = vmul.f32 1.442695, %v2805_v20 }
 0x517   :  { %v3430_v42 = vmul.f32 %v5205_v58, %v3403_v63  ;;  %3542 = vperm.xlu2 %4703, %v7258_v39   ;;  %v5209_v22 = vpop.eup %5208  ;;  %v2790_v58 = vmul.f32 %v7533_v24, %v7358_v17 }
 0x518   :  { %v7611_v7 = vadd.f32 %v3384_v53, %v7560_v27  ;;  %v2973_v13 = vmul.f32 1.442695, %v2795_v41  ;;  %v5211_v57 = vpop.eup %5210 }
 0x519   :  { %v3438_v28 = vadd.f32 %v3430_v42, %v3390_v0  ;;  %v2810_v42 = vmul.f32 %v7608_v35, %v7339_v16  ;;  %v2965_v41 = vmul.f32 1.442695, %v2790_v58  ;;  %v5213_v20 = vpop.eup %5212 }
 0x51a   :  { %4717 = vset.pattern.permute.xlu0 %v8472_v12  ;;  %5214 = vpow2.f32 %v2973_v13 }
 0x51b   :  { %3738 = vperm.xlu0 %4717, %v7260_v18   ;;  %v3331_v37 = vpop.permute.xlu1 %3330  ;;  %5216 = vpow2.f32 %v2991_v26  ;;  %v3001_v13 = vmul.f32 1.442695, %v2810_v42 }
 0x51c   :  { %v3340_v48 = vmul.f32 %v5207_v46, %v3331_v37  ;;  %v8473_v46 = vmov 15   ;;  %v2979_v37 = vmul.f32 1.442695, %v2798_v45  ;;  %5218 = vpow2.f32 %v2965_v41 }
 0x51d   :  { %v3371_v27 = vpop.permute.xlu2 %3370 }
 0x51e   :  { %v7620_v62 = vadd.f32 %v3340_v48, %v7566_v23  ;;  %v3386_v40 = vmul.f32 %v5209_v22, %v3371_v27  ;;  %v3423_v0 = vpop.permute.xlu0 %3422  ;;  %3558 = vperm.xlu1 %4705, %v7267_v47   ;;  %5220 = vpow2.f32 %v2979_v37 }
 0x51f   :  { %v3435_v53 = vmul.f32 %v5211_v57, %v3423_v0  ;;  %3554 = vperm.xlu2 %4703, %v7271_v29   ;;  %v7642_v0 = vperm.slane %v7386_v19, 7  ;;  %5222 = vpow2.f32 %v3001_v13 }
 0x520   :  { %v7627_v63 = vadd.f32 %v3386_v40, %v7576_v9  ;;  %v2793_v9 = vmul.f32 0.0, %v7533_v24  ;;  %v5215_v22 = vpop.eup %5214 }
 0x521   :  { %v3443_v23 = vadd.f32 %v3435_v53, %v3395_v34  ;;  %v5217_v34 = vpop.eup %5216  ;;  %v2800_v53 = vmul.f32 %v7573_v44, %v7351_v21 }
 0x522   :  { %v2971_v24 = vmul.f32 1.442695, %v2793_v9  ;;  %v5219_v41 = vpop.eup %5218 }
 0x523   :  { %4725 = vset.pattern.permute.xlu0 %v8473_v46  ;;  %v2983_v19 = vmul.f32 1.442695, %v2800_v53  ;;  %v8474_v53 = vmov 13  }
 0x524   :  { %3878 = vperm.xlu0 %4725, %v7258_v39   ;;  %v3359_v52 = vpop.permute.xlu1 %3358  ;;  %5224 = vpow2.f32 %v2971_v24  ;;  %v5221_v37 = vpop.eup %5220 }
 0x525   :  { %v3383_v48 = vmul.f32 %v5213_v20, %v3359_v52  ;;  %5226 = vpow2.f32 %v2983_v19  ;;  %v7670_v19 = vld [vmem:[#allocation8 + $0x18] sm:$0xff] }
 0x526   :  { %v3399_v27 = vpop.permute.xlu2 %3398  ;;  %3570 = vperm.xlu1 %4705, %v7276_v33  }
 0x527   :  { %v7638_v26 = vadd.f32 %v3383_v48, %v7587_v8  ;;  %v3429_v57 = vmul.f32 %v5215_v22, %v3399_v27  ;;  %v3451_v40 = vpop.permute.xlu0 %3450  ;;  %3562 = vperm.xlu2 %4703, %v7278_v43   ;;  %v2814_v8 = vmul.f32 %v7642_v0, %v7384_v1  ;;  %v5223_v22 = vpop.eup %5222  ;;  %v2797_v27 = vmul.f32 %v7573_v44, %v7376_v59 }
 0x528   :  { %v3478_v58 = vmul.f32 %v5217_v34, %v3451_v40 }
 0x529   :  { %v7647_v45 = vadd.f32 %v3429_v57, %v7593_v51  ;;  %v3007_v48 = vmul.f32 1.442695, %v2814_v8  ;;  %v2977_v24 = vmul.f32 1.442695, %v2797_v27 }
 0x52a   :  { %v3486_v42 = vadd.f32 %v3478_v58, %v3438_v28  ;;  %v5225_v40 = vpop.eup %5224 }
 0x52b   :  { %5228 = vpow2.f32 %v3007_v48  ;;  %v2799_v48 = vmul.f32 %v7573_v44, %v7358_v17 }
 0x52c   :  { %3882 = vperm.xlu0 %4725, %v7260_v18   ;;  %v3367_v20 = vpop.permute.xlu1 %3366  ;;  %5230 = vpow2.f32 %v2977_v24 }
 0x52d   :  { %v3385_v52 = vmul.f32 %v5219_v41, %v3367_v20 }
 0x52e   :  { %v3411_v9 = vpop.permute.xlu2 %3410  ;;  %4708 = vset.pattern.permute.xlu1 %v8469_v36 }
 0x52f   :  { %v7654_v51 = vadd.f32 %v3385_v52, %v7600_v50  ;;  %v3432_v28 = vmul.f32 %v5221_v37, %v3411_v9  ;;  %v3471_v13 = vpop.permute.xlu0 %3470  ;;  %4706 = vset.pattern.permute.xlu2 %v8469_v36  ;;  %3598 = vperm.xlu1 %4708, %v7262_v55   ;;  %v2804_v50 = vmul.f32 %v7608_v35, %v7391_v3 }
 0x530   :  { %v3483_v34 = vmul.f32 %v5223_v22, %v3471_v13  ;;  %3590 = vperm.xlu2 %4706, %v7258_v39   ;;  %v2819_v36 = vmul.f32 %v7642_v0, %v7339_v16  ;;  %v7680_v13 = vperm.slane %v7670_v19, 0 }
 0x531   :  { %v7662_v57 = vadd.f32 %v3432_v28, %v7611_v7  ;;  %v2989_v20 = vmul.f32 1.442695, %v2804_v50  ;;  %v5227_v7 = vpop.eup %5226 }
 0x532   :  { %v3491_v58 = vadd.f32 %v3483_v34, %v3443_v23  ;;  %v3017_v37 = vmul.f32 1.442695, %v2819_v36  ;;  %v5229_v22 = vpop.eup %5228  ;;  %v2823_v36 = vmul.f32 %v7680_v13, %v7384_v1 }
 0x533   :  { %5232 = vpow2.f32 %v2989_v20  ;;  %v5231_v24 = vpop.eup %5230 }
 0x534   :  { %4732 = vset.pattern.permute.xlu0 %v8474_v53  ;;  %v3379_v8 = vpop.permute.xlu1 %3378  ;;  %5234 = vpow2.f32 %v3017_v37 }
 0x535   :  { %v3388_v41 = vmul.f32 %v5225_v40, %v3379_v8  ;;  %3798 = vperm.xlu0 %4732, %v7267_v47   ;;  %v2981_v40 = vmul.f32 1.442695, %v2799_v48  ;;  %v8475_v8 = vmov 14  }
 0x536   :  { %v3419_v52 = vpop.permute.xlu2 %3418 }
 0x537   :  { %v7673_v9 = vadd.f32 %v3388_v41, %v7620_v62  ;;  %v3434_v23 = vmul.f32 %v5227_v7, %v3419_v52  ;;  %3606 = vperm.xlu1 %4708, %v7267_v47   ;;  %v2807_v62 = vmul.f32 %v7608_v35, %v7368_v10  ;;  %v2802_v52 = vmul.f32 0.0, %v7573_v44 }
 0x538   :  { %v3499_v28 = vpop.permute.xlu0 %3498  ;;  %3602 = vperm.xlu2 %4706, %v7271_v29   ;;  %5236 = vpow2.f32 %v2981_v40  ;;  %v2828_v40 = vmul.f32 %v7680_v13, %v7339_v16 }
 0x539   :  { %v7683_v27 = vadd.f32 %v3434_v23, %v7627_v63  ;;  %v3526_v34 = vmul.f32 %v5229_v22, %v3499_v28  ;;  %v2995_v7 = vmul.f32 1.442695, %v2807_v62  ;;  %v5233_v20 = vpop.eup %5232  ;;  %v2987_v44 = vmul.f32 1.442695, %v2802_v52 }
 0x53a   :  { %v5235_v37 = vpop.eup %5234  ;;  %v2809_v62 = vmul.f32 %v7608_v35, %v7351_v21 }
 0x53b   :  { %v3534_v50 = vadd.f32 %v3526_v34, %v3486_v42  ;;  %v3023_v42 = vmul.f32 1.442695, %v2823_v36  ;;  %5238 = vpow2.f32 %v2995_v7 }
 0x53d   :  { %4733 = vset.pattern.permute.xlu0 %v8475_v8  ;;  %v3407_v41 = vpop.permute.xlu1 %3406  ;;  %5240 = vpow2.f32 %v3023_v42  ;;  %v2806_v42 = vmul.f32 %v7608_v35, %v7376_v59 }
 0x53e   :  { %v3431_v63 = vmul.f32 %v5231_v24, %v3407_v41  ;;  %3830 = vperm.xlu0 %4733, %v7258_v39   ;;  %5242 = vpow2.f32 %v2987_v44 }
 0x53f   :  { %v3447_v23 = vpop.permute.xlu2 %3446  ;;  %3618 = vperm.xlu1 %4708, %v7276_v33  }
 0x540   :  { %v7694_v48 = vadd.f32 %v3431_v63, %v7638_v26  ;;  %v3477_v22 = vmul.f32 %v5233_v20, %v3447_v23  ;;  %v3519_v28 = vpop.permute.xlu0 %3518  ;;  %3610 = vperm.xlu2 %4706, %v7278_v43   ;;  %v5237_v26 = vpop.eup %5236  ;;  %v2999_v63 = vmul.f32 1.442695, %v2809_v62  ;;  %v3033_v23 = vmul.f32 1.442695, %v2828_v40 }
 0x541   :  { %v3531_v34 = vmul.f32 %v5235_v37, %v3519_v28  ;;  %v5239_v7 = vpop.eup %5238  ;;  %v7715_v28 = vperm.slane %v7670_v19, 1 }
 0x542   :  { %v7700_v24 = vadd.f32 %v3477_v22, %v7647_v45  ;;  %5244 = vpow2.f32 %v2999_v63 }
 0x543   :  { %v3539_v41 = vadd.f32 %v3531_v34, %v3491_v58  ;;  %v5241_v37 = vpop.eup %5240  ;;  %5246 = vpow2.f32 %v3033_v23  ;;  %v2832_v62 = vmul.f32 %v7715_v28, %v7384_v1  ;;  %v2808_v23 = vmul.f32 %v7608_v35, %v7358_v17 }
 0x544   :  { %v5243_v44 = vpop.eup %5242 }
 0x545   :  { %v3415_v36 = vpop.permute.xlu1 %3414 }
 0x546   :  { %v3433_v20 = vmul.f32 %v5237_v26, %v3415_v36  ;;  %3846 = vperm.xlu0 %4733, %v7267_v47   ;;  %v2993_v26 = vmul.f32 1.442695, %v2806_v42 }
 0x547   :  { %v3459_v52 = vpop.permute.xlu2 %3458  ;;  %4711 = vset.pattern.permute.xlu1 %v8470_v11 }
 0x548   :  { %v7707_v45 = vadd.f32 %v3433_v20, %v7654_v51  ;;  %v3480_v58 = vmul.f32 %v5239_v7, %v3459_v52  ;;  %4709 = vset.pattern.permute.xlu2 %v8470_v11  ;;  %3646 = vperm.xlu1 %4711, %v7262_v55   ;;  %v2813_v11 = vmul.f32 %v7642_v0, %v7391_v3  ;;  %v5245_v7 = vpop.eup %5244  ;;  %5248 = vpow2.f32 %v2993_v26 }
 0x549   :  { %v3547_v22 = vpop.permute.xlu0 %3546  ;;  %3638 = vperm.xlu2 %4709, %v7258_v39  }
 0x54a   :  { %v7718_v34 = vadd.f32 %v3480_v58, %v7662_v57  ;;  %v3574_v51 = vmul.f32 %v5241_v37, %v3547_v22  ;;  %v3005_v63 = vmul.f32 1.442695, %v2813_v11  ;;  %v3039_v57 = vmul.f32 1.442695, %v2832_v62 }
 0x54b   :  { %v2837_v62 = vmul.f32 %v7715_v28, %v7339_v16 }
 0x54c   :  { %v3582_v40 = vadd.f32 %v3574_v51, %v3534_v50  ;;  %v5247_v50 = vpop.eup %5246  ;;  %5250 = vpow2.f32 %v3005_v63 }
 0x54d   :  { %v3427_v36 = vpop.permute.xlu1 %3426  ;;  %5252 = vpow2.f32 %v3039_v57  ;;  %v3049_v63 = vmul.f32 1.442695, %v2837_v62 }
 0x54e   :  { %v3436_v20 = vmul.f32 %v5243_v44, %v3427_v36  ;;  %3854 = vperm.xlu0 %4733, %v7269_v31   ;;  %v2997_v44 = vmul.f32 1.442695, %v2808_v23  ;;  %v5249_v26 = vpop.eup %5248 }
 0x54f   :  { %v3467_v52 = vpop.permute.xlu2 %3466 }
 0x550   :  { %v7726_v58 = vadd.f32 %v3436_v20, %v7673_v9  ;;  %v3482_v37 = vmul.f32 %v5245_v7, %v3467_v52  ;;  %3654 = vperm.xlu1 %4711, %v7267_v47   ;;  %v2816_v9 = vmul.f32 %v7642_v0, %v7368_v10  ;;  %v2811_v7 = vmul.f32 0.0, %v7608_v35 }
 0x551   :  { %v3567_v42 = vpop.permute.xlu0 %3566  ;;  %3650 = vperm.xlu2 %4709, %v7271_v29   ;;  %5254 = vpow2.f32 %v2997_v44  ;;  %v2818_v35 = vmul.f32 %v7642_v0, %v7351_v21 }
 0x552   :  { %v7733_v22 = vadd.f32 %v3482_v37, %v7683_v27  ;;  %v3579_v51 = vmul.f32 %v5247_v50, %v3567_v42  ;;  %v3011_v20 = vmul.f32 1.442695, %v2816_v9  ;;  %v5251_v52 = vpop.eup %5250  ;;  %v3003_v42 = vmul.f32 1.442695, %v2811_v7 }
 0x553   :  { %v5253_v23 = vpop.eup %5252 }
 0x554   :  { %v3587_v11 = vadd.f32 %v3579_v51, %v3539_v41  ;;  %5256 = vpow2.f32 %v3011_v20 }
 0x555   :  { %5258 = vpow2.f32 %v3049_v63 }
 0x556   :  { %v3455_v36 = vpop.permute.xlu1 %3454  ;;  %4742 = vset.pattern.permute.xlu0 %v8473_v46  ;;  %5260 = vpow2.f32 %v3003_v42 }
 0x557   :  { %v3479_v27 = vmul.f32 %v5249_v26, %v3455_v36  ;;  %v5255_v62 = vpop.eup %5254  ;;  %v3015_v26 = vmul.f32 1.442695, %v2818_v35 }
 0x558   :  { %v3495_v37 = vpop.permute.xlu2 %3494  ;;  %3666 = vperm.xlu1 %4711, %v7276_v33  }
 0x559   :  { %v7743_v41 = vadd.f32 %v3479_v27, %v7694_v48  ;;  %v3525_v57 = vmul.f32 %v5251_v52, %v3495_v37  ;;  %3658 = vperm.xlu2 %4709, %v7278_v43   ;;  %5262 = vpow2.f32 %v3015_v26 }
 0x55a   :  { %v3595_v50 = vpop.permute.xlu0 %3594  ;;  %v5257_v27 = vpop.eup %5256 }
 0x55b   :  { %v7749_v51 = vadd.f32 %v3525_v57, %v7700_v24  ;;  %v3622_v9 = vmul.f32 %v5253_v23, %v3595_v50  ;;  %v2815_v24 = vmul.f32 %v7642_v0, %v7376_v59  ;;  %v2822_v23 = vmul.f32 %v7680_v13, %v7391_v3 }
 0x55d   :  { %v7751_v44 = vadd.f32 %v3622_v9, %v3582_v40  ;;  %v5259_v40 = vpop.eup %5258  ;;  %v3009_v35 = vmul.f32 1.442695, %v2815_v24  ;;  %v3021_v26 = vmul.f32 1.442695, %v2822_v23  ;;  %v2825_v23 = vmul.f32 %v7680_v13, %v7368_v10 }
 0x55e   :  { %v3463_v48 = vpop.permute.xlu1 %3462  ;;  %v5261_v50 = vpop.eup %5260 }
 0x55f   :  { %v3481_v36 = vmul.f32 %v5255_v62, %v3463_v48  ;;  %v4564_v62 = vld [vmem:[#allocation7 + $0x78] sm:$0xff]  ;;  %5264 = vpow2.f32 %v3009_v35  ;;  %v2820_v35 = vmul.f32 0.0, %v7642_v0 }
 0x560   :  { %v3507_v52 = vpop.permute.xlu2 %3506  ;;  %4714 = vset.pattern.permute.xlu1 %v8471_v60  ;;  %4001 = vmatpush.bf16.msrb.mxu0 %v4564_v62  ;;  %5266 = vpow2.f32 %v3021_v26 }
 0x561   :  { %v7755_v20 = vadd.f32 %v3481_v36, %v7707_v45  ;;  %v3528_v7 = vmul.f32 %v5257_v27, %v3507_v52  ;;  %4712 = vset.pattern.permute.xlu2 %v8471_v60  ;;  %3694 = vperm.xlu1 %4714, %v7262_v55   ;;  %v7766_v45 = vperm.slane %v7670_v19, 2  ;;  %v5263_v27 = vpop.eup %5262 }
 0x562   :  { %v3615_v37 = vpop.permute.xlu0 %3614  ;;  %3686 = vperm.xlu2 %4712, %v7258_v39  }
 0x563   :  { %v7763_v63 = vadd.f32 %v3528_v7, %v7718_v34  ;;  %v3627_v57 = vmul.f32 %v5259_v40, %v3615_v37  ;;  %v2846_v9 = vmul.f32 %v7766_v45, %v7339_v16  ;;  %v4563_v34 = vld [vmem:[#allocation7 + $0x70] sm:$0xff]  ;;  %v2817_v7 = vmul.f32 %v7642_v0, %v7358_v17 }
 0x564   :  { %4002 = vmatpush.bf16.msrb.mxu0 %v4563_v34  ;;  %v3019_v0 = vmul.f32 1.442695, %v2820_v35 }
 0x565   :  { %v3635_v42 = vadd.f32 %v3627_v57, %v3587_v11  ;;  %v3065_v11 = vmul.f32 1.442695, %v2846_v9  ;;  %v5265_v62 = vpop.eup %5264 }
 0x566   :  { %v3475_v48 = vpop.permute.xlu1 %3474 }
 0x567   :  { %v3484_v36 = vmul.f32 %v5261_v50, %v3475_v48  ;;  %5268 = vpow2.f32 %v3065_v11  ;;  %v4562_v50 = vld [vmem:[#allocation7 + $0x68] sm:$0xff]  ;;  %v2827_v11 = vmul.f32 %v7680_v13, %v7351_v21 }
 0x568   :  { %v3515_v52 = vpop.permute.xlu2 %3514  ;;  %4003 = vmatpush.bf16.msrb.mxu0 %v4562_v50  ;;  %v4560_v50 = vld [vmem:[#allocation7 + $0x58] sm:$0xff] }
 0x569   :  { %v7775_v40 = vadd.f32 %v3484_v36, %v7726_v58  ;;  %v3530_v37 = vmul.f32 %v5263_v27, %v3515_v52  ;;  %3702 = vperm.xlu1 %4714, %v7267_v47   ;;  %v3013_v58 = vmul.f32 1.442695, %v2817_v7  ;;  %v3027_v36 = vmul.f32 1.442695, %v2825_v23  ;;  %v4561_v27 = vld [vmem:[#allocation7 + $0x60] sm:$0xff] }
 0x56a   :  { %3698 = vperm.xlu2 %4712, %v7271_v29  }
 0x56b   :  { %v7780_v24 = vadd.f32 %v3530_v37, %v7733_v22  ;;  %v7782_v57 = vpop.permute.xlu0 %3642  ;;  %v5267_v22 = vpop.eup %5266  ;;  %5270 = vpow2.f32 %v3013_v58 }
 0x56c   :  { %5272 = vpow2.f32 %v3027_v36  ;;  %4004 = vmatpush.bf16.msrb.mxu0 %v4561_v27  ;;  %v2831_v27 = vmul.f32 %v7715_v28, %v7391_v3 }
 0x56d   :  { %v5269_v7 = vpop.eup %5268  ;;  %5274 = vpow2.f32 %v3019_v0 }
 0x56f   :  { %v3503_v48 = vpop.permute.xlu1 %3502 }
 0x570   :  { %v3527_v9 = vmul.f32 %v5265_v62, %v3503_v48  ;;  %4005 = vmatpush.bf16.msrb.mxu0 %v4560_v50 }
 0x571   :  { %v3543_v52 = vpop.permute.xlu2 %3542  ;;  %4715 = vset.pattern.permute.xlu1 %v8472_v12  ;;  %v5271_v62 = vpop.eup %5270 }
 0x572   :  { %v7789_v26 = vadd.f32 %v3527_v9, %v7743_v41  ;;  %v3573_v34 = vmul.f32 %v5267_v22, %v3543_v52  ;;  %3706 = vperm.xlu2 %4712, %v7278_v43   ;;  %3734 = vperm.xlu1 %4715, %v7258_v39   ;;  %v3031_v9 = vmul.f32 1.442695, %v2827_v11  ;;  %v4559_v52 = vld [vmem:[#allocation7 + $0x50] sm:$0xff]  ;;  %v5273_v36 = vpop.eup %5272  ;;  %v3037_v11 = vmul.f32 1.442695, %v2831_v27 }
 0x573   :  { %v3663_v37 = vpop.permute.xlu0 %3662 }
 0x574   :  { %v7796_v23 = vadd.f32 %v3573_v34, %v7749_v51  ;;  %v3675_v58 = vmul.f32 %v5269_v7, %v3663_v37  ;;  %v2824_v51 = vmul.f32 %v7680_v13, %v7376_v59  ;;  %5276 = vpow2.f32 %v3031_v9  ;;  %4006 = vmatpush.bf16.msrb.mxu0 %v4559_v52  ;;  %v4558_v34 = vld [vmem:[#allocation7 + $0x48] sm:$0xff] }
 0x575   :  { %v2834_v9 = vmul.f32 %v7715_v28, %v7368_v10 }
 0x576   :  { %v7798_v41 = vadd.f32 %v3675_v58, %v3635_v42  ;;  %v3025_v7 = vmul.f32 1.442695, %v2824_v51  ;;  %v5403_v51 = vld [vmem:[%s8096_s1] sm:$0xf] }
 0x577   :  { %v3511_v48 = vpop.permute.xlu1 %3510 }
 0x578   :  { %v3529_v22 = vmul.f32 %v5271_v62, %v3511_v48  ;;  %4007 = vmatpush.bf16.msrb.mxu0 %v4558_v34  ;;  %v4557_v62 = vld [vmem:[#allocation7 + $0x40] sm:$0xff]  ;;  %5278 = vpow2.f32 %v3025_v7 }
 0x579   :  { %v3555_v35 = vpop.permute.xlu2 %3554  ;;  %5280 = vpow2.f32 %v3037_v11 }
 0x57a   :  { %v3537_v30 = vadd.f32 %v3529_v22, %v7755_v20  ;;  %v3576_v14 = vmul.f32 %v5273_v36, %v3555_v35  ;;  %4716 = vset.pattern.permute.xlu2 %v8472_v12  ;;  %4718 = vset.pattern.permute.xlu1 %v8474_v53  ;;  %v5275_v20 = vpop.eup %5274  ;;  %v3043_v36 = vmul.f32 1.442695, %v2834_v9  ;;  %v2829_v35 = vmul.f32 0.0, %v7680_v13 }
 0x57b   :  { %3762 = vperm.xlu2 %4716, %v7276_v33   ;;  %3782 = vperm.xlu1 %4718, %v7258_v39   ;;  %v5277_v58 = vpop.eup %5276 }
 0x57c   :  { %v3584_v42 = vadd.f32 %v3576_v14, %v7763_v63  ;;  %v2826_v14 = vmul.f32 %v7680_v13, %v7358_v17  ;;  %4008 = vmatpush.bf16.msrb.mxu0 %v4557_v62  ;;  %v2836_v13 = vmul.f32 %v7715_v28, %v7351_v21 }
 0x57e   :  { %v5279_v22 = vpop.eup %5278 }
 0x57f   :  { %v3523_v37 = vpop.permute.xlu1 %3522  ;;  %4009 = vmatmul.bf16.vlgmr.msrb.gmra.mxu0 %v5403_v51  ;;  %v5281_v27 = vpop.eup %5280 }
 0x580   :  { %v3532_v0 = vmul.f32 %v5275_v20, %v3523_v37  ;;  %v3035_v37 = vmul.f32 1.442695, %v2829_v35 }
 0x581   :  { %v3563_v50 = vpop.permute.xlu2 %3562 }
 0x582   :  { %v3540_v48 = vadd.f32 %v3532_v0, %v7775_v40  ;;  %v3578_v39 = vmul.f32 %v5277_v58, %v3563_v50  ;;  %v3029_v40 = vmul.f32 1.442695, %v2826_v14  ;;  %v3047_v50 = vmul.f32 1.442695, %v2836_v13 }
 0x583   :  { %4719 = vset.pattern.permute.xlu2 %v8474_v53  ;;  %4720 = vset.pattern.permute.xlu1 %v8472_v12  ;;  %v2843_v13 = vmul.f32 %v7766_v45, %v7368_v10 }
 0x584   :  { %v3586_v63 = vadd.f32 %v3578_v39, %v7780_v24  ;;  %3810 = vperm.xlu2 %4719, %v7276_v33   ;;  %3742 = vperm.xlu1 %4720, %v7262_v55   ;;  %5282 = vpow2.f32 %v3029_v40  ;;  %v2833_v40 = vmul.f32 %v7715_v28, %v7376_v59 }
 0x585   :  { %5284 = vpow2.f32 %v3043_v36 }
 0x586   :  { %5286 = vpow2.f32 %v3035_v37  ;;  %v3041_v36 = vmul.f32 1.442695, %v2833_v40 }
 0x587   :  { %5288 = vpow2.f32 %v3047_v50  ;;  %v3059_v50 = vmul.f32 1.442695, %v2843_v13 }
 0x588   :  { %v3551_v52 = vpop.permute.xlu1 %3550  ;;  %5290 = vpow2.f32 %v3041_v36 }
 0x589   :  { %v3575_v24 = vmul.f32 %v5279_v22, %v3551_v52 }
 0x58a   :  { %v3591_v20 = vpop.permute.xlu2 %3590  ;;  %v5283_v11 = vpop.eup %5282 }
 0x58b   :  { %v3583_v34 = vadd.f32 %v3575_v24, %v7789_v26  ;;  %v3621_v7 = vmul.f32 %v5281_v27, %v3591_v20  ;;  %v5285_v26 = vpop.eup %5284 }
 0x58c   :  { %3786 = vperm.xlu2 %4719, %v7260_v18   ;;  %4721 = vset.pattern.permute.xlu1 %v8475_v8  ;;  %v5287_v52 = vpop.eup %5286 }
 0x58d   :  { %v3629_v0 = vadd.f32 %v3621_v7, %v7796_v23  ;;  %3858 = vperm.xlu1 %4721, %v7276_v33   ;;  %v2840_v23 = vmul.f32 %v7766_v45, %v7391_v3  ;;  %v5289_v24 = vpop.eup %5288 }
 0x58f   :  { %v3053_v51 = vmul.f32 1.442695, %v2840_v23 }
 0x590   :  { %v3559_v58 = vpop.permute.xlu1 %3558 }
 0x591   :  { %v3577_v62 = vmul.f32 %v5283_v11, %v3559_v58  ;;  %5292 = vpow2.f32 %v3053_v51 }
 0x592   :  { %v3603_v39 = vpop.permute.xlu2 %3602 }
 0x593   :  { %v3585_v14 = vadd.f32 %v3577_v62, %v3537_v30  ;;  %v3624_v9 = vmul.f32 %v5285_v26, %v3603_v39  ;;  %v2838_v62 = vmul.f32 0.0, %v7715_v28 }
 0x594   :  { %4722 = vset.pattern.permute.xlu2 %v8472_v12 }
 0x595   :  { %v3632_v22 = vadd.f32 %v3624_v9, %v3584_v42  ;;  %3746 = vperm.xlu2 %4722, %v7271_v29   ;;  %4723 = vset.pattern.permute.xlu1 %v8474_v53  ;;  %v2835_v42 = vmul.f32 %v7715_v28, %v7358_v17  ;;  %v3051_v23 = vmul.f32 1.442695, %v2838_v62 }
 0x596   :  { %3790 = vperm.xlu1 %4723, %v7262_v55  }
 0x597   :  { %v3045_v11 = vmul.f32 1.442695, %v2835_v42 }
 0x598   :  { %v3571_v30 = vpop.permute.xlu1 %3570 }
 0x599   :  { %v3580_v35 = vmul.f32 %v5287_v52, %v3571_v30  ;;  %5294 = vpow2.f32 %v3045_v11 }
 0x59a   :  { %v3611_v27 = vpop.permute.xlu2 %3610  ;;  %5296 = vpow2.f32 %v3059_v50 }
 0x59b   :  { %v3588_v20 = vadd.f32 %v3580_v35, %v3540_v48  ;;  %v3626_v7 = vmul.f32 %v5289_v24, %v3611_v27  ;;  %v5291_v48 = vpop.eup %5290  ;;  %5298 = vpow2.f32 %v3051_v23  ;;  %v2842_v27 = vmul.f32 %v7766_v45, %v7376_v59 }
 0x59d   :  { %v3634_v37 = vadd.f32 %v3626_v7, %v3586_v63  ;;  %4724 = vset.pattern.permute.xlu2 %v8475_v8  ;;  %v5293_v63 = vpop.eup %5292  ;;  %v3057_v11 = vmul.f32 1.442695, %v2842_v27 }
 0x59e   :  { %3834 = vperm.xlu2 %4724, %v7260_v18   ;;  %4726 = vset.pattern.permute.xlu1 %v8473_v46  ;;  %v2845_v18 = vmul.f32 %v7766_v45, %v7351_v21 }
 0x59f   :  { %3906 = vperm.xlu1 %4726, %v7276_v33   ;;  %v5295_v33 = vpop.eup %5294 }
 0x5a0   :  { %v3063_v36 = vmul.f32 1.442695, %v2845_v18  ;;  %v5297_v35 = vpop.eup %5296 }
 0x5a1   :  { %v3599_v58 = vpop.permute.xlu1 %3598  ;;  %v5299_v13 = vpop.eup %5298 }
 0x5a2   :  { %v3623_v26 = vmul.f32 %v5291_v48, %v3599_v58  ;;  %5300 = vpow2.f32 %v3063_v36  ;;  %v7864_v48 = vpop.permute.xlu0 %3690 }
 0x5a3   :  { %v3639_v39 = vpop.permute.xlu2 %3638  ;;  %5302 = vpow2.f32 %v3057_v11 }
 0x5a4   :  { %v3631_v9 = vadd.f32 %v3623_v26, %v3583_v34  ;;  %v3669_v40 = vmul.f32 %v5293_v63, %v3639_v39  ;;  %v7855_v34 = vperm.slane %v7670_v19, 3  ;;  %v2844_v39 = vmul.f32 %v7766_v45, %v7358_v17 }
 0x5a6   :  { %v3677_v52 = vadd.f32 %v3669_v40, %v3629_v0  ;;  %4727 = vset.pattern.permute.xlu2 %v8472_v12  ;;  %v2849_v42 = vmul.f32 %v7855_v34, %v7391_v3  ;;  %v3061_v23 = vmul.f32 1.442695, %v2844_v39 }
 0x5a7   :  { %3750 = vperm.xlu2 %4727, %v7267_v47   ;;  %4728 = vset.pattern.permute.xlu1 %v8474_v53 }
 0x5a8   :  { %3794 = vperm.xlu1 %4728, %v7271_v29   ;;  %v3069_v50 = vmul.f32 1.442695, %v2849_v42  ;;  %v5301_v62 = vpop.eup %5300  ;;  %v2854_v42 = vmul.f32 %v7855_v34, %v7351_v21 }
 0x5a9   :  { %v3607_v28 = vpop.permute.xlu1 %3606 }
 0x5aa   :  { %v3625_v30 = vmul.f32 %v5295_v33, %v3607_v28  ;;  %5304 = vpow2.f32 %v3069_v50  ;;  %v2847_v28 = vmul.f32 0.0, %v7766_v45  ;;  %v7893_v50 = vperm.slane %v7670_v19, 4 }
 0x5ab   :  { %v3651_v51 = vpop.permute.xlu2 %3650  ;;  %5306 = vpow2.f32 %v3061_v23 }
 0x5ac   :  { %v3633_v24 = vadd.f32 %v3625_v30, %v3585_v14  ;;  %v3672_v0 = vmul.f32 %v5297_v35, %v3651_v51  ;;  %v3067_v27 = vmul.f32 1.442695, %v2847_v28 }
 0x5ae   :  { %v3680_v7 = vadd.f32 %v3672_v0, %v3632_v22 }
 0x5af   :  { %4729 = vset.pattern.permute.xlu2 %v8475_v8 }
 0x5b0   :  { %3838 = vperm.xlu2 %4729, %v7262_v55   ;;  %4730 = vset.pattern.permute.xlu1 %v8471_v60  ;;  %v2852_v60 = vmul.f32 %v7855_v34, %v7368_v10 }
 0x5b1   :  { %v3619_v14 = vpop.permute.xlu1 %3618  ;;  %3710 = vperm.xlu1 %4730, %v7269_v31  }
 0x5b2   :  { %v3628_v58 = vmul.f32 %v5299_v13, %v3619_v14  ;;  %v3075_v33 = vmul.f32 1.442695, %v2852_v60  ;;  %v2865_v60 = vmul.f32 0.0, %v7893_v50 }
 0x5b3   :  { %v3659_v22 = vpop.permute.xlu2 %3658 }
 0x5b4   :  { %v7867_v26 = vadd.f32 %v3628_v58, %v3588_v20  ;;  %v3674_v63 = vmul.f32 %v5301_v62, %v3659_v22  ;;  %v5303_v20 = vpop.eup %5302  ;;  %5308 = vpow2.f32 %v3075_v33  ;;  %v3079_v58 = vmul.f32 1.442695, %v2854_v42  ;;  %v5404_v33 = vld [vmem:[%s8102_s7 + $0x1] ss:$0 sm:$0xff] }
 0x5b5   :  { %v5305_v30 = vpop.eup %5304  ;;  %5310 = vpow2.f32 %v3067_v27  ;;  %v7909_v28 = vadd.f32 %v5404_v33, %v7252_v25  ;;  %v7916_v27 = vperm.slane %v7670_v19, 5 }
 0x5b6   :  { %v7871_v40 = vadd.f32 %v3674_v63, %v3634_v37  ;;  %v7880_v37 = vpop.permute.xlu0 %3714  ;;  %v5307_v11 = vpop.eup %5306  ;;  %v2851_v63 = vmul.f32 %v7855_v34, %v7376_v59  ;;  %5312 = vpow2.f32 %v3079_v58 }
 0x5b8   :  { %4731 = vset.pattern.permute.xlu2 %v8472_v12 }
 0x5b9   :  { %3754 = vperm.xlu2 %4731, %v7278_v43   ;;  %4734 = vset.pattern.permute.xlu1 %v8475_v8 }
 0x5ba   :  { %v3647_v18 = vpop.permute.xlu1 %3646  ;;  %3842 = vperm.xlu1 %4734, %v7271_v29  }
 0x5bb   :  { %v3671_v36 = vmul.f32 %v5303_v20, %v3647_v18 }
 0x5bc   :  { %v3687_v35 = vpop.permute.xlu2 %3686 }
 0x5bd   :  { %v7882_v51 = vadd.f32 %v3671_v36, %v3631_v9  ;;  %v3717_v0 = vmul.f32 %v5305_v30, %v3687_v35  ;;  %v2856_v9 = vmul.f32 0.0, %v7855_v34  ;;  %v3073_v36 = vmul.f32 1.442695, %v2851_v63 }
 0x5be   :  { %v7898_v39 = vpop.permute.xlu0 %3738  ;;  %v3099_v30 = vmul.f32 1.442695, %v2865_v60 }
 0x5bf   :  { %v7886_v13 = vadd.f32 %v3717_v0, %v3677_v52  ;;  %v5309_v52 = vpop.eup %5308  ;;  %v3083_v23 = vmul.f32 1.442695, %v2856_v9  ;;  %v2531_v0 = vand.u32 2147483647, %v7909_v28 }
 0x5c0   :  { %v5311_v18 = vpop.eup %5310 }
 0x5c1   :  { %4735 = vset.pattern.permute.xlu2 %v8473_v46  ;;  %5314 = vpow2.f32 %v3083_v23 }
 0x5c2   :  { %3886 = vperm.xlu2 %4735, %v7262_v55   ;;  %v3655_v14 = vpop.permute.xlu1 %3654  ;;  %4736 = vset.pattern.permute.xlu1 %v8472_v12  ;;  %5316 = vpow2.f32 %v3073_v36 }
 0x5c3   :  { %v3673_v62 = vmul.f32 %v5307_v11, %v3655_v14  ;;  %3758 = vperm.xlu1 %4736, %v7269_v31   ;;  %5318 = vpow2.f32 %v3099_v30  ;;  %v2853_v11 = vmul.f32 %v7855_v34, %v7358_v17  ;;  %v2874_v14 = vmul.f32 0.0, %v7916_v27 }
 0x5c4   :  { %v3699_v22 = vpop.permute.xlu2 %3698 }
 0x5c5   :  { %v7900_v55 = vadd.f32 %v3673_v62, %v3633_v24  ;;  %v3720_v12 = vmul.f32 %v5309_v52, %v3699_v22  ;;  %v2841_v62 = vmul.f32 %v7766_v45, %v7384_v1  ;;  %v3077_v22 = vmul.f32 1.442695, %v2853_v11 }
 0x5c6   :  { %v7923_v58 = vpop.permute.xlu0 %3878 }
 0x5c7   :  { %v7903_v20 = vadd.f32 %v3720_v12, %v3680_v7  ;;  %v5313_v7 = vpop.eup %5312  ;;  %v3115_v12 = vmul.f32 1.442695, %v2874_v14  ;;  %5320 = vpow2.f32 %v3077_v22 }
 0x5c8   :  { %v5315_v52 = vpop.eup %5314 }
 0x5c9   :  { %v5317_v63 = vpop.eup %5316  ;;  %v3724_v33 = vmul.f32 %v5315_v52, %v7880_v37  ;;  %5322 = vpow2.f32 %v3115_v12 }
 0x5ca   :  { %4737 = vset.pattern.permute.xlu2 %v8474_v53  ;;  %v3667_v24 = vpop.permute.xlu1 %3666  ;;  %v5319_v60 = vpop.eup %5318 }
 0x5cb   :  { %v3676_v35 = vmul.f32 %v5311_v18, %v3667_v24  ;;  %3802 = vperm.xlu2 %4737, %v7278_v43   ;;  %4738 = vset.pattern.permute.xlu1 %v8473_v46  ;;  %v3055_v18 = vmul.f32 1.442695, %v2841_v62 }
 0x5cc   :  { %v3707_v42 = vpop.permute.xlu2 %3706  ;;  %3890 = vperm.xlu1 %4738, %v7271_v29   ;;  %v2539_v29 = vsub.f32 0.0, %v2531_v0 }
 0x5cd   :  { %v3684_v25 = vadd.f32 %v3676_v35, %v7867_v26  ;;  %v3722_v53 = vmul.f32 %v5313_v7, %v3707_v42  ;;  %v2850_v26 = vmul.f32 %v7855_v34, %v7384_v1  ;;  %v2858_v35 = vmul.f32 %v7893_v50, %v7391_v3  ;;  %v5321_v62 = vpop.eup %5320 }
 0x5ce   :  { %v2547_v45 = vmul.f32 1.442695, %v2539_v29  ;;  %5324 = vpow2.f32 %v3055_v18  ;;  %v7945_v11 = vpop.permute.xlu0 %3882 }
 0x5cf   :  { %v7926_v9 = vadd.f32 %v3722_v53, %v7871_v40  ;;  %v2859_v40 = vmul.f32 %v7893_v50, %v7384_v1  ;;  %v3071_v30 = vmul.f32 1.442695, %v2850_v26  ;;  %v3732_v0 = vadd.f32 %v3724_v33, %v3684_v25 }
 0x5d0   :  { %5326 = vpow2.f32 %v2547_v45  ;;  %v3085_v14 = vmul.f32 1.442695, %v2858_v35  ;;  %v7950_v26 = vperm.slane %v7670_v19, 6  ;;  %v2867_v33 = vmul.f32 %v7916_v27, %v7391_v3 }
 0x5d1   :  { %v3087_v42 = vmul.f32 1.442695, %v2859_v40  ;;  %5328 = vpow2.f32 %v3071_v30 }
 0x5d2   :  { %v3101_v35 = vmul.f32 1.442695, %v2867_v33 }
 0x5d3   :  { %3806 = vperm.xlu2 %4737, %v7269_v31   ;;  %v3695_v23 = vpop.permute.xlu1 %3694  ;;  %5330 = vpow2.f32 %v3087_v42 }
 0x5d4   :  { %v3719_v36 = vmul.f32 %v5317_v63, %v3695_v23  ;;  %4739 = vset.pattern.permute.xlu1 %v8475_v8  ;;  %v2868_v8 = vmul.f32 %v7916_v27, %v7384_v1  ;;  %v7954_v63 = vperm.slane %v7670_v19, 7  ;;  %5332 = vpow2.f32 %v3085_v14 }
 0x5d5   :  { %v3763_v24 = vpop.permute.xlu2 %3762  ;;  %3850 = vperm.xlu1 %4739, %v7278_v43   ;;  %v2876_v19 = vmul.f32 %v7950_v26, %v7391_v3 }
 0x5d6   :  { %v7941_v7 = vadd.f32 %v3719_v36, %v7882_v51  ;;  %v3772_v37 = vmul.f32 %v5319_v60, %v3763_v24  ;;  %v5323_v51 = vpop.eup %5322  ;;  %v3103_v29 = vmul.f32 1.442695, %v2868_v8  ;;  %v7972_v24 = vpop.permute.xlu0 %3798 }
 0x5d7   :  { %v5325_v22 = vpop.eup %5324  ;;  %v3117_v42 = vmul.f32 1.442695, %v2876_v19 }
 0x5d8   :  { %v3780_v53 = vadd.f32 %v3772_v37, %v3732_v0  ;;  %v5327_v23 = vpop.eup %5326  ;;  %5334 = vpow2.f32 %v3103_v29 }
 0x5d9   :  { %v5329_v40 = vpop.eup %5328  ;;  %v2563_v45 = vadd.f32 1.0, %v5327_v23 }
 0x5da   :  { %v5331_v36 = vpop.eup %5330 }
 0x5db   :  { %4740 = vset.pattern.permute.xlu2 %v8473_v46  ;;  %v3703_v52 = vpop.permute.xlu1 %3702  ;;  %v3766_v30 = vmul.f32 %v5331_v36, %v7898_v39  ;;  %v5333_v0 = vpop.eup %5332  ;;  %5336 = vlog2.f32 %v2563_v45  ;;  %v2860_v39 = vmul.f32 %v7893_v50, %v7376_v59 }
 0x5dc   :  { %v3721_v25 = vmul.f32 %v5321_v62, %v3703_v52  ;;  %3894 = vperm.xlu2 %4740, %v7267_v47   ;;  %v3670_v47 = vmul.f32 %v5325_v22, %v7782_v57  ;;  %5338 = vpow2.f32 %v3101_v35 }
 0x5dd   :  { %4741 = vset.pattern.permute.xlu1 %v8473_v46  ;;  %v3718_v46 = vmul.f32 %v5329_v40, %v7864_v48  ;;  %5340 = vpow2.f32 %v3117_v42 }
 0x5de   :  { %v7957_v12 = vadd.f32 %v3721_v25, %v7900_v55  ;;  %v3811_v60 = vpop.permute.xlu2 %3810  ;;  %3898 = vperm.xlu1 %4741, %v7278_v43   ;;  %v2885_v43 = vmul.f32 %v7954_v63, %v7391_v3  ;;  %v3678_v57 = vadd.f32 %v3670_v47, %v7751_v44  ;;  %v5335_v8 = vpop.eup %5334  ;;  %v3089_v25 = vmul.f32 1.442695, %v2860_v39 }
 0x5df   :  { %v3820_v18 = vmul.f32 %v5323_v51, %v3811_v60  ;;  %v3831_v22 = vpop.permute.xlu0 %3830 }
 0x5e0   :  { %v3726_v37 = vadd.f32 %v3718_v46, %v3678_v57  ;;  %v3133_v14 = vmul.f32 1.442695, %v2885_v43 }
 0x5e1   :  { %v7966_v55 = vadd.f32 %v3820_v18, %v3780_v53  ;;  %v2523_v18 = vmax.f32 %v7909_v28, 0.0  ;;  %v2877_v28 = vmul.f32 %v7950_v26, %v7384_v1 }
 0x5e2   :  { %v3774_v52 = vadd.f32 %v3766_v30, %v3726_v37  ;;  %5342 = vpow2.f32 %v3133_v14 }
 0x5e3   :  { %5344 = vpow2.f32 %v3089_v25  ;;  %v2869_v25 = vmul.f32 %v7916_v27, %v7376_v59 }
 0x5e4   :  { %3902 = vperm.xlu2 %4740, %v7269_v31   ;;  %v3735_v48 = vpop.permute.xlu1 %3734  ;;  %v5337_v31 = vpop.eup %5336 }
 0x5e5   :  { %v3765_v53 = vmul.f32 %v5333_v0, %v3735_v48  ;;  %v5339_v29 = vpop.eup %5338 }
 0x5e6   :  { %v3787_v62 = vpop.permute.xlu2 %3786  ;;  %v5341_v47 = vpop.eup %5340 }
 0x5e7   :  { %v3773_v3 = vadd.f32 %v3765_v53, %v7886_v13  ;;  %v3814_v44 = vmul.f32 %v5335_v8, %v3787_v62  ;;  %v2572_v13 = vmul.f32 0.6931472, %v5337_v31  ;;  %v3861_v40 = vmul.f32 %v5341_v47, %v3831_v22  ;;  %v4588_v31 = vld [vmem:[#allocation10 + $0x78] sm:$0xff]  ;;  %v4587_v22 = vld [vmem:[#allocation10 + $0x70] sm:$0xff] }
 0x5e8   :  { %v5343_v19 = vpop.eup %5342  ;;  %v2883_v53 = vmul.f32 0.0, %v7950_v26  ;;  %v3119_v8 = vmul.f32 1.442695, %v2877_v28  ;;  %4084 = vmatpush.bf16.msra.mxu1 %v4588_v31  ;;  %v2878_v47 = vmul.f32 %v7950_v26, %v7376_v59 }
 0x5e9   :  { %v3822_v51 = vadd.f32 %v3814_v44, %v3774_v52  ;;  %v3909_v36 = vmul.f32 %v5343_v19, %v7923_v58  ;;  %v2587_v43 = vadd.f32 %v2572_v13, %v2523_v18  ;;  %v5345_v30 = vpop.eup %5344  ;;  %v2886_v58 = vmul.f32 %v7954_v63, %v7384_v1 }
 0x5ea   :  { %v3131_v62 = vmul.f32 1.442695, %v2883_v53  ;;  %5346 = vpow2.f32 %v3119_v8 }
 0x5eb   :  { %v3135_v44 = vmul.f32 1.442695, %v2886_v58 }
 0x5ec   :  { %5348 = vpow2.f32 %v3131_v62  ;;  %4085 = vmatpush.bf16.msra.mxu1 %v4587_v22 }
 0x5ed   :  { %v3783_v60 = vpop.permute.xlu1 %3782  ;;  %5350 = vpow2.f32 %v3135_v44 }
 0x5ee   :  { %v3813_v23 = vmul.f32 %v5339_v29, %v3783_v60 }
 0x5ef   :  { %v7979_v33 = vpop.permute.xlu2 %3746 }
 0x5f0   :  { %v3821_v46 = vadd.f32 %v3813_v23, %v3773_v3  ;;  %v2892_v3 = vmul.f32 0.0, %v7954_v63  ;;  %v5347_v1 = vpop.eup %5346  ;;  %v3105_v23 = vmul.f32 1.442695, %v2869_v25 }
 0x5f2   :  { %v3869_v45 = vadd.f32 %v3861_v40, %v3821_v46  ;;  %v3147_v39 = vmul.f32 1.442695, %v2892_v3  ;;  %v5349_v13 = vpop.eup %5348  ;;  %v2887_v40 = vmul.f32 %v7954_v63, %v7376_v59 }
 0x5f3   :  { %v5351_v19 = vpop.eup %5350 }
 0x5f4   :  { %v3917_v57 = vadd.f32 %v3909_v36, %v3869_v45  ;;  %5352 = vpow2.f32 %v3147_v39 }
 0x5f5   :  { %5354 = vpow2.f32 %v3105_v23 }
 0x5f6   :  { %v3925_v35 = vmul.f32 %v3917_v57, %v2587_v43  ;;  %v3743_v0 = vpop.permute.xlu1 %3742  ;;  %v3121_v43 = vmul.f32 1.442695, %v2878_v47 }
 0x5f7   :  { %v3767_v48 = vmul.f32 %v5345_v30, %v3743_v0  ;;  %v4586_v30 = vld [vmem:[#allocation10 + $0x68] sm:$0xff]  ;;  %v3910_v0 = vmul.f32 %v5351_v19, %v7945_v11 }
 0x5f8   :  { %v3835_v37 = vpop.permute.xlu2 %3834  ;;  %4086 = vmatpush.bf16.msra.mxu1 %v4586_v30  ;;  %5356 = vpow2.f32 %v3121_v43  ;;  %v8476_v11 = vld [vmem:[#allocation64_spill] sm:$0xff] }
 0x5f9   :  { %v3775_v42 = vadd.f32 %v3767_v48, %v7941_v7  ;;  %v3862_v60 = vmul.f32 %v5347_v1, %v3835_v37  ;;  %v3137_v37 = vmul.f32 1.442695, %v2887_v40  ;;  %v3933_v39 = vmul.f32 %v3925_v35, %v8476_v11 }
 0x5fa   :  { %v5353_v57 = vpop.eup %5352  ;;  %v2862_v35 = vmul.f32 %v7893_v50, %v7358_v17 }
 0x5fb   :  { %v3870_v36 = vadd.f32 %v3862_v60, %v3822_v51  ;;  %v5355_v59 = vpop.eup %5354  ;;  %5358 = vpow2.f32 %v3137_v37 }
 0x5fc   :  { %v7991_v7 = vpop.f32.mrf.mxu0  ;;  %v3093_v30 = vmul.f32 1.442695, %v2862_v35 }
 0x5fd   :  { %v3918_v28 = vadd.f32 %v3910_v0, %v3870_v36  ;;  %v2880_v0 = vmul.f32 %v7950_v26, %v7358_v17  ;;  %v4014_v37 = vsub.f32 0.0, %v7991_v7 }
 0x5fe   :  { %v5357_v44 = vpop.eup %5356  ;;  %5360 = vpow2.f32 %v3093_v30 }
 0x5ff   :  { %v3859_v14 = vpop.permute.xlu1 %3858 }
 0x600   :  { %v3868_v45 = vmul.f32 %v5349_v13, %v3859_v14  ;;  %v3926_v14 = vmul.f32 %v3918_v28, %v7380_v15  ;;  %v2870_v28 = vmul.f32 %v7916_v27, %v7368_v10 }
 0x601   :  { %v7988_v52 = vpop.permute.xlu2 %3750  ;;  %v5359_v47 = vpop.eup %5358 }
 0x602   :  { %v3876_v53 = vadd.f32 %v3868_v45, %v7966_v55  ;;  %v8477_v55 = vld [vmem:[#allocation68_spill] sm:$0xff] }
 0x603   :  { %v3934_v1 = vmul.f32 %v3926_v14, %v8477_v55  ;;  %v2889_v14 = vmul.f32 %v7954_v63, %v7358_v17 }
 0x604   :  { %v4012_v46 = vpop.f32.mrf.mxu0 }
 0x605   :  { %v4585_v46 = vld [vmem:[#allocation10 + $0x60] sm:$0xff] }
 0x606   :  { %4087 = vmatpush.bf16.msra.mxu1 %v4585_v46 }
 0x608   :  { %v3791_v29 = vpop.permute.xlu1 %3790 }
 0x609   :  { %v3815_v51 = vmul.f32 %v5355_v59, %v3791_v29  ;;  %v2879_v59 = vmul.f32 %v7950_v26, %v7368_v10 }
 0x60a   :  { %v3839_v18 = vpop.permute.xlu2 %3838 }
 0x60b   :  { %v3823_v25 = vadd.f32 %v3815_v51, %v3775_v42  ;;  %v3863_v22 = vmul.f32 %v5357_v44, %v3839_v18  ;;  %v3107_v44 = vmul.f32 1.442695, %v2870_v28 }
 0x60d   :  { %v3871_v40 = vadd.f32 %v3863_v22, %v3823_v25  ;;  %v3141_v25 = vmul.f32 1.442695, %v2889_v14  ;;  %v2888_v22 = vmul.f32 %v7954_v63, %v7368_v10 }
 0x611   :  { %v3907_v48 = vpop.permute.xlu1 %3906 }
 0x612   :  { %v3916_v8 = vmul.f32 %v5353_v57, %v3907_v48  ;;  %v2871_v57 = vmul.f32 %v7916_v27, %v7358_v17  ;;  %v4584_v48 = vld [vmem:[#allocation10 + $0x58] sm:$0xff]  ;;  %v2855_v17 = vmul.f32 %v7855_v34, %v7339_v16  ;;  %v3847_v34 = vpop.permute.xlu0 %3846 }
 0x613   :  { %v8001_v58 = vpop.permute.xlu2 %3754  ;;  %4088 = vmatpush.bf16.msra.mxu1 %v4584_v48 }
 0x614   :  { %v3924_v62 = vadd.f32 %v3916_v8, %v3876_v53  ;;  %v4583_v53 = vld [vmem:[#allocation10 + $0x50] sm:$0xff]  ;;  %v3125_v8 = vmul.f32 1.442695, %v2880_v0 }
 0x616   :  { %v3932_v3 = vmul.f32 %v3924_v62, %v7339_v16 }
 0x617   :  { %4089 = vmatpush.bf16.msra.mxu1 %v4583_v53 }
 0x618   :  { %v3940_v31 = vmul.f32 %v3932_v3, %v8420_v49  ;;  %v4015_v3 = vmul.f32 1.442695, %v4014_v37 }
 0x61a   :  { %v3941_v60 = vadd.f32 %v3940_v31, %v3933_v39  ;;  %v8008_v23 = vpop.permute.xlu1 %3794  ;;  %v3123_v39 = vmul.f32 1.442695, %v2879_v59  ;;  %v5361_v31 = vpop.eup %5360 }
 0x61b   :  { %v3769_v55 = vmul.f32 %v5361_v31, %v7988_v52 }
 0x61c   :  { %v3942_v13 = vadd.f32 %v3941_v60, %v3934_v1  ;;  %v3887_v29 = vpop.permute.xlu2 %3886  ;;  %v2864_v60 = vmul.f32 %v7893_v50, %v7339_v16 }
 0x61d   :  { %v3911_v15 = vmul.f32 %v5359_v47, %v3887_v29  ;;  %v3139_v47 = vmul.f32 1.442695, %v2888_v22  ;;  %v3777_v29 = vadd.f32 %v3769_v55, %v7957_v12  ;;  %v2873_v12 = vmul.f32 %v7916_v27, %v7339_v16 }
 0x61e   :  { %v3097_v35 = vmul.f32 1.442695, %v2864_v60 }
 0x61f   :  { %v3919_v19 = vadd.f32 %v3911_v15, %v3871_v40 }
 0x621   :  { %v3927_v36 = vmul.f32 %v3919_v19, %v7372_v54  ;;  %v2861_v54 = vmul.f32 %v7893_v50, %v7368_v10  ;;  %v3081_v10 = vmul.f32 1.442695, %v2855_v17 }
 0x623   :  { %v3935_v42 = vmul.f32 %v3927_v36, %v6799_v61  ;;  %v8014_v18 = vpop.permute.xlu1 %3710  ;;  %v3109_v61 = vmul.f32 1.442695, %v2871_v57  ;;  %v3091_v62 = vmul.f32 1.442695, %v2861_v54  ;;  %v2882_v54 = vmul.f32 %v7950_v26, %v7339_v16 }
 0x625   :  { %v8016_v45 = vadd.f32 %v3942_v13, %v3935_v42  ;;  %v8018_v43 = vpop.permute.xlu2 %3802  ;;  %5362 = vpow2.f32 %v3109_v61  ;;  %v3129_v31 = vmul.f32 1.442695, %v2882_v54 }
 0x626   :  { %5364 = vpow2.f32 %v3125_v8  ;;  %v4582_v8 = vld [vmem:[#allocation10 + $0x48] sm:$0xff] }
 0x627   :  { %5366 = vpow2.f32 %v3091_v62  ;;  %v3113_v62 = vmul.f32 1.442695, %v2873_v12  ;;  %4090 = vmatpush.bf16.msra.mxu1 %v4582_v8 }
 0x628   :  { %5368 = vpow2.f32 %v4015_v3  ;;  %v2891_v3 = vmul.f32 %v7954_v63, %v7339_v16 }
 0x629   :  { %5370 = vpow2.f32 %v3107_v44 }
 0x62a   :  { %5372 = vpow2.f32 %v3123_v39  ;;  %v3145_v16 = vmul.f32 1.442695, %v2891_v3 }
 0x62b   :  { %v5363_v1 = vpop.eup %5362  ;;  %5374 = vpow2.f32 %v3141_v25 }
 0x62c   :  { %v3843_v51 = vpop.permute.xlu1 %3842  ;;  %v5365_v13 = vpop.eup %5364  ;;  %v3817_v52 = vmul.f32 %v5363_v1, %v7972_v24  ;;  %5376 = vpow2.f32 %v3139_v47  ;;  %v2863_v24 = vmul.f32 %v7893_v50, %v7351_v21  ;;  %v4581_v50 = vld [vmem:[#allocation10 + $0x40] sm:$0xff] }
 0x62d   :  { %v8033_v11 = vpop.permute.xlu2 %3806  ;;  %v5367_v15 = vpop.eup %5366  ;;  %5378 = vpow2.f32 %v3081_v10  ;;  %v3865_v37 = vmul.f32 %v5365_v13, %v3847_v34  ;;  %4091 = vmatpush.bf16.msra.mxu1 %v4581_v50 }
 0x62e   :  { %v5369_v46 = vpop.eup %5368  ;;  %v3768_v19 = vmul.f32 %v5367_v15, %v7979_v33  ;;  %v3825_v30 = vadd.f32 %v3817_v52, %v3777_v29  ;;  %5380 = vpow2.f32 %v3097_v35  ;;  %v3095_v39 = vmul.f32 1.442695, %v2863_v24 }
 0x62f   :  { %v5371_v36 = vpop.eup %5370  ;;  %v8052_v33 = vadd.f32 1.0, %v5369_v46  ;;  %v2890_v29 = vmul.f32 %v7954_v63, %v7351_v21 }
 0x630   :  { %v5373_v57 = vpop.eup %5372  ;;  %v3816_v0 = vmul.f32 %v5371_v36, %v8008_v23  ;;  %v3776_v61 = vadd.f32 %v3768_v19, %v7903_v20  ;;  %v2872_v23 = vmul.f32 %v7916_v27, %v7351_v21  ;;  %v3873_v14 = vadd.f32 %v3865_v37, %v3825_v30 }
 0x631   :  { %v5375_v48 = vpop.eup %5374  ;;  %v3864_v28 = vmul.f32 %v5373_v57, %v3843_v51  ;;  %5382 = vrcp.f32 %v8052_v33  ;;  %v2881_v51 = vmul.f32 %v7950_v26, %v7351_v21  ;;  %v3143_v19 = vmul.f32 1.442695, %v2890_v29 }
 0x632   :  { %v3824_v59 = vadd.f32 %v3816_v0, %v3776_v61  ;;  %v5377_v44 = vpop.eup %5376  ;;  %v3111_v17 = vmul.f32 1.442695, %v2872_v23  ;;  %5384 = vpow2.f32 %v3113_v62  ;;  %vm4023_vm4 = vweird.f32 %v8052_v33 }
 0x633   :  { %v5379_v55 = vpop.eup %5378  ;;  %5386 = vpow2.f32 %v3095_v39  ;;  %v3127_v13 = vmul.f32 1.442695, %v2881_v51  ;;  %v4027_v50 = vand.u32 2147483647, %v8052_v33 }
 0x634   :  { %v3872_v25 = vadd.f32 %v3864_v28, %v3824_v59  ;;  %v3723_v1 = vmul.f32 %v5379_v55, %v8014_v18  ;;  %v5381_v47 = vpop.eup %5380  ;;  %5388 = vpow2.f32 %v3129_v31 }
 0x635   :  { %v3759_v40 = vpop.permute.xlu1 %3758  ;;  %5390 = vpow2.f32 %v3111_v17  ;;  %vm4028_vm7 = vcmp.eq.f32.partialorder %v4027_v50, 8.507059e+37 }
 0x636   :  { %v3895_v42 = vpop.permute.xlu2 %3894  ;;  %v3771_v26 = vmul.f32 %v5381_v47, %v3759_v40  ;;  %v3731_v18 = vadd.f32 %v3723_v1, %v7798_v41  ;;  %5392 = vpow2.f32 %v3145_v16  ;;  %v8479_v47 = vld [vmem:[#allocation51_spill] sm:$0xff] }
 0x637   :  { %v3913_v53 = vmul.f32 %v5375_v48, %v3895_v42  ;;  %v5383_v46 = vpop.eup %5382  ;;  %5394 = vpow2.f32 %v3127_v13 }
 0x638   :  { %v5385_v36 = vpop.eup %5384  ;;  %v4019_v34 = vmul.f32 %v5383_v46, %v8052_v33  ;;  %v3779_v35 = vadd.f32 %v3771_v26, %v3731_v18  ;;  %5396 = vpow2.f32 %v3143_v19  ;;  %vm4024_vm5 = vweird.f32 %v5383_v46 }
 0x639   :  { %v3921_v27 = vadd.f32 %v3913_v53, %v3873_v14  ;;  %v5387_v40 = vpop.eup %5386  ;;  %v3819_v41 = vmul.f32 %v5385_v36, %v8033_v11  ;;  %vm4025_vm6 = vmor %vm4023_vm4, %vm4024_vm5 }
 0x63a   :  { %v3770_v42 = vmul.f32 %v5387_v40, %v8001_v58  ;;  %v4020_v48 = vsub.f32 1.0, %v4019_v34 }
 0x63b   :  { %v3929_v15 = vmul.f32 %v3921_v27, %v7354_v2  ;;  %v3827_v24 = vadd.f32 %v3819_v41, %v3779_v35  ;;  %v8478_v27 = vld [vmem:[#allocation97_spill] sm:$0xff] }
 0x63c   :  { %v4021_v53 = vmul.f32 %v5383_v46, %v4020_v48 }
 0x63d   :  { %v3937_v21 = vmul.f32 %v3929_v15, %v6852_v6 }
 0x63e   :  { %v3891_v20 = vpop.permute.xlu1 %3890  ;;  %v3903_v0 = vpop.permute.xlu2 %3902  ;;  %v4022_v3 = vadd.f32 %v5383_v46, %v4021_v53 }
 0x63f   :  { %v3912_v22 = vmul.f32 %v5377_v44, %v3891_v20 }
 0x640   :  { %v4026_v51 = vsel %vm4025_vm6, %v5383_v46, %v4022_v3 }
 0x641   :  { %v3920_v60 = vadd.f32 %v3912_v22, %v3872_v25  ;;  %v4749_v25 = vld [vmem:[%s8106_s11 + $0x1] ss:$0 sm:$0xff] }
 0x642   :  { %v3951_v1 = vmul.f32 %v4749_v25, %v8420_v49 }
 0x643   :  { %v3928_v10 = vmul.f32 %v3920_v60, %v7363_v32  ;;  %v5389_v32 = vpop.eup %5388 }
 0x644   :  { %v5391_v30 = vpop.eup %5390 }
 0x645   :  { %v3936_v52 = vmul.f32 %v3928_v10, %v6834_v4  ;;  %v3855_v4 = vpop.permute.xlu0 %3854  ;;  %v5393_v12 = vpop.eup %5392  ;;  %v3818_v54 = vmul.f32 %v5391_v30, %v8018_v43  ;;  %v4029_v43 = vand.u32 2147483648, %v8052_v33 }
 0x646   :  { %v5395_v6 = vpop.eup %5394  ;;  %v3867_v37 = vmul.f32 %v5389_v32, %v3855_v4  ;;  %v3915_v61 = vmul.f32 %v5393_v12, %v3903_v0 }
 0x647   :  { %v3944_v63 = vadd.f32 %v8016_v45, %v3936_v52  ;;  %v3851_v2 = vpop.permute.xlu1 %3850  ;;  %v3778_v45 = vadd.f32 %v3770_v42, %v7926_v9  ;;  %v5397_v11 = vpop.eup %5396  ;;  %v4030_v20 = vor.u32 1.1754944e-38, %v4029_v43 }
 0x648   :  { %v3866_v28 = vmul.f32 %v5395_v6, %v3851_v2  ;;  %v3875_v8 = vadd.f32 %v3867_v37, %v3827_v24 }
 0x649   :  { %v3945_v57 = vadd.f32 %v3944_v63, %v3937_v21  ;;  %v3826_v58 = vadd.f32 %v3818_v54, %v3778_v45  ;;  %v4031_v17 = vsel %vm4028_vm7, %v4030_v20, %v4026_v51 }
 0x64a   :  { %v3923_v59 = vadd.f32 %v3915_v61, %v3875_v8 }
 0x64b   :  { %v3874_v62 = vadd.f32 %v3866_v28, %v3826_v58 }
 0x64c   :  { %v3931_v9 = vmul.f32 %v3923_v59, %v7337_v56  ;;  %v4033_v56 = vmul.f32 %v4031_v17, %v7991_v7 }
 0x64e   :  { %v3939_v22 = vmul.f32 %v3931_v9, %v8478_v27 }
 0x650   :  { %v3899_v23 = vpop.permute.xlu1 %3898 }
 0x651   :  { %v3914_v14 = vmul.f32 %v5397_v11, %v3899_v23 }
 0x653   :  { %v3922_v44 = vadd.f32 %v3914_v14, %v3874_v62 }
 0x655   :  { %v3930_v39 = vmul.f32 %v3922_v44, %v7346_v5 }
 0x657   :  { %v3938_v31 = vmul.f32 %v3930_v39, %v6865_v38  ;;  %v4748_v38 = vld [vmem:[%s8097_s2] ss:$0 sm:$0xff] }
 0x658   :  { %v2123_v13 = vadd.f32 %v4748_v38, %v8479_v47 }
 0x659   :  { %v3946_v55 = vadd.f32 %v3945_v57, %v3938_v31 }
 0x65b   :  { %v3947_v33 = vadd.f32 %v3946_v55, %v3939_v22 }
 0x65d   :  { %v3952_v16 = vadd.f32 %v3951_v1, %v3947_v33 }
 0x65f   :  { %v4034_v5 = vmul.f32 %v4033_v56, %v3952_v16 }
 0x661   :  { %v4035_v60 = vpack.c.bf16 %v4034_v5, %v4034_v5 }
 0x663   :  { %4092 = vmatmul.bf16.vlgmr.msra.gmra.mxu1 %v4035_v60 }
 0x6e0   :  { %v4093_v29 = vpop.f32.mrf.mxu1 }
 0x6e1   :  { %v4097_v49 = vadd.f32 %v4093_v29, %v2123_v13 }
 0x6e3   :  { %4098 = vst [vmem:[#allocation11] sm:$0xff] %v4097_v49 }
 0x6e4   :  { %4109 = dma.vmem_to_hbm [thread:$0]  %s4105_s22, 128, %s4107_s24, [#allocation4]  }
 0x6e8   :  { %v4095_v7 = vpop.f32.mrf.mxu1 }
 0x6e9   :  { %5555 = dma.done.wait [#allocation4], 128  }
 0x6ea   :  { %5556 = vsyncadd [#allocation4], 4294967168 }
 0x6eb   :  { %4114 = vsyncpa [#allocation3], 1 }
 0x6ec   :  { %4115 = vsyncpa [#allocation6], 1 }
 0x6ed   :  { %4116 = vsyncpa [#allocation9], 1 }
 0x6ee   :  { %4117 = vsyncpa [#allocation4], 1 }

</bundles_post_ra>
